<compile_context>
chip_gen: v7x
topology: tpu7x:2x2x1
jax: 0.10.0
libtpu: 0.0.40
codegen_flags: <defaults>
</compile_context>

<pallas_src>
import jax
import jax.numpy as jnp
from jax.experimental import pallas as pl
from jax.experimental.pallas import tpu as pltpu


# ----------------------------------------------------------------------------
# Fused kernel: upsample+pad (1 matmul) -> concat -> conv1+BN+ReLU (1 matmul)
#               -> conv2+BN+ReLU (1 matmul)
# ----------------------------------------------------------------------------
def _up_fused_kernel(a_ref, x1_ref, x2_ref, w1_ref, s1_ref, b1_ref,
                     w2_ref, s2_ref, b2_ref, o_ref,
                     xpad_ref, p1_ref, hpad_ref, p2_ref):
    # a_ref : (H2*W2, H1*W1)  fused upsample+pad spatial operator
    # x1_ref: (1, H1, W1, C1) low-res input (to be upsampled)
    # x2_ref: (1, H2, W2, C2) skip connection
    # w1_ref: (9*Cin, Cmid)   im2col conv1 weights ;  s1/b1: (1, Cmid) folded BN
    # w2_ref: (9*Cmid, Cout)  im2col conv2 weights ;  s2/b2: (1, Cout) folded BN
    # o_ref : (1, H2, W2, Cout)
    _, H1, W1, C1 = x1_ref.shape
    _, H2, W2, C2 = x2_ref.shape
    Cin = C1 + C2
    Cmid = w1_ref.shape[1]
    Cout = w2_ref.shape[1]
    HW = H2 * W2

    # --- 1) bilinear 2x upsample (align_corners=True) + F.pad of x1,
    #        as ONE (HW, H1*W1) @ (H1*W1, C1) MXU matmul.
    x1_flat = x1_ref[0].reshape(H1 * W1, C1)
    x1u = jnp.dot(a_ref[...], x1_flat, preferred_element_type=jnp.float32)

    # --- 2) channel concat [x1_upsampled, x2] (== torch.cat([x1, x2], dim=1)),
    #        written straight into a zero-initialized 1-px-halo VMEM scratch so
    #        conv1's padding needs no separate op.
    xpad_ref[...] = jnp.zeros((H2 + 2, W2 + 2, Cin), jnp.float32)
    xpad_ref[1:H2 + 1, 1:W2 + 1, 0:C1] = x1u.reshape(H2, W2, C1)
    xpad_ref[1:H2 + 1, 1:W2 + 1, C1:Cin] = x2_ref[0]

    def conv3x3_bn_relu(xp_ref, patches_ref, w_ref, s_ref, b_ref, C):
        # 3x3 conv (input already zero-padded by 1) as ONE im2col matmul on the
        # MXU (K = 9*C), then folded eval-mode BN + ReLU on the VPU in f32.
        xp = xp_ref[...]                                   # (H2+2, W2+2, C)
        for ki in range(3):
            for kj in range(3):
                t = ki * 3 + kj
                patches_ref[:, t * C:(t + 1) * C] = (
                    xp[ki:ki + H2, kj:kj + W2, :].reshape(HW, C))
        y = jnp.dot(patches_ref[...], w_ref[...],
                    preferred_element_type=jnp.float32)    # (HW, C_layer)
        y = y * s_ref[0] + b_ref[0]                        # folded BatchNorm
        return jnp.maximum(y, 0.0)                         # ReLU

    # --- 3) conv1 + BN + ReLU   (Cin -> Cmid)
    h = conv3x3_bn_relu(xpad_ref, p1_ref, w1_ref, s1_ref, b1_ref, Cin)

    # --- 4) re-halo the mid activation in VMEM, conv2 + BN + ReLU (Cmid -> Cout)
    hpad_ref[...] = jnp.zeros((H2 + 2, W2 + 2, Cmid), jnp.float32)
    hpad_ref[1:H2 + 1, 1:W2 + 1, :] = h.reshape(H2, W2, Cmid)
    y = conv3x3_bn_relu(hpad_ref, p2_ref, w2_ref, s2_ref, b2_ref, Cmid)

    # --- 5) store NHWC. TODO(synk): for tiny Cout a transposed (Cout, H*W)
    #        lane-dense store would avoid masked vst; at real U-Net channel
    #        counts (>=64 lanes) the NHWC store is already near-dense.
    o_ref[0] = y.reshape(H2, W2, Cout)


# ----------------------------------------------------------------------------
# Upsample+pad operator (align_corners=True bilinear, scale factor 2)
# ----------------------------------------------------------------------------
def _interp_matrix(out_size, in_size):
    if in_size == 1:
        return jnp.ones((out_size, 1), jnp.float32)
    src = jnp.arange(out_size, dtype=jnp.float32) * (in_size - 1) / (out_size - 1)
    i0 = jnp.clip(jnp.floor(src).astype(jnp.int32), 0, in_size - 2)
    frac = src - i0.astype(jnp.float32)
    rows = jnp.arange(out_size)
    A = jnp.zeros((out_size, in_size), jnp.float32)
    A = A.at[rows, i0].add(1.0 - frac)
    A = A.at[rows, i0 + 1].add(frac)
    return A


def _upsample_pad_matrix(in_size, out_size, pad_lo):
    """(out_size, in_size): bilinear 2x interp rows; zero rows for F.pad."""
    A = _interp_matrix(2 * in_size, in_size)
    full = jnp.zeros((out_size, in_size), jnp.float32)
    return full.at[pad_lo:pad_lo + 2 * in_size, :].set(A)


# ----------------------------------------------------------------------------
# Parameters (deterministic, synthetic) and forward pass
# ----------------------------------------------------------------------------
def make_up_params(key, in_channels, out_channels):
    mid_channels = in_channels // 2
    ks = jax.random.split(key, 10)
    eps = 1e-5

    def bn_fold(kg, kb, km, kv, c):
        gamma = 1.0 + 0.1 * jax.random.normal(kg, (c,), jnp.float32)
        beta = 0.1 * jax.random.normal(kb, (c,), jnp.float32)
        mean = 0.1 * jax.random.normal(km, (c,), jnp.float32)
        var = jnp.abs(jax.random.normal(kv, (c,), jnp.float32)) + 0.5
        scale = gamma / jnp.sqrt(var + eps)
        bias = beta - mean * scale
        return scale, bias

    # Conv weights in HWIO layout (kh, kw, Cin, Cout); PyTorch uses OIHW.
    w1 = 0.1 * jax.random.normal(ks[0], (3, 3, in_channels, mid_channels), jnp.float32)
    w2 = 0.1 * jax.random.normal(ks[1], (3, 3, mid_channels, out_channels), jnp.float32)
    s1, b1 = bn_fold(ks[2], ks[3], ks[4], ks[5], mid_channels)
    s2, b2 = bn_fold(ks[6], ks[7], ks[8], ks[9], out_channels)
    return {"w1": w1, "s1": s1, "b1": b1, "w2": w2, "s2": s2, "b2": b2}


@jax.jit
def up_forward(x1, x2, params):
    """x1, x2 in NCHW (PyTorch layout). Returns NCHW."""
    N, C1, H1, W1 = x1.shape
    _, C2, H2, W2 = x2.shape
    Cin = C1 + C2
    Cmid = params["w1"].shape[-1]
    Cout = params["w2"].shape[-1]
    HW = H2 * W2

    # Fused upsample(2x, bilinear, align_corners=True) + F.pad operator:
    # out[I*W2+J, h*W1+w] = Ah[I,h] * Aw[J,w]   (zero rows = the pad region).
    diff_h = H2 - 2 * H1
    diff_w = W2 - 2 * W1
    Ah = _upsample_pad_matrix(H1, H2, diff_h // 2)
    Aw = _upsample_pad_matrix(W1, W2, diff_w // 2)
    A_sp = jnp.kron(Ah, Aw)                                 # (H2*W2, H1*W1)

    # Model-boundary layout changes only: NCHW -> NHWC for the kernel.
    x1_nhwc = jnp.transpose(x1, (0, 2, 3, 1))
    x2_nhwc = jnp.transpose(x2, (0, 2, 3, 1))

    # HWIO weights -> im2col 2D layout (row index = (ki*3+kj)*Cin + ci).
    w1_2d = params["w1"].reshape(9 * Cin, Cmid)
    w2_2d = params["w2"].reshape(9 * Cmid, Cout)
    s1 = params["s1"].reshape(1, Cmid).astype(jnp.float32)
    b1 = params["b1"].reshape(1, Cmid).astype(jnp.float32)
    s2 = params["s2"].reshape(1, Cout).astype(jnp.float32)
    b2 = params["b2"].reshape(1, Cout).astype(jnp.float32)

    out_nhwc = pl.pallas_call(
        _up_fused_kernel,
        out_shape=jax.ShapeDtypeStruct((N, H2, W2, Cout), jnp.float32),
        grid=(N,),
        in_specs=[
            pl.BlockSpec((HW, H1 * W1), lambda n: (0, 0)),
            pl.BlockSpec((1, H1, W1, C1), lambda n: (n, 0, 0, 0)),
            pl.BlockSpec((1, H2, W2, C2), lambda n: (n, 0, 0, 0)),
            pl.BlockSpec((9 * Cin, Cmid), lambda n: (0, 0)),
            pl.BlockSpec((1, Cmid), lambda n: (0, 0)),
            pl.BlockSpec((1, Cmid), lambda n: (0, 0)),
            pl.BlockSpec((9 * Cmid, Cout), lambda n: (0, 0)),
            pl.BlockSpec((1, Cout), lambda n: (0, 0)),
            pl.BlockSpec((1, Cout), lambda n: (0, 0)),
        ],
        out_specs=pl.BlockSpec((1, H2, W2, Cout), lambda n: (n, 0, 0, 0)),
        scratch_shapes=[
            pltpu.VMEM((H2 + 2, W2 + 2, Cin), jnp.float32),   # padded concat
            pltpu.VMEM((HW, 9 * Cin), jnp.float32),           # conv1 im2col
            pltpu.VMEM((H2 + 2, W2 + 2, Cmid), jnp.float32),  # padded mid act
            pltpu.VMEM((HW, 9 * Cmid), jnp.float32),          # conv2 im2col
        ],
        compiler_params=pltpu.CompilerParams(
            dimension_semantics=("parallel",)
        ),
    )(A_sp, x1_nhwc, x2_nhwc, w1_2d, s1, b1, w2_2d, s2, b2)

    # NHWC -> NCHW at the model boundary.
    return jnp.transpose(out_nhwc, (0, 3, 1, 2))


if __name__ == "__main__":
    key = jax.random.PRNGKey(0)
    k1, k2, kp = jax.random.split(key, 3)

    in_channels = 8    # channels after concat
    out_channels = 4
    N = 2

    # x1: low-res feature map (gets upsampled 2x); x2: skip connection.
    x1 = jax.random.normal(k1, (N, in_channels // 2, 8, 8), jnp.float32)
    x2 = jax.random.normal(k2, (N, in_channels // 2, 16, 16), jnp.float32)

    params = make_up_params(kp, in_channels, out_channels)

    out = jax.block_until_ready(up_forward(x1, x2, params))

    assert out.shape == (N, out_channels, 16, 16), out.shape
    assert bool(jnp.all(jnp.isfinite(out)))
    print("KERNEL_OK")
</pallas_src>

<mosaic_0001>
module attributes {stable_mosaic.version = 11 : i64} {
  func.func private @main(%arg0: i32) attributes {dimension_semantics = [#tpu.dimension_semantics<core_parallel>], iteration_bounds = array<i64: 2>, tpu.core_type = #tpu.core_type<sc_scalar_subcore>, window_params = []} {
    return
  }
}

module attributes {stable_mosaic.version = 11 : i64} {
  func.func private @main(%arg0: i32) attributes {dimension_semantics = [#tpu.dimension_semantics<core_parallel>], iteration_bounds = array<i64: 2>, tpu.core_type = #tpu.core_type<sc_scalar_subcore>, window_params = []} {
    return
  }
}

module attributes {stable_mosaic.version = 11 : i64} {
  func.func @_up_fused_kernel(%arg0: i32, %arg1: memref<256x64xf32, #tpu.memory_space<vmem>>, %arg2: memref<1x8x8x4xf32, #tpu.memory_space<vmem>>, %arg3: memref<1x16x16x4xf32, #tpu.memory_space<vmem>>, %arg4: memref<72x4xf32, #tpu.memory_space<vmem>>, %arg5: memref<1x4xf32, #tpu.memory_space<vmem>>, %arg6: memref<1x4xf32, #tpu.memory_space<vmem>>, %arg7: memref<36x4xf32, #tpu.memory_space<vmem>>, %arg8: memref<1x4xf32, #tpu.memory_space<vmem>>, %arg9: memref<1x4xf32, #tpu.memory_space<vmem>>, %arg10: memref<1x16x16x4xf32, #tpu.memory_space<vmem>>, %arg11: memref<18x18x8xf32, #tpu.memory_space<vmem>>, %arg12: memref<256x72xf32, #tpu.memory_space<vmem>>, %arg13: memref<18x18x4xf32, #tpu.memory_space<vmem>>, %arg14: memref<256x36xf32, #tpu.memory_space<vmem>>) attributes {dimension_semantics = [#tpu.dimension_semantics<parallel>], iteration_bounds = array<i64: 2>, scalar_prefetch = 0 : i64, scratch_operands = 4 : i64, tpu.core_type = #tpu.core_type<tc>, window_params = [{pipeline_mode = #tpu.pipeline_mode<synchronous>, transform_indices = @transform_0, window_bounds = array<i64: 256, 64>}, {transform_indices = @transform_1, window_bounds = array<i64: 1, 8, 8, 4>}, {transform_indices = @transform_2, window_bounds = array<i64: 1, 16, 16, 4>}, {pipeline_mode = #tpu.pipeline_mode<synchronous>, transform_indices = @transform_3, window_bounds = array<i64: 72, 4>}, {pipeline_mode = #tpu.pipeline_mode<synchronous>, transform_indices = @transform_4, window_bounds = array<i64: 1, 4>}, {pipeline_mode = #tpu.pipeline_mode<synchronous>, transform_indices = @transform_5, window_bounds = array<i64: 1, 4>}, {pipeline_mode = #tpu.pipeline_mode<synchronous>, transform_indices = @transform_6, window_bounds = array<i64: 36, 4>}, {pipeline_mode = #tpu.pipeline_mode<synchronous>, transform_indices = @transform_7, window_bounds = array<i64: 1, 4>}, {pipeline_mode = #tpu.pipeline_mode<synchronous>, transform_indices = @transform_8, window_bounds = array<i64: 1, 4>}, {transform_indices = @transform_9, window_bounds = array<i64: 1, 16, 16, 4>}]} {
    %c0 = arith.constant 0 : index
    %c0_0 = arith.constant 0 : index
    %c0_1 = arith.constant 0 : index
    %c0_2 = arith.constant 0 : index
    %0 = vector.load %arg2[%c0, %c0_0, %c0_1, %c0_2] : memref<1x8x8x4xf32, #tpu.memory_space<vmem>>, vector<1x8x8x4xf32>
    %1 = vector.shape_cast %0 : vector<1x8x8x4xf32> to vector<8x8x4xf32>
    %2 = vector.shape_cast %1 : vector<8x8x4xf32> to vector<64x4xf32>
    %c0_3 = arith.constant 0 : index
    %c0_4 = arith.constant 0 : index
    %3 = vector.load %arg1[%c0_3, %c0_4] : memref<256x64xf32, #tpu.memory_space<vmem>>, vector<256x64xf32>
    %cst = arith.constant dense<0.000000e+00> : vector<256x4xf32>
    %4 = tpu.matmul %3, %2, %cst {dimension_numbers = #tpu.dot_dimension_numbers<[1], [0], [0], [1], [0, 0, 1, 1], [], []>} : vector<256x64xf32>, vector<64x4xf32>, vector<256x4xf32> -> vector<256x4xf32>
    %cst_5 = arith.constant 0.000000e+00 : f32
    %5 = vector.broadcast %cst_5 : f32 to vector<18x18x8xf32>
    %c0_6 = arith.constant 0 : index
    %c0_7 = arith.constant 0 : index
    %c0_8 = arith.constant 0 : index
    %6 = vector.load %arg11[%c0_6, %c0_7, %c0_8] : memref<18x18x8xf32, #tpu.memory_space<vmem>>, vector<18x18x8xf32>
    tpu.vector_store %arg11[%c0_6, %c0_7, %c0_8], %5 {strides = array<i32>} : memref<18x18x8xf32, #tpu.memory_space<vmem>>, vector<18x18x8xf32>,
    %7 = vector.shape_cast %4 : vector<256x4xf32> to vector<16x16x4xf32>
    %c1 = arith.constant 1 : index
    %c1_9 = arith.constant 1 : index
    %c0_10 = arith.constant 0 : index
    %8 = vector.load %arg11[%c1, %c1_9, %c0_10] : memref<18x18x8xf32, #tpu.memory_space<vmem>>, vector<16x16x4xf32>
    tpu.vector_store %arg11[%c1, %c1_9, %c0_10], %7 {strides = array<i32>} : memref<18x18x8xf32, #tpu.memory_space<vmem>>, vector<16x16x4xf32>,
    %c0_11 = arith.constant 0 : index
    %c0_12 = arith.constant 0 : index
    %c0_13 = arith.constant 0 : index
    %c0_14 = arith.constant 0 : index
    %9 = vector.load %arg3[%c0_11, %c0_12, %c0_13, %c0_14] : memref<1x16x16x4xf32, #tpu.memory_space<vmem>>, vector<1x16x16x4xf32>
    %10 = vector.shape_cast %9 : vector<1x16x16x4xf32> to vector<16x16x4xf32>
    %c1_15 = arith.constant 1 : index
    %c1_16 = arith.constant 1 : index
    %c4 = arith.constant 4 : index
    %11 = vector.load %arg11[%c1_15, %c1_16, %c4] : memref<18x18x8xf32, #tpu.memory_space<vmem>>, vector<16x16x4xf32>
    tpu.vector_store %arg11[%c1_15, %c1_16, %c4], %10 {strides = array<i32>} : memref<18x18x8xf32, #tpu.memory_space<vmem>>, vector<16x16x4xf32>,
    %c0_17 = arith.constant 0 : index
    %c0_18 = arith.constant 0 : index
    %c0_19 = arith.constant 0 : index
    %12 = vector.load %arg11[%c0_17, %c0_18, %c0_19] : memref<18x18x8xf32, #tpu.memory_space<vmem>>, vector<18x18x8xf32>
    %13 = vector.extract_strided_slice %12 {offsets = [0, 0, 0], sizes = [16, 16, 8], strides = [1, 1, 1]} : vector<18x18x8xf32> to vector<16x16x8xf32>
    %14 = vector.shape_cast %13 : vector<16x16x8xf32> to vector<256x8xf32>
    %c0_20 = arith.constant 0 : index
    %c0_21 = arith.constant 0 : index
    %15 = vector.load %arg12[%c0_20, %c0_21] : memref<256x72xf32, #tpu.memory_space<vmem>>, vector<256x8xf32>
    tpu.vector_store %arg12[%c0_20, %c0_21], %14 {strides = array<i32>} : memref<256x72xf32, #tpu.memory_space<vmem>>, vector<256x8xf32>,
    %16 = vector.extract_strided_slice %12 {offsets = [0, 1, 0], sizes = [16, 16, 8], strides = [1, 1, 1]} : vector<18x18x8xf32> to vector<16x16x8xf32>
    %17 = vector.shape_cast %16 : vector<16x16x8xf32> to vector<256x8xf32>
    %c0_22 = arith.constant 0 : index
    %c8 = arith.constant 8 : index
    %18 = vector.load %arg12[%c0_22, %c8] : memref<256x72xf32, #tpu.memory_space<vmem>>, vector<256x8xf32>
    tpu.vector_store %arg12[%c0_22, %c8], %17 {strides = array<i32>} : memref<256x72xf32, #tpu.memory_space<vmem>>, vector<256x8xf32>,
    %19 = vector.extract_strided_slice %12 {offsets = [0, 2, 0], sizes = [16, 16, 8], strides = [1, 1, 1]} : vector<18x18x8xf32> to vector<16x16x8xf32>
    %20 = vector.shape_cast %19 : vector<16x16x8xf32> to vector<256x8xf32>
    %c0_23 = arith.constant 0 : index
    %c16 = arith.constant 16 : index
    %21 = vector.load %arg12[%c0_23, %c16] : memref<256x72xf32, #tpu.memory_space<vmem>>, vector<256x8xf32>
    tpu.vector_store %arg12[%c0_23, %c16], %20 {strides = array<i32>} : memref<256x72xf32, #tpu.memory_space<vmem>>, vector<256x8xf32>,
    %22 = vector.extract_strided_slice %12 {offsets = [1, 0, 0], sizes = [16, 16, 8], strides = [1, 1, 1]} : vector<18x18x8xf32> to vector<16x16x8xf32>
    %23 = vector.shape_cast %22 : vector<16x16x8xf32> to vector<256x8xf32>
    %c0_24 = arith.constant 0 : index
    %c24 = arith.constant 24 : index
    %24 = vector.load %arg12[%c0_24, %c24] : memref<256x72xf32, #tpu.memory_space<vmem>>, vector<256x8xf32>
    tpu.vector_store %arg12[%c0_24, %c24], %23 {strides = array<i32>} : memref<256x72xf32, #tpu.memory_space<vmem>>, vector<256x8xf32>,
    %25 = vector.extract_strided_slice %12 {offsets = [1, 1, 0], sizes = [16, 16, 8], strides = [1, 1, 1]} : vector<18x18x8xf32> to vector<16x16x8xf32>
    %26 = vector.shape_cast %25 : vector<16x16x8xf32> to vector<256x8xf32>
    %c0_25 = arith.constant 0 : index
    %c32 = arith.constant 32 : index
    %27 = vector.load %arg12[%c0_25, %c32] : memref<256x72xf32, #tpu.memory_space<vmem>>, vector<256x8xf32>
    tpu.vector_store %arg12[%c0_25, %c32], %26 {strides = array<i32>} : memref<256x72xf32, #tpu.memory_space<vmem>>, vector<256x8xf32>,
    %28 = vector.extract_strided_slice %12 {offsets = [1, 2, 0], sizes = [16, 16, 8], strides = [1, 1, 1]} : vector<18x18x8xf32> to vector<16x16x8xf32>
    %29 = vector.shape_cast %28 : vector<16x16x8xf32> to vector<256x8xf32>
    %c0_26 = arith.constant 0 : index
    %c40 = arith.constant 40 : index
    %30 = vector.load %arg12[%c0_26, %c40] : memref<256x72xf32, #tpu.memory_space<vmem>>, vector<256x8xf32>
    tpu.vector_store %arg12[%c0_26, %c40], %29 {strides = array<i32>} : memref<256x72xf32, #tpu.memory_space<vmem>>, vector<256x8xf32>,
    %31 = vector.extract_strided_slice %12 {offsets = [2, 0, 0], sizes = [16, 16, 8], strides = [1, 1, 1]} : vector<18x18x8xf32> to vector<16x16x8xf32>
    %32 = vector.shape_cast %31 : vector<16x16x8xf32> to vector<256x8xf32>
    %c0_27 = arith.constant 0 : index
    %c48 = arith.constant 48 : index
    %33 = vector.load %arg12[%c0_27, %c48] : memref<256x72xf32, #tpu.memory_space<vmem>>, vector<256x8xf32>
    tpu.vector_store %arg12[%c0_27, %c48], %32 {strides = array<i32>} : memref<256x72xf32, #tpu.memory_space<vmem>>, vector<256x8xf32>,
    %34 = vector.extract_strided_slice %12 {offsets = [2, 1, 0], sizes = [16, 16, 8], strides = [1, 1, 1]} : vector<18x18x8xf32> to vector<16x16x8xf32>
    %35 = vector.shape_cast %34 : vector<16x16x8xf32> to vector<256x8xf32>
    %c0_28 = arith.constant 0 : index
    %c56 = arith.constant 56 : index
    %36 = vector.load %arg12[%c0_28, %c56] : memref<256x72xf32, #tpu.memory_space<vmem>>, vector<256x8xf32>
    tpu.vector_store %arg12[%c0_28, %c56], %35 {strides = array<i32>} : memref<256x72xf32, #tpu.memory_space<vmem>>, vector<256x8xf32>,
    %37 = vector.extract_strided_slice %12 {offsets = [2, 2, 0], sizes = [16, 16, 8], strides = [1, 1, 1]} : vector<18x18x8xf32> to vector<16x16x8xf32>
    %38 = vector.shape_cast %37 : vector<16x16x8xf32> to vector<256x8xf32>
    %c0_29 = arith.constant 0 : index
    %c64 = arith.constant 64 : index
    %39 = vector.load %arg12[%c0_29, %c64] : memref<256x72xf32, #tpu.memory_space<vmem>>, vector<256x8xf32>
    tpu.vector_store %arg12[%c0_29, %c64], %38 {strides = array<i32>} : memref<256x72xf32, #tpu.memory_space<vmem>>, vector<256x8xf32>,
    %c0_30 = arith.constant 0 : index
    %c0_31 = arith.constant 0 : index
    %40 = vector.load %arg12[%c0_30, %c0_31] : memref<256x72xf32, #tpu.memory_space<vmem>>, vector<256x72xf32>
    %c0_32 = arith.constant 0 : index
    %c0_33 = arith.constant 0 : index
    %41 = vector.load %arg4[%c0_32, %c0_33] : memref<72x4xf32, #tpu.memory_space<vmem>>, vector<72x4xf32>
    %cst_34 = arith.constant dense<0.000000e+00> : vector<256x4xf32>
    %42 = tpu.matmul %40, %41, %cst_34 {dimension_numbers = #tpu.dot_dimension_numbers<[1], [0], [0], [1], [0, 0, 1, 1], [], []>} : vector<256x72xf32>, vector<72x4xf32>, vector<256x4xf32> -> vector<256x4xf32>
    %c0_35 = arith.constant 0 : index
    %c0_36 = arith.constant 0 : index
    %43 = vector.load %arg5[%c0_35, %c0_36] : memref<1x4xf32, #tpu.memory_space<vmem>>, vector<1x4xf32>
    %44 = vector.shape_cast %43 : vector<1x4xf32> to vector<4xf32>
    %45 = vector.shape_cast %44 : vector<4xf32> to vector<1x4xf32>
    %46 = vector.broadcast %45 : vector<1x4xf32> to vector<256x4xf32>
    %47 = arith.mulf %42, %46 : vector<256x4xf32>
    %c0_37 = arith.constant 0 : index
    %c0_38 = arith.constant 0 : index
    %48 = vector.load %arg6[%c0_37, %c0_38] : memref<1x4xf32, #tpu.memory_space<vmem>>, vector<1x4xf32>
    %49 = vector.shape_cast %48 : vector<1x4xf32> to vector<4xf32>
    %50 = vector.shape_cast %49 : vector<4xf32> to vector<1x4xf32>
    %51 = vector.broadcast %50 : vector<1x4xf32> to vector<256x4xf32>
    %52 = arith.addf %47, %51 : vector<256x4xf32>
    %cst_39 = arith.constant 0.000000e+00 : f32
    %53 = vector.broadcast %cst_39 : f32 to vector<256x4xf32>
    %54 = arith.maximumf %52, %53 : vector<256x4xf32>
    %cst_40 = arith.constant 0.000000e+00 : f32
    %55 = vector.broadcast %cst_40 : f32 to vector<18x18x4xf32>
    %c0_41 = arith.constant 0 : index
    %c0_42 = arith.constant 0 : index
    %c0_43 = arith.constant 0 : index
    %56 = vector.load %arg13[%c0_41, %c0_42, %c0_43] : memref<18x18x4xf32, #tpu.memory_space<vmem>>, vector<18x18x4xf32>
    tpu.vector_store %arg13[%c0_41, %c0_42, %c0_43], %55 {strides = array<i32>} : memref<18x18x4xf32, #tpu.memory_space<vmem>>, vector<18x18x4xf32>,
    %57 = vector.shape_cast %54 : vector<256x4xf32> to vector<16x16x4xf32>
    %c1_44 = arith.constant 1 : index
    %c1_45 = arith.constant 1 : index
    %c0_46 = arith.constant 0 : index
    %58 = vector.load %arg13[%c1_44, %c1_45, %c0_46] : memref<18x18x4xf32, #tpu.memory_space<vmem>>, vector<16x16x4xf32>
    tpu.vector_store %arg13[%c1_44, %c1_45, %c0_46], %57 {strides = array<i32>} : memref<18x18x4xf32, #tpu.memory_space<vmem>>, vector<16x16x4xf32>,
    %c0_47 = arith.constant 0 : index
    %c0_48 = arith.constant 0 : index
    %c0_49 = arith.constant 0 : index
    %59 = vector.load %arg13[%c0_47, %c0_48, %c0_49] : memref<18x18x4xf32, #tpu.memory_space<vmem>>, vector<18x18x4xf32>
    %60 = vector.extract_strided_slice %59 {offsets = [0, 0, 0], sizes = [16, 16, 4], strides = [1, 1, 1]} : vector<18x18x4xf32> to vector<16x16x4xf32>
    %61 = vector.shape_cast %60 : vector<16x16x4xf32> to vector<256x4xf32>
    %c0_50 = arith.constant 0 : index
    %c0_51 = arith.constant 0 : index
    %62 = vector.load %arg14[%c0_50, %c0_51] : memref<256x36xf32, #tpu.memory_space<vmem>>, vector<256x4xf32>
    tpu.vector_store %arg14[%c0_50, %c0_51], %61 {strides = array<i32>} : memref<256x36xf32, #tpu.memory_space<vmem>>, vector<256x4xf32>,
    %63 = vector.extract_strided_slice %59 {offsets = [0, 1, 0], sizes = [16, 16, 4], strides = [1, 1, 1]} : vector<18x18x4xf32> to vector<16x16x4xf32>
    %64 = vector.shape_cast %63 : vector<16x16x4xf32> to vector<256x4xf32>
    %c0_52 = arith.constant 0 : index
    %c4_53 = arith.constant 4 : index
    %65 = vector.load %arg14[%c0_52, %c4_53] : memref<256x36xf32, #tpu.memory_space<vmem>>, vector<256x4xf32>
    tpu.vector_store %arg14[%c0_52, %c4_53], %64 {strides = array<i32>} : memref<256x36xf32, #tpu.memory_space<vmem>>, vector<256x4xf32>,
    %66 = vector.extract_strided_slice %59 {offsets = [0, 2, 0], sizes = [16, 16, 4], strides = [1, 1, 1]} : vector<18x18x4xf32> to vector<16x16x4xf32>
    %67 = vector.shape_cast %66 : vector<16x16x4xf32> to vector<256x4xf32>
    %c0_54 = arith.constant 0 : index
    %c8_55 = arith.constant 8 : index
    %68 = vector.load %arg14[%c0_54, %c8_55] : memref<256x36xf32, #tpu.memory_space<vmem>>, vector<256x4xf32>
    tpu.vector_store %arg14[%c0_54, %c8_55], %67 {strides = array<i32>} : memref<256x36xf32, #tpu.memory_space<vmem>>, vector<256x4xf32>,
    %69 = vector.extract_strided_slice %59 {offsets = [1, 0, 0], sizes = [16, 16, 4], strides = [1, 1, 1]} : vector<18x18x4xf32> to vector<16x16x4xf32>
    %70 = vector.shape_cast %69 : vector<16x16x4xf32> to vector<256x4xf32>
    %c0_56 = arith.constant 0 : index
    %c12 = arith.constant 12 : index
    %71 = vector.load %arg14[%c0_56, %c12] : memref<256x36xf32, #tpu.memory_space<vmem>>, vector<256x4xf32>
    tpu.vector_store %arg14[%c0_56, %c12], %70 {strides = array<i32>} : memref<256x36xf32, #tpu.memory_space<vmem>>, vector<256x4xf32>,
    %72 = vector.extract_strided_slice %59 {offsets = [1, 1, 0], sizes = [16, 16, 4], strides = [1, 1, 1]} : vector<18x18x4xf32> to vector<16x16x4xf32>
    %73 = vector.shape_cast %72 : vector<16x16x4xf32> to vector<256x4xf32>
    %c0_57 = arith.constant 0 : index
    %c16_58 = arith.constant 16 : index
    %74 = vector.load %arg14[%c0_57, %c16_58] : memref<256x36xf32, #tpu.memory_space<vmem>>, vector<256x4xf32>
    tpu.vector_store %arg14[%c0_57, %c16_58], %73 {strides = array<i32>} : memref<256x36xf32, #tpu.memory_space<vmem>>, vector<256x4xf32>,
    %75 = vector.extract_strided_slice %59 {offsets = [1, 2, 0], sizes = [16, 16, 4], strides = [1, 1, 1]} : vector<18x18x4xf32> to vector<16x16x4xf32>
    %76 = vector.shape_cast %75 : vector<16x16x4xf32> to vector<256x4xf32>
    %c0_59 = arith.constant 0 : index
    %c20 = arith.constant 20 : index
    %77 = vector.load %arg14[%c0_59, %c20] : memref<256x36xf32, #tpu.memory_space<vmem>>, vector<256x4xf32>
    tpu.vector_store %arg14[%c0_59, %c20], %76 {strides = array<i32>} : memref<256x36xf32, #tpu.memory_space<vmem>>, vector<256x4xf32>,
    %78 = vector.extract_strided_slice %59 {offsets = [2, 0, 0], sizes = [16, 16, 4], strides = [1, 1, 1]} : vector<18x18x4xf32> to vector<16x16x4xf32>
    %79 = vector.shape_cast %78 : vector<16x16x4xf32> to vector<256x4xf32>
    %c0_60 = arith.constant 0 : index
    %c24_61 = arith.constant 24 : index
    %80 = vector.load %arg14[%c0_60, %c24_61] : memref<256x36xf32, #tpu.memory_space<vmem>>, vector<256x4xf32>
    tpu.vector_store %arg14[%c0_60, %c24_61], %79 {strides = array<i32>} : memref<256x36xf32, #tpu.memory_space<vmem>>, vector<256x4xf32>,
    %81 = vector.extract_strided_slice %59 {offsets = [2, 1, 0], sizes = [16, 16, 4], strides = [1, 1, 1]} : vector<18x18x4xf32> to vector<16x16x4xf32>
    %82 = vector.shape_cast %81 : vector<16x16x4xf32> to vector<256x4xf32>
    %c0_62 = arith.constant 0 : index
    %c28 = arith.constant 28 : index
    %83 = vector.load %arg14[%c0_62, %c28] : memref<256x36xf32, #tpu.memory_space<vmem>>, vector<256x4xf32>
    tpu.vector_store %arg14[%c0_62, %c28], %82 {strides = array<i32>} : memref<256x36xf32, #tpu.memory_space<vmem>>, vector<256x4xf32>,
    %84 = vector.extract_strided_slice %59 {offsets = [2, 2, 0], sizes = [16, 16, 4], strides = [1, 1, 1]} : vector<18x18x4xf32> to vector<16x16x4xf32>
    %85 = vector.shape_cast %84 : vector<16x16x4xf32> to vector<256x4xf32>
    %c0_63 = arith.constant 0 : index
    %c32_64 = arith.constant 32 : index
    %86 = vector.load %arg14[%c0_63, %c32_64] : memref<256x36xf32, #tpu.memory_space<vmem>>, vector<256x4xf32>
    tpu.vector_store %arg14[%c0_63, %c32_64], %85 {strides = array<i32>} : memref<256x36xf32, #tpu.memory_space<vmem>>, vector<256x4xf32>,
    %c0_65 = arith.constant 0 : index
    %c0_66 = arith.constant 0 : index
    %87 = vector.load %arg14[%c0_65, %c0_66] : memref<256x36xf32, #tpu.memory_space<vmem>>, vector<256x36xf32>
    %c0_67 = arith.constant 0 : index
    %c0_68 = arith.constant 0 : index
    %88 = vector.load %arg7[%c0_67, %c0_68] : memref<36x4xf32, #tpu.memory_space<vmem>>, vector<36x4xf32>
    %cst_69 = arith.constant dense<0.000000e+00> : vector<256x4xf32>
    %89 = tpu.matmul %87, %88, %cst_69 {dimension_numbers = #tpu.dot_dimension_numbers<[1], [0], [0], [1], [0, 0, 1, 1], [], []>} : vector<256x36xf32>, vector<36x4xf32>, vector<256x4xf32> -> vector<256x4xf32>
    %c0_70 = arith.constant 0 : index
    %c0_71 = arith.constant 0 : index
    %90 = vector.load %arg8[%c0_70, %c0_71] : memref<1x4xf32, #tpu.memory_space<vmem>>, vector<1x4xf32>
    %91 = vector.shape_cast %90 : vector<1x4xf32> to vector<4xf32>
    %92 = vector.shape_cast %91 : vector<4xf32> to vector<1x4xf32>
    %93 = vector.broadcast %92 : vector<1x4xf32> to vector<256x4xf32>
    %94 = arith.mulf %89, %93 : vector<256x4xf32>
    %c0_72 = arith.constant 0 : index
    %c0_73 = arith.constant 0 : index
    %95 = vector.load %arg9[%c0_72, %c0_73] : memref<1x4xf32, #tpu.memory_space<vmem>>, vector<1x4xf32>
    %96 = vector.shape_cast %95 : vector<1x4xf32> to vector<4xf32>
    %97 = vector.shape_cast %96 : vector<4xf32> to vector<1x4xf32>
    %98 = vector.broadcast %97 : vector<1x4xf32> to vector<256x4xf32>
    %99 = arith.addf %94, %98 : vector<256x4xf32>
    %cst_74 = arith.constant 0.000000e+00 : f32
    %100 = vector.broadcast %cst_74 : f32 to vector<256x4xf32>
    %101 = arith.maximumf %99, %100 : vector<256x4xf32>
    %102 = vector.shape_cast %101 : vector<256x4xf32> to vector<16x16x4xf32>
    %c0_75 = arith.constant 0 : index
    %c0_76 = arith.constant 0 : index
    %c0_77 = arith.constant 0 : index
    %c0_78 = arith.constant 0 : index
    %103 = vector.load %arg10[%c0_75, %c0_76, %c0_77, %c0_78] : memref<1x16x16x4xf32, #tpu.memory_space<vmem>>, vector<1x16x16x4xf32>
    %104 = vector.shape_cast %103 : vector<1x16x16x4xf32> to vector<16x16x4xf32>
    %105 = vector.shape_cast %102 : vector<16x16x4xf32> to vector<1x16x16x4xf32>
    tpu.vector_store %arg10[%c0_75, %c0_76, %c0_77, %c0_78], %105 {strides = array<i32>} : memref<1x16x16x4xf32, #tpu.memory_space<vmem>>, vector<1x16x16x4xf32>,
    return
  }
  func.func @transform_0(%arg0: i32) -> (i32, i32) {
    %c0_i32 = arith.constant 0 : i32
    %c0_i32_0 = arith.constant 0 : i32
    %c0_i32_1 = arith.constant 0 : i32
    return %c0_i32, %c0_i32_0 : i32, i32
  }
  func.func @transform_1(%arg0: i32) -> (i32, i32, i32, i32) {
    %c0_i32 = arith.constant 0 : i32
    %c0_i32_0 = arith.constant 0 : i32
    %c0_i32_1 = arith.constant 0 : i32
    %c0_i32_2 = arith.constant 0 : i32
    return %arg0, %c0_i32, %c0_i32_0, %c0_i32_1 : i32, i32, i32, i32
  }
  func.func @transform_2(%arg0: i32) -> (i32, i32, i32, i32) {
    %c0_i32 = arith.constant 0 : i32
    %c0_i32_0 = arith.constant 0 : i32
    %c0_i32_1 = arith.constant 0 : i32
    %c0_i32_2 = arith.constant 0 : i32
    return %arg0, %c0_i32, %c0_i32_0, %c0_i32_1 : i32, i32, i32, i32
  }
  func.func @transform_3(%arg0: i32) -> (i32, i32) {
    %c0_i32 = arith.constant 0 : i32
    %c0_i32_0 = arith.constant 0 : i32
    %c0_i32_1 = arith.constant 0 : i32
    return %c0_i32, %c0_i32_0 : i32, i32
  }
  func.func @transform_4(%arg0: i32) -> (i32, i32) {
    %c0_i32 = arith.constant 0 : i32
    %c0_i32_0 = arith.constant 0 : i32
    %c0_i32_1 = arith.constant 0 : i32
    return %c0_i32, %c0_i32_0 : i32, i32
  }
  func.func @transform_5(%arg0: i32) -> (i32, i32) {
    %c0_i32 = arith.constant 0 : i32
    %c0_i32_0 = arith.constant 0 : i32
    %c0_i32_1 = arith.constant 0 : i32
    return %c0_i32, %c0_i32_0 : i32, i32
  }
  func.func @transform_6(%arg0: i32) -> (i32, i32) {
    %c0_i32 = arith.constant 0 : i32
    %c0_i32_0 = arith.constant 0 : i32
    %c0_i32_1 = arith.constant 0 : i32
    return %c0_i32, %c0_i32_0 : i32, i32
  }
  func.func @transform_7(%arg0: i32) -> (i32, i32) {
    %c0_i32 = arith.constant 0 : i32
    %c0_i32_0 = arith.constant 0 : i32
    %c0_i32_1 = arith.constant 0 : i32
    return %c0_i32, %c0_i32_0 : i32, i32
  }
  func.func @transform_8(%arg0: i32) -> (i32, i32) {
    %c0_i32 = arith.constant 0 : i32
    %c0_i32_0 = arith.constant 0 : i32
    %c0_i32_1 = arith.constant 0 : i32
    return %c0_i32, %c0_i32_0 : i32, i32
  }
  func.func @transform_9(%arg0: i32) -> (i32, i32, i32, i32) {
    %c0_i32 = arith.constant 0 : i32
    %c0_i32_0 = arith.constant 0 : i32
    %c0_i32_1 = arith.constant 0 : i32
    %c0_i32_2 = arith.constant 0 : i32
    return %arg0, %c0_i32, %c0_i32_0, %c0_i32_1 : i32, i32, i32, i32
  }
}

</mosaic_0001>

<bundles_post_ra>
// kernel: up_forward.1
= control target key start
LH: loop header
LB: loop body
LE: loop exit
PB: predicated region body
PF: predicated region fallthrough
CT: control target
= control target key end

     0   :  { %s5401_s30 = smov 0   ;;  %s8661_s0 = inlined_call_operand.vmem [shape: f32[256,64], index: 0, kind: input, shape index: {}]   ;;  %s8662_s1 = inlined_call_operand.vmem [shape: f32[2,8,8,4], index: 1, kind: input, shape index: {}]   ;;  %s8663_s2 = inlined_call_operand.vmem [shape: f32[2,16,16,4], index: 2, kind: input, shape index: {}]   ;;  %s8664_s3 = inlined_call_operand.vmem [shape: f32[72,4], index: 3, kind: input, shape index: {}]   ;;  %s8665_s4 = inlined_call_operand.vmem [shape: f32[1,4], index: 4, kind: input, shape index: {}]   ;;  %s8666_s5 = inlined_call_operand.vmem [shape: f32[1,4], index: 5, kind: input, shape index: {}]   ;;  %s8667_s6 = inlined_call_operand.vmem [shape: f32[36,4], index: 6, kind: input, shape index: {}]   ;;  %s8668_s7 = inlined_call_operand.vmem [shape: f32[1,4], index: 7, kind: input, shape index: {}]   ;;  %s8669_s8 = inlined_call_operand.vmem [shape: f32[1,4], index: 8, kind: input, shape index: {}]   ;;  %s8670_s9 = inlined_call_operand.vmem [shape: f32[2,16,16,4], index: 9, kind: output, shape index: {}]  }
   0x1 LB: > { %s4836_s10 = sadd.s32 4294967295, %s5336_s30   ;;  %p4840_p0 = scmp.ge.s32.totalorder %s5336_s30, 1  ;;  %s5336_s30 = sphi %s5401_s30, %s19_s30  }
   0x2   : > { %p297_p1 = scmp.lt.s32.totalorder %s5336_s30, 3 }
   0x4   : > { %p298_p2 = pnand %p4840_p0, %p297_p1 }
   0x6   : > { %301 = sbr.rel (%p298_p2) target bundleno = 1875 (0x753), region = 56 }
   0xd   : > { %p338_p3 = scmp.lt.s32.totalorder %s4836_s10, 1  ;;  %v361_v0 = vld [vmem:[%s8661_s0] sm:$0xff]  ;;  %vm393_vm0 = vcmask 523264   ;;  %s5338_s23 = smov 4   ;;  %v362_v22 = vld [vmem:[%s8661_s0 + $0x8] sm:$0xff]  ;;  %v363_v24 = vld [vmem:[%s8661_s0 + $0x10] sm:$0xff] }
   0xe   : > { %v377_v1 = vld [vmem:[%s8661_s0 + $0x80] sm:$0xff]  ;;  %5087 = vmatprep.mubr.msk.f32.mxu0 %vm393_vm0, %v361_v0  ;;  %v378_v23 = vld [vmem:[%s8661_s0 + $0x88] sm:$0xff]  ;;  %v379_v25 = vld [vmem:[%s8661_s0 + $0x90] sm:$0xff]  ;;  %vm715_vm1 = vcmask 64512   ;;  %vm718_vm2 = vcmask 58368   ;;  %vm772_vm3 = vcmask 31744  }
   0xf   : > { %5111 = vmatprep.mubr.msk.f32.mxu1 %vm393_vm0, %v377_v1  ;;  %s8917_s10 = smov (!%p338_p3, %s4836_s10), 1  ;;  %v364_v28 = vld [vmem:[%s8661_s0 + $0x18] sm:$0xff]  ;;  %v365_v30 = vld [vmem:[%s8661_s0 + $0x20] sm:$0xff]  ;;  %v366_v34 = vld [vmem:[%s8661_s0 + $0x28] sm:$0xff]  ;;  %vm1132_vm4 = vcmask 1046528   ;;  %vm1342_vm5 = vcmask 1045504  }
  0x10   : > { %s4950_s15 = sshll.u32 %s8917_s10, 6  ;;  %s4951_s16 = sshll.u32 %s8917_s10, 8  ;;  %v380_v29 = vld [vmem:[%s8661_s0 + $0x98] sm:$0xff]  ;;  %v381_v31 = vld [vmem:[%s8661_s0 + $0xa0] sm:$0xff]  ;;  %v382_v35 = vld [vmem:[%s8661_s0 + $0xa8] sm:$0xff]  ;;  %vm1309_vm6 = vcmask 130112  }
  0x11   : > { %s342_s19 = scalar_lea.vmem %s8662_s1, %s4950_s15  ;;  %s5429_s22 = scalar_lea.vmem %s8663_s2, %s4951_s16  ;;  %v367_v36 = vld [vmem:[%s8661_s0 + $0x30] sm:$0xff]  ;;  %v368_v40 = vld [vmem:[%s8661_s0 + $0x38] sm:$0xff]  ;;  %v369_v42 = vld [vmem:[%s8661_s0 + $0x40] sm:$0xff]  ;;  %vm1519_vm7 = vcmask 195712   ;;  %vm965_vm8 = vcmask 64544   ;;  %vm1650_vm9 = vcmask 261312  }
  0x12   : > { %v353_v2 = vld [vmem:[%s342_s19] sm:$0xff]  ;;  %v354_v3 = vld [vmem:[%s342_s19 + $0x8] sm:$0xff]  ;;  %v355_v4 = vld [vmem:[%s342_s19 + $0x10] sm:$0xff]  ;;  %s5341_s18 = smov 16   ;;  %s5343_s20 = smov 32   ;;  %vm1785_vm10 = vcmask 326912  }
  0x13   : > { %v5259_v5 = vpack.c.bf16 %v354_v3, %v353_v2  ;;  %v356_v6 = vld [vmem:[%s342_s19 + $0x18] sm:$0xff]  ;;  %v357_v8 = vld [vmem:[%s342_s19 + $0x20] sm:$0xff]  ;;  %v358_v9 = vld [vmem:[%s342_s19 + $0x28] sm:$0xff]  ;;  %s5344_s21 = smov 40   ;;  %s5345_s24 = smov 48   ;;  %vm1919_vm11 = vcmask 392512  }
  0x14   : > { %v5263_v7 = vpack.c.bf16 %v356_v6, %v355_v4  ;;  %v807_v10 = vld [vmem:[%s5429_s22 + $0x10] sm:$0xff]  ;;  %v805_v11 = vld [vmem:[%s5429_s22] sm:$0xff]  ;;  %v5267_v12 = vpack.c.bf16 %v358_v9, %v357_v8  ;;  %v360_v14 = vld [vmem:[%s342_s19 + $0x38] sm:$0xff]  ;;  %s5346_s12 = smov 56   ;;  %s5347_s13 = smov 64   ;;  %vm2050_vm12 = vcmask 458112  }
  0x15   : > { %5260 = vmatprep.subr.bf16.mxu0 %v5259_v5  ;;  %5299 = vmatprep.subr.bf16.mxu1 %v5259_v5  ;;  %v359_v13 = vld [vmem:[%s342_s19 + $0x30] sm:$0xff]  ;;  %v808_v15 = vld [vmem:[%s5429_s22 + $0x18] sm:$0xff]  ;;  %v806_v16 = vld [vmem:[%s5429_s22 + $0x8] sm:$0xff]  ;;  %s5342_s19 = smov 24   ;;  %vm2185_vm13 = vcmask 523712   ;;  %vm2319_vm14 = vcmask 589312   ;;  %s8468_s27 = scalar_lea.vmem %s8670_s9, %s4951_s16 }
  0x16   : > { %5262 = vmatpush3.bf16.msra.mxu0 %v5259_v5  ;;  %5303 = vmatpush3.bf16.msra.mxu1 %v5259_v5  ;;  %v5271_v17 = vpack.c.bf16 %v360_v14, %v359_v13  ;;  %v810_v18 = vld [vmem:[%s5429_s22 + $0x28] sm:$0xff]  ;;  %v809_v19 = vld [vmem:[%s5429_s22 + $0x20] sm:$0xff]  ;;  %v812_v20 = vld [vmem:[%s5429_s22 + $0x38] sm:$0xff]  ;;  %vm2393_vm15 = vcmask 588800   ;;  %s5350_s28 = smov 28  }
  0x17   : > { %5264 = vmatprep.subr.bf16.mxu0 %v5263_v7  ;;  %5300 = vmatprep.subr.bf16.mxu1 %v5263_v7  ;;  %v811_v21 = vld [vmem:[%s5429_s22 + $0x30] sm:$0xff]  ;;  %v814_v26 = vld [vmem:[%s5429_s22 + $0x48] sm:$0xff]  ;;  %v813_v27 = vld [vmem:[%s5429_s22 + $0x40] sm:$0xff] }
  0x18   : > { %873 = vrot.lane.b32.xlu1 %v807_v10, %s5338_s23  ;;  %869 = vrot.lane.b32.xlu0 %v805_v11, %s5338_s23  ;;  %v816_v32 = vld [vmem:[%s5429_s22 + $0x58] sm:$0xff]  ;;  %v815_v33 = vld [vmem:[%s5429_s22 + $0x50] sm:$0xff] }
  0x19   : > { %v383_v37 = vld [vmem:[%s8661_s0 + $0xb0] sm:$0xff]  ;;  %v818_v38 = vld [vmem:[%s5429_s22 + $0x68] sm:$0xff]  ;;  %v817_v39 = vld [vmem:[%s5429_s22 + $0x60] sm:$0xff] }
  0x1a   : > { %5266 = vmatpush3.bf16.msra.mxu0 %v5263_v7  ;;  %5304 = vmatpush3.bf16.msra.mxu1 %v5263_v7  ;;  %v384_v41 = vld [vmem:[%s8661_s0 + $0xb8] sm:$0xff]  ;;  %v385_v43 = vld [vmem:[%s8661_s0 + $0xc0] sm:$0xff]  ;;  %v819_v45 = vld [vmem:[%s5429_s22 + $0x70] sm:$0xff] }
  0x1b   : > { %5268 = vmatprep.subr.bf16.mxu0 %v5267_v12  ;;  %5301 = vmatprep.subr.bf16.mxu1 %v5267_v12  ;;  %v820_v44 = vld [vmem:[%s5429_s22 + $0x78] sm:$0xff]  ;;  %v370_v46 = vld [vmem:[%s8661_s0 + $0x48] sm:$0xff]  ;;  %v371_v48 = vld [vmem:[%s8661_s0 + $0x50] sm:$0xff] }
  0x1c   : > { %875 = vrot.lane.b32.xlu1 %v808_v15, %s5338_s23  ;;  %871 = vrot.lane.b32.xlu0 %v806_v16, %s5338_s23  ;;  %v386_v47 = vld [vmem:[%s8661_s0 + $0xc8] sm:$0xff]  ;;  %v387_v49 = vld [vmem:[%s8661_s0 + $0xd0] sm:$0xff] }
  0x1d   : > { %v822_v50 = vld [vmem:[%s5429_s22 + $0x88] sm:$0xff]  ;;  %v821_v51 = vld [vmem:[%s5429_s22 + $0x80] sm:$0xff]  ;;  %v372_v52 = vld [vmem:[%s8661_s0 + $0x58] sm:$0xff] }
  0x1e   : > { %5270 = vmatpush3.bf16.msra.mxu0 %v5267_v12  ;;  %5305 = vmatpush3.bf16.msra.mxu1 %v5267_v12  ;;  %v388_v53 = vld [vmem:[%s8661_s0 + $0xd8] sm:$0xff]  ;;  %v373_v54 = vld [vmem:[%s8661_s0 + $0x60] sm:$0xff]  ;;  %v823_v57 = vld [vmem:[%s5429_s22 + $0x90] sm:$0xff]  ;;  %v8671_v12 = vmov 0.0  }
  0x1f   : > { %5272 = vmatprep.subr.bf16.mxu0 %v5271_v17  ;;  %5302 = vmatprep.subr.bf16.mxu1 %v5271_v17  ;;  %v389_v55 = vld [vmem:[%s8661_s0 + $0xe0] sm:$0xff]  ;;  %v824_v56 = vld [vmem:[%s5429_s22 + $0x98] sm:$0xff]  ;;  %v374_v58 = vld [vmem:[%s8661_s0 + $0x68] sm:$0xff]  ;;  %721 = vst.msk [vmem:[#allocation2 + $0x20] sm:$0xff] %vm715_vm1, %v8671_v12 }
  0x20   : > { %879 = vrot.lane.b32.xlu1 %v810_v18, %s5338_s23  ;;  %877 = vrot.lane.b32.xlu0 %v809_v19, %s5338_s23  ;;  %v390_v59 = vld [vmem:[%s8661_s0 + $0xe8] sm:$0xff]  ;;  %v375_v60 = vld [vmem:[%s8661_s0 + $0x70] sm:$0xff]  ;;  %722 = vst.msk [vmem:[#allocation2 + $0x28] sm:$0x3] %vm718_vm2, %v8671_v12  ;;  %719 = vst.msk [vmem:[#allocation2 + $0x10] sm:$0x3] %vm718_vm2, %v8671_v12 }
  0x21   : > { %v391_v61 = vld [vmem:[%s8661_s0 + $0xf0] sm:$0xff]  ;;  %v826_v62 = vld [vmem:[%s5429_s22 + $0xa8] sm:$0xff]  ;;  %v825_v63 = vld [vmem:[%s5429_s22 + $0xa0] sm:$0xff]  ;;  %716 = vst.msk [vmem:[#allocation2] sm:$0xff] %vm715_vm1, %v8671_v12 }
  0x22   : > { %5274 = vmatpush3.bf16.msra.mxu0 %v5271_v17  ;;  %5306 = vmatpush3.bf16.msra.mxu1 %v5271_v17  ;;  %v376_v0 = vld [vmem:[%s8661_s0 + $0x78] sm:$0xff]  ;;  %v827_v3 = vld [vmem:[%s5429_s22 + $0xb0] sm:$0xff]  ;;  %v830_v4 = vld [vmem:[%s5429_s22 + $0xc8] sm:$0xff]  ;;  %717 = vst.msk [vmem:[#allocation2 + $0x8] sm:$0xff] %vm715_vm1, %v8671_v12 }
  0x23   : > { %v392_v1 = vld [vmem:[%s8661_s0 + $0xf8] sm:$0xff]  ;;  %v829_v5 = vld [vmem:[%s5429_s22 + $0xc0] sm:$0xff]  ;;  %v831_v7 = vld [vmem:[%s5429_s22 + $0xd0] sm:$0xff]  ;;  %720 = vst.msk [vmem:[#allocation2 + $0x18] sm:$0xff] %vm715_vm1, %v8671_v12 }
  0x24   : > { %883 = vrot.lane.b32.xlu1 %v812_v20, %s5338_s23  ;;  %881 = vrot.lane.b32.xlu0 %v811_v21, %s5338_s23  ;;  %v828_v2 = vld [vmem:[%s5429_s22 + $0xb8] sm:$0xff]  ;;  %v834_v8 = vld [vmem:[%s5429_s22 + $0xe8] sm:$0xff]  ;;  %723 = vst.msk [vmem:[#allocation2 + $0x30] sm:$0xff] %vm715_vm1, %v8671_v12  ;;  %724 = vst.msk [vmem:[#allocation2 + $0x38] sm:$0xff] %vm715_vm1, %v8671_v12 }
  0x25   : > { %5088 = vmatmul.mubr.msk.f32.vlgmr.msra.gmra.mrb[0].mxu0 %vm393_vm0, %v362_v22  ;;  %5112 = vmatmul.mubr.msk.f32.vlgmr.msra.gmra.mrb[0].mxu1 %vm393_vm0, %v378_v23  ;;  %v832_v6 = vld [vmem:[%s5429_s22 + $0xd8] sm:$0xff]  ;;  %v833_v9 = vld [vmem:[%s5429_s22 + $0xe0] sm:$0xff]  ;;  %v835_v11 = vld [vmem:[%s5429_s22 + $0xf0] sm:$0xff]  ;;  %725 = vst.msk [vmem:[#allocation2 + $0x40] sm:$0x3] %vm718_vm2, %v8671_v12 }
  0x26   : > { %5090 = vmatprep.mubr.msk.f32.mxu0 %vm393_vm0, %v363_v24  ;;  %5114 = vmatprep.mubr.msk.f32.mxu1 %vm393_vm0, %v379_v25  ;;  %v836_v10 = vld [vmem:[%s5429_s22 + $0xf8] sm:$0xff]  ;;  %726 = vst.msk [vmem:[#allocation2 + $0x48] sm:$0xff] %vm715_vm1, %v8671_v12  ;;  %727 = vst.msk [vmem:[#allocation2 + $0x50] sm:$0xff] %vm715_vm1, %v8671_v12  ;;  %s5340_s22 = smov 8  }
  0x27   : > { %728 = vst.msk [vmem:[#allocation2 + $0x58] sm:$0x3] %vm718_vm2, %v8671_v12  ;;  %731 = vst.msk [vmem:[#allocation2 + $0x70] sm:$0x3] %vm718_vm2, %v8671_v12  ;;  %v1000_v14 = vld [vmem:[#allocation2 + $0x10] sm:$0x3] }
  0x28   : > { %887 = vrot.lane.b32.xlu1 %v814_v26, %s5338_s23  ;;  %885 = vrot.lane.b32.xlu0 %v813_v27, %s5338_s23  ;;  %729 = vst.msk [vmem:[#allocation2 + $0x60] sm:$0xff] %vm715_vm1, %v8671_v12  ;;  %730 = vst.msk [vmem:[#allocation2 + $0x68] sm:$0xff] %vm715_vm1, %v8671_v12  ;;  %v998_v15 = vld [vmem:[#allocation2] sm:$0xff]  ;;  %v1136_v17 = vrot.slane %v1000_v14, 1  ;;  %v1346_v22 = vrot.slane %v1000_v14, 2 }
  0x29   : > { %5091 = vmatmul.mubr.msk.f32.gmra.mrb[2].mxu0 %vm393_vm0, %v364_v28  ;;  %5115 = vmatmul.mubr.msk.f32.gmra.mrb[2].mxu1 %vm393_vm0, %v380_v29  ;;  %732 = vst.msk [vmem:[#allocation2 + $0x78] sm:$0xff] %vm715_vm1, %v8671_v12  ;;  %733 = vst.msk [vmem:[#allocation2 + $0x80] sm:$0xff] %vm715_vm1, %v8671_v12  ;;  %v999_v13 = vld [vmem:[#allocation2 + $0x8] sm:$0xff]  ;;  %v1133_v18 = vrot.slane %v998_v15, 1  ;;  %v1343_v23 = vrot.slane %v998_v15, 2 }
  0x2a   : > { %5093 = vmatprep.mubr.msk.f32.mxu0 %vm393_vm0, %v365_v30  ;;  %5117 = vmatprep.mubr.msk.f32.mxu1 %vm393_vm0, %v381_v31  ;;  %734 = vst.msk [vmem:[#allocation2 + $0x88] sm:$0x3] %vm718_vm2, %v8671_v12  ;;  %737 = vst.msk [vmem:[#allocation2 + $0xa0] sm:$0x3] %vm718_vm2, %v8671_v12  ;;  %v1134_v16 = vrot.slane %v999_v13, 1  ;;  %v1344_v21 = vrot.slane %v999_v13, 2 }
  0x2b   : > { %735 = vst.msk [vmem:[#allocation2 + $0x90] sm:$0xff] %vm715_vm1, %v8671_v12  ;;  %736 = vst.msk [vmem:[#allocation2 + $0x98] sm:$0xff] %vm715_vm1, %v8671_v12 }
  0x2c   : > { %891 = vrot.lane.b32.xlu1 %v816_v32, %s5338_s23  ;;  %889 = vrot.lane.b32.xlu0 %v815_v33, %s5338_s23  ;;  %738 = vst.msk [vmem:[#allocation2 + $0xa8] sm:$0xff] %vm715_vm1, %v8671_v12  ;;  %739 = vst.msk [vmem:[#allocation2 + $0xb0] sm:$0xff] %vm715_vm1, %v8671_v12  ;;  %v1137_v19 = vsel %vm1132_vm4, %v1134_v16, %v1136_v17  ;;  %v1135_v20 = vsel %vm1132_vm4, %v1133_v18, %v1134_v16 }
  0x2d   : > { %5094 = vmatmul.mubr.msk.f32.gmra.mrb[4].mxu0 %vm393_vm0, %v366_v34  ;;  %5118 = vmatmul.mubr.msk.f32.gmra.mrb[4].mxu1 %vm393_vm0, %v382_v35  ;;  %740 = vst.msk [vmem:[#allocation2 + $0xb8] sm:$0x3] %vm718_vm2, %v8671_v12  ;;  %743 = vst.msk [vmem:[#allocation2 + $0xd0] sm:$0x3] %vm718_vm2, %v8671_v12  ;;  %v1347_v24 = vsel %vm1342_vm5, %v1344_v21, %v1346_v22  ;;  %v1345_v25 = vsel %vm1342_vm5, %v1343_v23, %v1344_v21 }
  0x2e   : > { %5096 = vmatprep.mubr.msk.f32.mxu0 %vm393_vm0, %v367_v36  ;;  %5120 = vmatprep.mubr.msk.f32.mxu1 %vm393_vm0, %v383_v37  ;;  %741 = vst.msk [vmem:[#allocation2 + $0xc0] sm:$0xff] %vm715_vm1, %v8671_v12  ;;  %742 = vst.msk [vmem:[#allocation2 + $0xc8] sm:$0xff] %vm715_vm1, %v8671_v12 }
  0x2f   : > { %744 = vst.msk [vmem:[#allocation2 + $0xd8] sm:$0xff] %vm715_vm1, %v8671_v12  ;;  %745 = vst.msk [vmem:[#allocation2 + $0xe0] sm:$0xff] %vm715_vm1, %v8671_v12 }
  0x30   : > { %895 = vrot.lane.b32.xlu1 %v818_v38, %s5338_s23  ;;  %893 = vrot.lane.b32.xlu0 %v817_v39, %s5338_s23  ;;  %746 = vst.msk [vmem:[#allocation2 + $0xe8] sm:$0x3] %vm718_vm2, %v8671_v12  ;;  %749 = vst.msk [vmem:[#allocation2 + $0x100] sm:$0x3] %vm718_vm2, %v8671_v12 }
  0x31   : > { %5097 = vmatmul.mubr.msk.f32.gmra.mrb[6].mxu0 %vm393_vm0, %v368_v40  ;;  %5121 = vmatmul.mubr.msk.f32.gmra.mrb[6].mxu1 %vm393_vm0, %v384_v41  ;;  %747 = vst.msk [vmem:[#allocation2 + $0xf0] sm:$0xff] %vm715_vm1, %v8671_v12  ;;  %748 = vst.msk [vmem:[#allocation2 + $0xf8] sm:$0xff] %vm715_vm1, %v8671_v12 }
  0x32   : > { %5099 = vmatprep.mubr.msk.f32.mxu0 %vm393_vm0, %v369_v42  ;;  %5123 = vmatprep.mubr.msk.f32.mxu1 %vm393_vm0, %v385_v43  ;;  %750 = vst.msk [vmem:[#allocation2 + $0x108] sm:$0xff] %vm715_vm1, %v8671_v12  ;;  %751 = vst.msk [vmem:[#allocation2 + $0x110] sm:$0xff] %vm715_vm1, %v8671_v12 }
  0x33   : > { %752 = vst.msk [vmem:[#allocation2 + $0x118] sm:$0x3] %vm718_vm2, %v8671_v12  ;;  %755 = vst.msk [vmem:[#allocation2 + $0x130] sm:$0x3] %vm718_vm2, %v8671_v12 }
  0x34   : > { %899 = vrot.lane.b32.xlu1 %v820_v44, %s5338_s23  ;;  %897 = vrot.lane.b32.xlu0 %v819_v45, %s5338_s23  ;;  %753 = vst.msk [vmem:[#allocation2 + $0x120] sm:$0xff] %vm715_vm1, %v8671_v12  ;;  %754 = vst.msk [vmem:[#allocation2 + $0x128] sm:$0xff] %vm715_vm1, %v8671_v12 }
  0x35   : > { %5100 = vmatmul.mubr.msk.f32.gmra.mrb[8].mxu0 %vm393_vm0, %v370_v46  ;;  %5124 = vmatmul.mubr.msk.f32.gmra.mrb[8].mxu1 %vm393_vm0, %v386_v47  ;;  %756 = vst.msk [vmem:[#allocation2 + $0x138] sm:$0xff] %vm715_vm1, %v8671_v12  ;;  %757 = vst.msk [vmem:[#allocation2 + $0x140] sm:$0xff] %vm715_vm1, %v8671_v12 }
  0x36   : > { %5102 = vmatprep.mubr.msk.f32.mxu0 %vm393_vm0, %v371_v48  ;;  %5126 = vmatprep.mubr.msk.f32.mxu1 %vm393_vm0, %v387_v49  ;;  %758 = vst.msk [vmem:[#allocation2 + $0x148] sm:$0x3] %vm718_vm2, %v8671_v12  ;;  %761 = vst.msk [vmem:[#allocation2 + $0x160] sm:$0x3] %vm718_vm2, %v8671_v12 }
  0x37   : > { %759 = vst.msk [vmem:[#allocation2 + $0x150] sm:$0xff] %vm715_vm1, %v8671_v12  ;;  %760 = vst.msk [vmem:[#allocation2 + $0x158] sm:$0xff] %vm715_vm1, %v8671_v12 }
  0x38   : > { %903 = vrot.lane.b32.xlu1 %v822_v50, %s5338_s23  ;;  %901 = vrot.lane.b32.xlu0 %v821_v51, %s5338_s23  ;;  %762 = vst.msk [vmem:[#allocation2 + $0x168] sm:$0xff] %vm715_vm1, %v8671_v12  ;;  %763 = vst.msk [vmem:[#allocation2 + $0x170] sm:$0xff] %vm715_vm1, %v8671_v12 }
  0x39   : > { %5103 = vmatmul.mubr.msk.f32.gmra.mrb[10].mxu0 %vm393_vm0, %v372_v52  ;;  %5127 = vmatmul.mubr.msk.f32.gmra.mrb[10].mxu1 %vm393_vm0, %v388_v53  ;;  %764 = vst.msk [vmem:[#allocation2 + $0x178] sm:$0x3] %vm718_vm2, %v8671_v12  ;;  %767 = vst.msk [vmem:[#allocation2 + $0x190] sm:$0x3] %vm718_vm2, %v8671_v12 }
  0x3a   : > { %5105 = vmatprep.mubr.msk.f32.mxu0 %vm393_vm0, %v373_v54  ;;  %5129 = vmatprep.mubr.msk.f32.mxu1 %vm393_vm0, %v389_v55  ;;  %765 = vst.msk [vmem:[#allocation2 + $0x180] sm:$0xff] %vm715_vm1, %v8671_v12  ;;  %766 = vst.msk [vmem:[#allocation2 + $0x188] sm:$0xff] %vm715_vm1, %v8671_v12 }
  0x3b   : > { %768 = vst.msk [vmem:[#allocation2 + $0x198] sm:$0xff] %vm715_vm1, %v8671_v12  ;;  %769 = vst.msk [vmem:[#allocation2 + $0x1a0] sm:$0xff] %vm715_vm1, %v8671_v12 }
  0x3c   : > { %907 = vrot.lane.b32.xlu1 %v824_v56, %s5338_s23  ;;  %905 = vrot.lane.b32.xlu0 %v823_v57, %s5338_s23  ;;  %770 = vst.msk [vmem:[#allocation2 + $0x1a8] sm:$0x3] %vm718_vm2, %v8671_v12  ;;  %vm4398_vm2 = vcmask 1043456  }
  0x3d   : > { %5106 = vmatmul.mubr.msk.f32.gmra.mrb[12].mxu0 %vm393_vm0, %v374_v58  ;;  %5130 = vmatmul.mubr.msk.f32.gmra.mrb[12].mxu1 %vm393_vm0, %v390_v59  ;;  %1053 = vst.msk [vmem:[#allocation3 + $0x8] sm:$0xff] %vm715_vm1, %v999_v13  ;;  %1052 = vst.msk [vmem:[#allocation3] sm:$0xff] %vm715_vm1, %v998_v15 }
  0x3e   : > { %5108 = vmatprep.mubr.msk.f32.mxu0 %vm393_vm0, %v375_v60  ;;  %5132 = vmatprep.mubr.msk.f32.mxu1 %vm393_vm0, %v391_v61  ;;  %2825 = vst.msk [vmem:[#allocation4] sm:$0xff] %vm772_vm3, %v8671_v12  ;;  %2826 = vst.msk [vmem:[#allocation4 + $0x8] sm:$0xff] %vm772_vm3, %v8671_v12 }
  0x3f   : > { %2829 = vst.msk [vmem:[#allocation4 + $0x18] sm:$0xff] %vm772_vm3, %v8671_v12  ;;  %2830 = vst.msk [vmem:[#allocation4 + $0x20] sm:$0xff] %vm772_vm3, %v8671_v12 }
  0x40   : > { %911 = vrot.lane.b32.xlu1 %v826_v62, %s5338_s23  ;;  %909 = vrot.lane.b32.xlu0 %v825_v63, %s5338_s23  ;;  %2832 = vst.msk [vmem:[#allocation4 + $0x30] sm:$0xff] %vm772_vm3, %v8671_v12  ;;  %2833 = vst.msk [vmem:[#allocation4 + $0x38] sm:$0xff] %vm772_vm3, %v8671_v12 }
  0x41   : > { %5109 = vmatmul.mubr.msk.f32.gmra.mrb[14].mxu0 %vm393_vm0, %v376_v0  ;;  %5133 = vmatmul.mubr.msk.f32.gmra.mrb[14].mxu1 %vm393_vm0, %v392_v1  ;;  %2835 = vst.msk [vmem:[#allocation4 + $0x48] sm:$0xff] %vm772_vm3, %v8671_v12  ;;  %2836 = vst.msk [vmem:[#allocation4 + $0x50] sm:$0xff] %vm772_vm3, %v8671_v12  ;;  %vm2827_vm0 = vcmask 25600  }
  0x42   : > { %2838 = vst.msk [vmem:[#allocation4 + $0x60] sm:$0xff] %vm772_vm3, %v8671_v12  ;;  %2839 = vst.msk [vmem:[#allocation4 + $0x68] sm:$0xff] %vm772_vm3, %v8671_v12 }
  0x43   : > { %2841 = vst.msk [vmem:[#allocation4 + $0x78] sm:$0xff] %vm772_vm3, %v8671_v12  ;;  %2842 = vst.msk [vmem:[#allocation4 + $0x80] sm:$0xff] %vm772_vm3, %v8671_v12 }
  0x44   : > { %915 = vrot.lane.b32.xlu1 %v828_v2, %s5338_s23  ;;  %913 = vrot.lane.b32.xlu0 %v827_v3, %s5338_s23  ;;  %2844 = vst.msk [vmem:[#allocation4 + $0x90] sm:$0xff] %vm772_vm3, %v8671_v12  ;;  %2845 = vst.msk [vmem:[#allocation4 + $0x98] sm:$0xff] %vm772_vm3, %v8671_v12 }
  0x45   : > { %2847 = vst.msk [vmem:[#allocation4 + $0xa8] sm:$0xff] %vm772_vm3, %v8671_v12  ;;  %2848 = vst.msk [vmem:[#allocation4 + $0xb0] sm:$0xff] %vm772_vm3, %v8671_v12 }
  0x46   : > { %2850 = vst.msk [vmem:[#allocation4 + $0xc0] sm:$0xff] %vm772_vm3, %v8671_v12  ;;  %2851 = vst.msk [vmem:[#allocation4 + $0xc8] sm:$0xff] %vm772_vm3, %v8671_v12 }
  0x47   : > { %2853 = vst.msk [vmem:[#allocation4 + $0xd8] sm:$0xff] %vm772_vm3, %v8671_v12  ;;  %2854 = vst.msk [vmem:[#allocation4 + $0xe0] sm:$0xff] %vm772_vm3, %v8671_v12 }
  0x48   : > { %919 = vrot.lane.b32.xlu1 %v830_v4, %s5338_s23  ;;  %917 = vrot.lane.b32.xlu0 %v829_v5, %s5338_s23  ;;  %2856 = vst.msk [vmem:[#allocation4 + $0xf0] sm:$0xff] %vm772_vm3, %v8671_v12  ;;  %2857 = vst.msk [vmem:[#allocation4 + $0xf8] sm:$0xff] %vm772_vm3, %v8671_v12 }
  0x49   : > { %2859 = vst.msk [vmem:[#allocation4 + $0x108] sm:$0xff] %vm772_vm3, %v8671_v12  ;;  %2860 = vst.msk [vmem:[#allocation4 + $0x110] sm:$0xff] %vm772_vm3, %v8671_v12 }
  0x4a   : > { %2862 = vst.msk [vmem:[#allocation4 + $0x120] sm:$0xff] %vm772_vm3, %v8671_v12  ;;  %2863 = vst.msk [vmem:[#allocation4 + $0x128] sm:$0xff] %vm772_vm3, %v8671_v12 }
  0x4b   : > { %2865 = vst.msk [vmem:[#allocation4 + $0x138] sm:$0xff] %vm772_vm3, %v8671_v12  ;;  %2866 = vst.msk [vmem:[#allocation4 + $0x140] sm:$0xff] %vm772_vm3, %v8671_v12 }
  0x4c   : > { %923 = vrot.lane.b32.xlu1 %v832_v6, %s5338_s23  ;;  %921 = vrot.lane.b32.xlu0 %v831_v7, %s5338_s23  ;;  %2868 = vst.msk [vmem:[#allocation4 + $0x150] sm:$0xff] %vm772_vm3, %v8671_v12  ;;  %2869 = vst.msk [vmem:[#allocation4 + $0x158] sm:$0xff] %vm772_vm3, %v8671_v12 }
  0x4d   : > { %2871 = vst.msk [vmem:[#allocation4 + $0x168] sm:$0xff] %vm772_vm3, %v8671_v12  ;;  %2872 = vst.msk [vmem:[#allocation4 + $0x170] sm:$0xff] %vm772_vm3, %v8671_v12 }
  0x4e   : > { %2874 = vst.msk [vmem:[#allocation4 + $0x180] sm:$0xff] %vm772_vm3, %v8671_v12  ;;  %2875 = vst.msk [vmem:[#allocation4 + $0x188] sm:$0xff] %vm772_vm3, %v8671_v12 }
  0x4f   : > { %2877 = vst.msk [vmem:[#allocation4 + $0x198] sm:$0xff] %vm772_vm3, %v8671_v12  ;;  %2878 = vst.msk [vmem:[#allocation4 + $0x1a0] sm:$0xff] %vm772_vm3, %v8671_v12 }
  0x50   : > { %927 = vrot.lane.b32.xlu1 %v834_v8, %s5338_s23  ;;  %925 = vrot.lane.b32.xlu0 %v833_v9, %s5338_s23 }
  0x54   : > { %931 = vrot.lane.b32.xlu1 %v836_v10, %s5338_s23  ;;  %929 = vrot.lane.b32.xlu0 %v835_v11, %s5338_s23 }
  0x58   : > { %1215 = vrot.lane.b32.xlu1 %v1137_v19, %s5340_s22  ;;  %1213 = vrot.lane.b32.xlu0 %v1135_v20, %s5340_s22 }
  0x5c   : > { %1425 = vrot.lane.b32.xlu1 %v1347_v24, %s5341_s18  ;;  %1423 = vrot.lane.b32.xlu0 %v1345_v25, %s5341_s18 }
  0x8a   : > { %v5805_v26 = vpop.permute.xlu1 %873  ;;  %v870_v27 = vpop.permute.xlu0 %869 }
  0x8e   : > { %v876_v28 = vpop.permute.xlu1 %875  ;;  %v872_v29 = vpop.permute.xlu0 %871 }
  0x92   : > { %v5807_v30 = vpop.permute.xlu1 %879  ;;  %v5809_v31 = vpop.permute.xlu0 %877 }
  0x96   : > { %v5811_v32 = vpop.permute.xlu1 %883  ;;  %v5813_v33 = vpop.permute.xlu0 %881 }
  0x9a   : > { %v5815_v34 = vpop.permute.xlu1 %887  ;;  %v5817_v35 = vpop.permute.xlu0 %885 }
  0x9e   : > { %v5819_v36 = vpop.permute.xlu1 %891  ;;  %v5821_v37 = vpop.permute.xlu0 %889 }
  0xa2   : > { %v5823_v38 = vpop.permute.xlu1 %895  ;;  %v5825_v39 = vpop.permute.xlu0 %893 }
  0xa6   : > { %v5827_v40 = vpop.permute.xlu1 %899  ;;  %v5829_v41 = vpop.permute.xlu0 %897 }
  0xaa   : > { %v904_v42 = vpop.permute.xlu1 %903  ;;  %v902_v43 = vpop.permute.xlu0 %901 }
  0xae   : > { %v908_v44 = vpop.permute.xlu1 %907  ;;  %v906_v45 = vpop.permute.xlu0 %905 }
  0xb2   : > { %v912_v46 = vpop.permute.xlu1 %911  ;;  %v5831_v47 = vpop.permute.xlu0 %909 }
  0xb6   : > { %v5833_v48 = vpop.permute.xlu1 %915  ;;  %v5835_v49 = vpop.permute.xlu0 %913 }
  0xba   : > { %v5837_v50 = vpop.permute.xlu1 %919  ;;  %v5839_v51 = vpop.permute.xlu0 %917 }
  0xbe   : > { %v5841_v52 = vpop.permute.xlu1 %923  ;;  %v5843_v53 = vpop.permute.xlu0 %921 }
  0xc2   : > { %v5845_v54 = vpop.permute.xlu1 %927  ;;  %v5847_v55 = vpop.permute.xlu0 %925 }
  0xc6   : > { %v5849_v56 = vpop.permute.xlu1 %931  ;;  %v5851_v57 = vpop.permute.xlu0 %929 }
  0xca   : > { %v1216_v58 = vpop.permute.xlu1 %1215  ;;  %v1214_v59 = vpop.permute.xlu0 %1213 }
  0xcb   : > { %1311 = vst.msk [vmem:[#allocation3 + $0x8] sm:$0xff] %vm1309_vm6, %v1216_v58  ;;  %1310 = vst.msk [vmem:[#allocation3] sm:$0xff] %vm1309_vm6, %v1214_v59 }
  0xce   : > { %v1426_v60 = vpop.permute.xlu1 %1425  ;;  %v1424_v61 = vpop.permute.xlu0 %1423 }
  0xcf   : > { %1521 = vst.msk [vmem:[#allocation3 + $0x8] sm:$0xff] %vm1519_vm7, %v1426_v60  ;;  %1520 = vst.msk [vmem:[#allocation3] sm:$0xff] %vm1519_vm7, %v1424_v61 }
  0xf8   : > { %v5089_v62 = vpop.f32.mrb[0].mxu0  ;;  %v5113_v63 = vpop.f32.mrb[0].mxu1 }
  0xf9   : > { %774 = vst.msk [vmem:[#allocation2 + $0x21] sm:$0xff] %vm772_vm3, %v5089_v62  ;;  %v556_v0 = vpop.f32.mrb[1].mxu0  ;;  %790 = vst.msk [vmem:[#allocation2 + $0xe1] sm:$0xff] %vm772_vm3, %v5113_v63  ;;  %v636_v1 = vpop.f32.mrb[1].mxu1 }
  0xfa   : > { %967 = vst.msk [vmem:[#allocation2 + $0x21] sm:$0xff] %vm965_vm8, %v872_v29  ;;  %983 = vst.msk [vmem:[#allocation2 + $0xe1] sm:$0xff] %vm965_vm8, %v904_v42 }
  0xfb   : > { %773 = vst.msk [vmem:[#allocation2 + $0x19] sm:$0xff] %vm772_vm3, %v556_v0  ;;  %789 = vst.msk [vmem:[#allocation2 + $0xd9] sm:$0xff] %vm772_vm3, %v636_v1 }
  0xfc   : > { %966 = vst.msk [vmem:[#allocation2 + $0x19] sm:$0xff] %vm965_vm8, %v870_v27  ;;  %982 = vst.msk [vmem:[#allocation2 + $0xd9] sm:$0xff] %vm965_vm8, %v902_v43  ;;  %v5092_v2 = vpop.f32.mrb[2].mxu0  ;;  %v5116_v3 = vpop.f32.mrb[2].mxu1 }
  0xfd   : > { %776 = vst.msk [vmem:[#allocation2 + $0x39] sm:$0xff] %vm772_vm3, %v5092_v2  ;;  %v566_v4 = vpop.f32.mrb[3].mxu0  ;;  %792 = vst.msk [vmem:[#allocation2 + $0xf9] sm:$0xff] %vm772_vm3, %v5116_v3  ;;  %v646_v5 = vpop.f32.mrb[3].mxu1 }
  0xfe   : > { %969 = vst.msk [vmem:[#allocation2 + $0x39] sm:$0xff] %vm965_vm8, %v876_v28  ;;  %985 = vst.msk [vmem:[#allocation2 + $0xf9] sm:$0xff] %vm965_vm8, %v908_v44 }
  0xff   : > { %775 = vst.msk [vmem:[#allocation2 + $0x31] sm:$0xff] %vm772_vm3, %v566_v4  ;;  %791 = vst.msk [vmem:[#allocation2 + $0xf1] sm:$0xff] %vm772_vm3, %v646_v5 }
 0x100   : > { %968 = vst.msk [vmem:[#allocation2 + $0x31] sm:$0xff] %vm965_vm8, %v5805_v26  ;;  %984 = vst.msk [vmem:[#allocation2 + $0xf1] sm:$0xff] %vm965_vm8, %v906_v45  ;;  %v5095_v6 = vpop.f32.mrb[4].mxu0  ;;  %v5119_v7 = vpop.f32.mrb[4].mxu1 }
 0x101   : > { %778 = vst.msk [vmem:[#allocation2 + $0x51] sm:$0xff] %vm772_vm3, %v5095_v6  ;;  %v576_v8 = vpop.f32.mrb[5].mxu0  ;;  %794 = vst.msk [vmem:[#allocation2 + $0x111] sm:$0xff] %vm772_vm3, %v5119_v7  ;;  %v656_v9 = vpop.f32.mrb[5].mxu1  ;;  %v5901_v15 = vld [vmem:[#allocation2 + $0x28] sm:$0x3] }
 0x102   : > { %971 = vst.msk [vmem:[#allocation2 + $0x51] sm:$0xff] %vm965_vm8, %v5807_v30  ;;  %987 = vst.msk [vmem:[#allocation2 + $0x111] sm:$0xff] %vm965_vm8, %v912_v46  ;;  %v5908_v19 = vld [vmem:[#allocation2 + $0xe8] sm:$0x3]  ;;  %v1141_v22 = vrot.slane %v5901_v15, 1 }
 0x103   : > { %777 = vst.msk [vmem:[#allocation2 + $0x49] sm:$0xff] %vm772_vm3, %v576_v8  ;;  %v5879_v10 = vld [vmem:[#allocation2 + $0x20] sm:$0xff]  ;;  %v5881_v11 = vld [vmem:[#allocation2 + $0x18] sm:$0xff]  ;;  %793 = vst.msk [vmem:[#allocation2 + $0x109] sm:$0xff] %vm772_vm3, %v656_v9 }
 0x104   : > { %v5883_v13 = vld [vmem:[#allocation2 + $0xe0] sm:$0xff]  ;;  %970 = vst.msk [vmem:[#allocation2 + $0x49] sm:$0xff] %vm965_vm8, %v5809_v31  ;;  %1556 = vrot.lane.b32.xlu1 %v5879_v10, %s5342_s19  ;;  %1554 = vrot.lane.b32.xlu0 %v5881_v11, %s5342_s19  ;;  %v5899_v14 = vld [vmem:[#allocation2 + $0xd8] sm:$0xff]  ;;  %986 = vst.msk [vmem:[#allocation2 + $0x109] sm:$0xff] %vm965_vm8, %v5831_v47  ;;  %v5098_v16 = vpop.f32.mrb[6].mxu0  ;;  %v5122_v17 = vpop.f32.mrb[6].mxu1 }
 0x105   : > { %8775 = vst [vmem:[#allocation6_spill] sm:$0xff] %v5883_v13  ;;  %1055 = vst.msk [vmem:[#allocation3 + $0x18] sm:$0xff] %vm715_vm1, %v5879_v10  ;;  %v586_v18 = vpop.f32.mrb[7].mxu0  ;;  %v666_v20 = vpop.f32.mrb[7].mxu1  ;;  %v1139_v21 = vrot.slane %v5879_v10, 1  ;;  %v1138_v23 = vrot.slane %v5881_v11, 1 }
 0x106   : > { %1054 = vst.msk [vmem:[#allocation3 + $0x10] sm:$0xff] %vm715_vm1, %v5881_v11  ;;  %1071 = vst.msk [vmem:[#allocation3 + $0x98] sm:$0xff] %vm715_vm1, %v5883_v13  ;;  %v1181_v31 = vrot.slane %v5908_v19, 1  ;;  %v1179_v43 = vrot.slane %v5883_v13, 1  ;;  %v1178_v44 = vrot.slane %v5899_v14, 1  ;;  %v1349_v59 = vrot.slane %v5879_v10, 2 }
 0x107   : > { %8776 = vst [vmem:[#allocation7_spill] sm:$0xff] %v5899_v14  ;;  %1070 = vst.msk [vmem:[#allocation3 + $0x90] sm:$0xff] %vm715_vm1, %v5899_v14  ;;  %v5917_v24 = vld [vmem:[#allocation2 + $0x38] sm:$0xff]  ;;  %v5919_v25 = vld [vmem:[#allocation2 + $0x30] sm:$0xff]  ;;  %v5954_v42 = vsel %vm1132_vm4, %v1138_v23, %v1139_v21  ;;  %v1348_v60 = vrot.slane %v5881_v11, 2  ;;  %v1389_v2 = vrot.slane %v5883_v13, 2 }
 0x108   : > { %780 = vst.msk [vmem:[#allocation2 + $0x69] sm:$0xff] %vm772_vm3, %v5098_v16  ;;  %796 = vst.msk [vmem:[#allocation2 + $0x129] sm:$0xff] %vm772_vm3, %v5122_v17  ;;  %v5921_v26 = vld [vmem:[#allocation2 + $0xf8] sm:$0xff]  ;;  %1588 = vrot.lane.b32.xlu1 %v5883_v13, %s5342_s19  ;;  %1586 = vrot.lane.b32.xlu0 %v5899_v14, %s5342_s19  ;;  %v5938_v27 = vld [vmem:[#allocation2 + $0xf0] sm:$0xff]  ;;  %v5101_v28 = vpop.f32.mrb[8].mxu0  ;;  %v5125_v29 = vpop.f32.mrb[8].mxu1  ;;  %v5992_v58 = vsel %vm1132_vm4, %v1179_v43, %v1181_v31 }
 0x109   : > { %973 = vst.msk [vmem:[#allocation2 + $0x69] sm:$0xff] %vm965_vm8, %v5811_v32  ;;  %8777 = vst [vmem:[#allocation8_spill] sm:$0xff] %v5921_v26  ;;  %v596_v30 = vpop.f32.mrb[9].mxu0  ;;  %v676_v32 = vpop.f32.mrb[9].mxu1  ;;  %v6036_v5 = vsel %vm1342_vm5, %v1348_v60, %v1349_v59  ;;  %v1388_v6 = vrot.slane %v5899_v14, 2  ;;  %v1144_v23 = vrot.slane %v5917_v24, 1 }
 0x10a   : > { %779 = vst.msk [vmem:[#allocation2 + $0x61] sm:$0xff] %vm772_vm3, %v586_v18  ;;  %795 = vst.msk [vmem:[#allocation2 + $0x121] sm:$0xff] %vm772_vm3, %v666_v20  ;;  %v1184_v31 = vrot.slane %v5921_v26, 1 }
 0x10b   : > { %989 = vst.msk [vmem:[#allocation2 + $0x129] sm:$0xff] %vm965_vm8, %v5833_v48  ;;  %972 = vst.msk [vmem:[#allocation2 + $0x61] sm:$0xff] %vm965_vm8, %v5813_v33  ;;  %v5951_v33 = vsel %vm1132_vm4, %v1139_v21, %v1141_v22  ;;  %v5958_v45 = vld [vmem:[#allocation2 + $0x50] sm:$0xff]  ;;  %v5960_v46 = vld [vmem:[#allocation2 + $0x48] sm:$0xff] }
 0x10c   : > { %1057 = vst.msk [vmem:[#allocation3 + $0x28] sm:$0xff] %vm715_vm1, %v5917_v24  ;;  %1056 = vst.msk [vmem:[#allocation3 + $0x20] sm:$0xff] %vm715_vm1, %v5919_v25  ;;  %v5962_v47 = vld [vmem:[#allocation2 + $0x110] sm:$0xff]  ;;  %1219 = vrot.lane.b32.xlu1 %v5951_v33, %s5340_s22  ;;  %1217 = vrot.lane.b32.xlu0 %v5954_v42, %s5340_s22  ;;  %v5128_v48 = vpop.f32.mrb[10].mxu1  ;;  %v1006_v22 = vld [vmem:[#allocation2 + $0x40] sm:$0x3] }
 0x10d   : > { %1073 = vst.msk [vmem:[#allocation3 + $0xa8] sm:$0xff] %vm715_vm1, %v5921_v26  ;;  %8778 = vst [vmem:[#allocation9_spill] sm:$0xff] %v5938_v27  ;;  %v686_v0 = vpop.f32.mrb[11].mxu1 }
 0x10e   : > { %988 = vst.msk [vmem:[#allocation2 + $0x121] sm:$0xff] %vm965_vm8, %v5835_v49  ;;  %8779 = vst [vmem:[#allocation10_spill] sm:$0xff] %v5962_v47 }
 0x10f   : > { %1072 = vst.msk [vmem:[#allocation3 + $0xa0] sm:$0xff] %vm715_vm1, %v5938_v27  ;;  %1059 = vst.msk [vmem:[#allocation3 + $0x38] sm:$0xff] %vm715_vm1, %v5958_v45 }
 0x110   : > { %782 = vst.msk [vmem:[#allocation2 + $0x81] sm:$0xff] %vm772_vm3, %v5101_v28  ;;  %798 = vst.msk [vmem:[#allocation2 + $0x141] sm:$0xff] %vm772_vm3, %v5125_v29  ;;  %1251 = vrot.lane.b32.xlu1 %v5992_v58, %s5340_s22  ;;  %v1146_v28 = vrot.slane %v1006_v22, 1  ;;  %v1143_v29 = vrot.slane %v5919_v25, 1 }
 0x111   : > { %975 = vst.msk [vmem:[#allocation2 + $0x81] sm:$0xff] %vm965_vm8, %v5815_v34  ;;  %991 = vst.msk [vmem:[#allocation2 + $0x141] sm:$0xff] %vm965_vm8, %v5837_v50  ;;  %v5979_v34 = vld [vmem:[#allocation2 + $0x108] sm:$0xff]  ;;  %v1351_v50 = vrot.slane %v5901_v15, 2  ;;  %v6076_v15 = vsel %vm1342_vm5, %v1388_v6, %v1389_v2 }
 0x112   : > { %781 = vst.msk [vmem:[#allocation2 + $0x79] sm:$0xff] %vm772_vm3, %v596_v30  ;;  %797 = vst.msk [vmem:[#allocation2 + $0x139] sm:$0xff] %vm772_vm3, %v676_v32  ;;  %v5999_v61 = vld [vmem:[#allocation2 + $0x68] sm:$0xff]  ;;  %v6001_v62 = vld [vmem:[#allocation2 + $0x60] sm:$0xff]  ;;  %v6145_v32 = vsel %vm1132_vm4, %v1144_v23, %v1146_v28  ;;  %v1188_v28 = vrot.slane %v5979_v34, 1 }
 0x113   : > { %974 = vst.msk [vmem:[#allocation2 + $0x79] sm:$0xff] %vm965_vm8, %v5817_v35  ;;  %8780 = vst [vmem:[#allocation11_spill] sm:$0xff] %v5979_v34  ;;  %v5104_v35 = vpop.f32.mrb[10].mxu0  ;;  %v6033_v4 = vsel %vm1342_vm5, %v1349_v59, %v1351_v50  ;;  %v1030_v30 = vld [vmem:[#allocation2 + $0x100] sm:$0x3]  ;;  %v1353_v50 = vrot.slane %v5919_v25, 2 }
 0x114   : > { %1058 = vst.msk [vmem:[#allocation3 + $0x30] sm:$0xff] %vm715_vm1, %v5960_v46  ;;  %1075 = vst.msk [vmem:[#allocation3 + $0xb8] sm:$0xff] %vm715_vm1, %v5962_v47  ;;  %v606_v49 = vpop.f32.mrb[11].mxu0  ;;  %1429 = vrot.lane.b32.xlu1 %v6033_v4, %s5341_s18  ;;  %v1394_v59 = vrot.slane %v5921_v26, 2 }
 0x115   : > { %990 = vst.msk [vmem:[#allocation2 + $0x139] sm:$0xff] %vm965_vm8, %v5839_v51  ;;  %v5995_v51 = vsel %vm1132_vm4, %v1178_v44, %v1179_v43  ;;  %8781 = vst [vmem:[#allocation12_spill] sm:$0xff] %v5999_v61  ;;  %v6003_v63 = vld [vmem:[#allocation2 + $0x128] sm:$0xff]  ;;  %v1183_v43 = vrot.slane %v5938_v27, 1  ;;  %v1354_v44 = vrot.slane %v5917_v24, 2 }
 0x116   : > { %1074 = vst.msk [vmem:[#allocation3 + $0xb0] sm:$0xff] %vm715_vm1, %v5979_v34  ;;  %8782 = vst [vmem:[#allocation13_spill] sm:$0xff] %v6001_v62  ;;  %1249 = vrot.lane.b32.xlu0 %v5995_v51, %s5340_s22 }
 0x117   : > { %784 = vst.msk [vmem:[#allocation2 + $0x99] sm:$0xff] %vm772_vm3, %v5104_v35  ;;  %800 = vst.msk [vmem:[#allocation2 + $0x159] sm:$0xff] %vm772_vm3, %v5128_v48  ;;  %v6160_v48 = vsel %vm1132_vm4, %v1183_v43, %v1184_v31  ;;  %v1358_v43 = vrot.slane %v5960_v46, 2 }
 0x118   : > { %977 = vst.msk [vmem:[#allocation2 + $0x99] sm:$0xff] %vm965_vm8, %v5819_v36  ;;  %8783 = vst [vmem:[#allocation14_spill] sm:$0xff] %v6003_v63  ;;  %v6019_v36 = vld [vmem:[#allocation2 + $0x120] sm:$0xff] }
 0x119   : > { %783 = vst.msk [vmem:[#allocation2 + $0x91] sm:$0xff] %vm772_vm3, %v606_v49  ;;  %8784 = vst [vmem:[#allocation15_spill] sm:$0xff] %v6019_v36  ;;  %v1356_v49 = vrot.slane %v1006_v22, 2 }
 0x11a   : > { %993 = vst.msk [vmem:[#allocation2 + $0x159] sm:$0xff] %vm965_vm8, %v5841_v52  ;;  %976 = vst.msk [vmem:[#allocation2 + $0x91] sm:$0xff] %vm965_vm8, %v5821_v37  ;;  %v5107_v37 = vpop.f32.mrb[12].mxu0  ;;  %v5131_v52 = vpop.f32.mrb[12].mxu1  ;;  %v6043_v7 = vld [vmem:[#allocation2 + $0x80] sm:$0xff]  ;;  %1427 = vrot.lane.b32.xlu0 %v6036_v5, %s5341_s18 }
 0x11b   : > { %1061 = vst.msk [vmem:[#allocation3 + $0x48] sm:$0xff] %vm715_vm1, %v5999_v61  ;;  %1060 = vst.msk [vmem:[#allocation3 + $0x40] sm:$0xff] %vm715_vm1, %v6001_v62  ;;  %v616_v1 = vpop.f32.mrb[13].mxu0  ;;  %v696_v3 = vpop.f32.mrb[13].mxu1  ;;  %v6169_v60 = vsel %vm1342_vm5, %v1354_v44, %v1356_v49 }
 0x11c   : > { %1077 = vst.msk [vmem:[#allocation3 + $0xc8] sm:$0xff] %vm715_vm1, %v6003_v63  ;;  %1076 = vst.msk [vmem:[#allocation3 + $0xc0] sm:$0xff] %vm715_vm1, %v6019_v36  ;;  %v6047_v8 = vld [vmem:[#allocation2 + $0x140] sm:$0xff]  ;;  %v5134_v9 = vpop.f32.mrb[14].mxu1 }
 0x11d   : > { %799 = vst.msk [vmem:[#allocation2 + $0x151] sm:$0xff] %vm772_vm3, %v686_v0  ;;  %786 = vst.msk [vmem:[#allocation2 + $0xb1] sm:$0xff] %vm772_vm3, %v5107_v37  ;;  %v6172_v0 = vsel %vm1342_vm5, %v1353_v50, %v1354_v44  ;;  %v1396_v37 = vrot.slane %v1030_v30, 2  ;;  %v1399_v44 = vrot.slane %v5962_v47, 2 }
 0x11e   : > { %992 = vst.msk [vmem:[#allocation2 + $0x151] sm:$0xff] %vm965_vm8, %v5843_v53  ;;  %979 = vst.msk [vmem:[#allocation2 + $0xb1] sm:$0xff] %vm965_vm8, %v5823_v38  ;;  %v1391_v53 = vrot.slane %v5908_v19, 2  ;;  %v6045_v38 = vld [vmem:[#allocation2 + $0x78] sm:$0xff]  ;;  %1459 = vrot.lane.b32.xlu0 %v6076_v15, %s5341_s18 }
 0x11f   : > { %802 = vst.msk [vmem:[#allocation2 + $0x171] sm:$0xff] %vm772_vm3, %v5131_v52  ;;  %785 = vst.msk [vmem:[#allocation2 + $0xa9] sm:$0xff] %vm772_vm3, %v616_v1  ;;  %v1393_v52 = vrot.slane %v5938_v27, 2  ;;  %v6180_v1 = vsel %vm1342_vm5, %v1394_v59, %v1396_v37  ;;  %v1398_v37 = vrot.slane %v5979_v34, 2 }
 0x120   : > { %801 = vst.msk [vmem:[#allocation2 + $0x169] sm:$0xff] %vm772_vm3, %v696_v3  ;;  %8785 = vst [vmem:[#allocation16_spill] sm:$0xff] %v6043_v7  ;;  %v6073_v11 = vsel %vm1342_vm5, %v1389_v2, %v1391_v53  ;;  %v1009_v3 = vld [vmem:[#allocation2 + $0x58] sm:$0x3]  ;;  %v1149_v53 = vrot.slane %v5958_v45, 1 }
 0x121   : > { %995 = vst.msk [vmem:[#allocation2 + $0x171] sm:$0xff] %vm965_vm8, %v5845_v54  ;;  %8786 = vst [vmem:[#allocation17_spill] sm:$0xff] %v6045_v38  ;;  %v6063_v54 = vld [vmem:[#allocation2 + $0x138] sm:$0xff]  ;;  %v6083_v17 = vld [vmem:[#allocation2 + $0x90] sm:$0xff]  ;;  %1461 = vrot.lane.b32.xlu1 %v6073_v11, %s5341_s18  ;;  %v6183_v2 = vsel %vm1342_vm5, %v1393_v52, %v1394_v59  ;;  %v1151_v6 = vrot.slane %v1009_v3, 1 }
 0x122   : > { %8787 = vst [vmem:[#allocation18_spill] sm:$0xff] %v6047_v8  ;;  %978 = vst.msk [vmem:[#allocation2 + $0xa9] sm:$0xff] %vm965_vm8, %v5825_v39  ;;  %v5110_v39 = vpop.f32.mrb[14].mxu0  ;;  %v6081_v16 = vld [vmem:[#allocation2 + $0x98] sm:$0xff]  ;;  %1689 = vrot.lane.b32.xlu0 %v5954_v42, %s5343_s20  ;;  %v1186_v42 = vrot.slane %v1030_v30, 1 }
 0x123   : > { %994 = vst.msk [vmem:[#allocation2 + $0x169] sm:$0xff] %vm965_vm8, %v5847_v55  ;;  %8788 = vst [vmem:[#allocation19_spill] sm:$0xff] %v6063_v54  ;;  %v626_v10 = vpop.f32.mrb[15].mxu0  ;;  %v706_v55 = vpop.f32.mrb[15].mxu1 }
 0x124   : > { %1063 = vst.msk [vmem:[#allocation3 + $0x58] sm:$0xff] %vm715_vm1, %v6043_v7  ;;  %1062 = vst.msk [vmem:[#allocation3 + $0x50] sm:$0xff] %vm715_vm1, %v6045_v38  ;;  %v6157_v35 = vsel %vm1132_vm4, %v1184_v31, %v1186_v42  ;;  %v1361_v42 = vrot.slane %v1009_v3, 2  ;;  %v6243_v3 = vsel %vm1342_vm5, %v1398_v37, %v1399_v44 }
 0x125   : > { %1079 = vst.msk [vmem:[#allocation3 + $0xd8] sm:$0xff] %vm715_vm1, %v6047_v8  ;;  %1078 = vst.msk [vmem:[#allocation3 + $0xd0] sm:$0xff] %vm715_vm1, %v6063_v54  ;;  %1691 = vrot.lane.b32.xlu1 %v5951_v33, %s5343_s20  ;;  %v6148_v33 = vsel %vm1132_vm4, %v1143_v29, %v1144_v23  ;;  %v1359_v29 = vrot.slane %v5958_v45, 2 }
 0x126   : > { %788 = vst.msk [vmem:[#allocation2 + $0xc9] sm:$0xff] %vm772_vm3, %v5110_v39  ;;  %804 = vst.msk [vmem:[#allocation2 + $0x189] sm:$0xff] %vm772_vm3, %v5134_v9  ;;  %1558 = vrot.lane.b32.xlu0 %v5919_v25, %s5342_s19  ;;  %v1148_v39 = vrot.slane %v5960_v46, 1  ;;  %v1033_v9 = vld [vmem:[#allocation2 + $0x118] sm:$0x3] }
 0x127   : > { %981 = vst.msk [vmem:[#allocation2 + $0xc9] sm:$0xff] %vm965_vm8, %v5827_v40  ;;  %997 = vst.msk [vmem:[#allocation2 + $0x189] sm:$0xff] %vm965_vm8, %v5849_v56  ;;  %v6097_v40 = vld [vmem:[#allocation2 + $0x158] sm:$0xff]  ;;  %v6099_v56 = vld [vmem:[#allocation2 + $0x150] sm:$0xff]  ;;  %v1191_v23 = vrot.slane %v1033_v9, 1  ;;  %v6229_v49 = vsel %vm1342_vm5, %v1359_v29, %v1361_v42  ;;  %v6232_v50 = vsel %vm1342_vm5, %v1358_v43, %v1359_v29  ;;  %v1401_v59 = vrot.slane %v1033_v9, 2 }
 0x128   : > { %787 = vst.msk [vmem:[#allocation2 + $0xc1] sm:$0xff] %vm772_vm3, %v626_v10  ;;  %803 = vst.msk [vmem:[#allocation2 + $0x181] sm:$0xff] %vm772_vm3, %v706_v55  ;;  %v1189_v10 = vrot.slane %v5962_v47, 1  ;;  %v6205_v55 = vsel %vm1132_vm4, %v1149_v53, %v1151_v6  ;;  %v6208_v22 = vsel %vm1132_vm4, %v1148_v39, %v1149_v53  ;;  %v1012_v53 = vld [vmem:[#allocation2 + $0x70] sm:$0x3]  ;;  %v1154_v6 = vrot.slane %v5999_v61, 1 }
 0x129   : > { %8789 = vst [vmem:[#allocation20_spill] sm:$0xff] %v6081_v16  ;;  %8790 = vst [vmem:[#allocation21_spill] sm:$0xff] %v6083_v17  ;;  %v6107_v18 = vld [vmem:[#allocation2 + $0xa8] sm:$0xff]  ;;  %1560 = vrot.lane.b32.xlu1 %v5917_v24, %s5342_s19  ;;  %v6240_v52 = vsel %vm1342_vm5, %v1399_v44, %v1401_v59  ;;  %v1156_v39 = vrot.slane %v1012_v53, 1  ;;  %v1153_v9 = vrot.slane %v6001_v62, 1  ;;  %v1193_v43 = vrot.slane %v6019_v36, 1 }
 0x12a   : > { %980 = vst.msk [vmem:[#allocation2 + $0xc1] sm:$0xff] %vm965_vm8, %v5829_v41  ;;  %996 = vst.msk [vmem:[#allocation2 + $0x181] sm:$0xff] %vm965_vm8, %v5851_v57  ;;  %v6105_v41 = vld [vmem:[#allocation2 + $0xb0] sm:$0xff]  ;;  %v6121_v19 = vld [vmem:[#allocation2 + $0x168] sm:$0xff]  ;;  %1590 = vrot.lane.b32.xlu0 %v5938_v27, %s5342_s19  ;;  %v6217_v30 = vsel %vm1132_vm4, %v1189_v10, %v1191_v23  ;;  %v6220_v31 = vsel %vm1132_vm4, %v1188_v28, %v1189_v10  ;;  %v1194_v23 = vrot.slane %v6003_v63, 1  ;;  %v1364_v44 = vrot.slane %v5999_v61, 2 }
 0x12b   : > { %1065 = vst.msk [vmem:[#allocation3 + $0x68] sm:$0xff] %vm715_vm1, %v6081_v16  ;;  %1064 = vst.msk [vmem:[#allocation3 + $0x60] sm:$0xff] %vm715_vm1, %v6083_v17  ;;  %v6109_v57 = vld [vmem:[#allocation2 + $0x170] sm:$0xff]  ;;  %v6265_v28 = vsel %vm1132_vm4, %v1154_v6, %v1156_v39  ;;  %v6268_v29 = vsel %vm1132_vm4, %v1153_v9, %v1154_v6  ;;  %v1366_v39 = vrot.slane %v1012_v53, 2  ;;  %v1363_v6 = vrot.slane %v6001_v62, 2 }
 0x12c   : > { %8791 = vst [vmem:[#allocation22_spill] sm:$0xff] %v6097_v40  ;;  %8792 = vst [vmem:[#allocation23_spill] sm:$0xff] %v6099_v56  ;;  %v1036_v10 = vld [vmem:[#allocation2 + $0x130] sm:$0x3]  ;;  %v6280_v37 = vsel %vm1132_vm4, %v1193_v43, %v1194_v23  ;;  %v1404_v9 = vrot.slane %v6003_v63, 2 }
 0x12d   : > { %1081 = vst.msk [vmem:[#allocation3 + $0xe8] sm:$0xff] %vm715_vm1, %v6097_v40  ;;  %1080 = vst.msk [vmem:[#allocation3 + $0xe0] sm:$0xff] %vm715_vm1, %v6099_v56  ;;  %1592 = vrot.lane.b32.xlu1 %v5921_v26, %s5342_s19  ;;  %v1196_v42 = vrot.slane %v1036_v10, 1  ;;  %v6289_v12 = vsel %vm1342_vm5, %v1364_v44, %v1366_v39  ;;  %v1159_v39 = vrot.slane %v6043_v7, 1 }
 0x12e   : > { %8793 = vst [vmem:[#allocation24_spill] sm:$0xff] %v6105_v41  ;;  %8794 = vst [vmem:[#allocation25_spill] sm:$0xff] %v6107_v18  ;;  %1221 = vrot.lane.b32.xlu0 %v6148_v33, %s5340_s22 }
 0x12f   : > { %8795 = vst [vmem:[#allocation26_spill] sm:$0xff] %v6109_v57  ;;  %1067 = vst.msk [vmem:[#allocation3 + $0x78] sm:$0xff] %vm715_vm1, %v6105_v41  ;;  %v6277_v59 = vsel %vm1132_vm4, %v1194_v23, %v1196_v42  ;;  %v6292_v42 = vsel %vm1342_vm5, %v1363_v6, %v1364_v44  ;;  %v1403_v23 = vrot.slane %v6019_v36, 2 }
 0x130   : > { %1066 = vst.msk [vmem:[#allocation3 + $0x70] sm:$0xff] %vm715_vm1, %v6107_v18  ;;  %1083 = vst.msk [vmem:[#allocation3 + $0xf8] sm:$0xff] %vm715_vm1, %v6109_v57 }
 0x131   : > { %8796 = vst [vmem:[#allocation27_spill] sm:$0xff] %v6121_v19  ;;  %1082 = vst.msk [vmem:[#allocation3 + $0xf0] sm:$0xff] %vm715_vm1, %v6121_v19  ;;  %v6125_v20 = vld [vmem:[#allocation2 + $0xc8] sm:$0xff]  ;;  %v6127_v21 = vld [vmem:[#allocation2 + $0xc0] sm:$0xff]  ;;  %1223 = vrot.lane.b32.xlu1 %v6145_v32, %s5340_s22  ;;  %v6303_v43 = vsel %vm1342_vm5, %v1403_v23, %v1404_v9 }
 0x132   : > { %8797 = vst [vmem:[#allocation28_spill] sm:$0xff] %v6125_v20  ;;  %1069 = vst.msk [vmem:[#allocation3 + $0x88] sm:$0xff] %vm715_vm1, %v6125_v20  ;;  %1253 = vrot.lane.b32.xlu0 %v6160_v48, %s5340_s22  ;;  %v1039_v23 = vld [vmem:[#allocation2 + $0x148] sm:$0x3] }
 0x133   : > { %1068 = vst.msk [vmem:[#allocation3 + $0x80] sm:$0xff] %vm715_vm1, %v6127_v21  ;;  %8798 = vst [vmem:[#allocation29_spill] sm:$0xff] %v6145_v32  ;;  %vm3431_vm1 = vcmask 97344  }
 0x134   : > { %8799 = vst [vmem:[#allocation30_spill] sm:$0xff] %v6148_v33  ;;  %8800 = vst [vmem:[#allocation31_spill] sm:$0xff] %v6205_v55 }
 0x135   : > { %1255 = vrot.lane.b32.xlu1 %v6157_v35, %s5340_s22  ;;  %8801 = vst [vmem:[#allocation32_spill] sm:$0xff] %v6208_v22  ;;  %8802 = vst [vmem:[#allocation33_spill] sm:$0xff] %v6265_v28 }
 0x136   : > { %1431 = vrot.lane.b32.xlu0 %v6172_v0, %s5341_s18  ;;  %8803 = vst [vmem:[#allocation34_spill] sm:$0xff] %v6268_v29 }
 0x139   : > { %1433 = vrot.lane.b32.xlu1 %v6169_v60, %s5341_s18 }
 0x13a   : > { %1463 = vrot.lane.b32.xlu0 %v6183_v2, %s5341_s18 }
 0x13d   : > { %1465 = vrot.lane.b32.xlu1 %v6180_v1, %s5341_s18 }
 0x13e   : > { %1693 = vrot.lane.b32.xlu0 %v6148_v33, %s5343_s20  ;;  %v1201_v33 = vrot.slane %v1039_v23, 1 }
 0x141   : > { %1695 = vrot.lane.b32.xlu1 %v6145_v32, %s5343_s20  ;;  %v1198_v32 = vrot.slane %v6063_v54, 1 }
 0x142   : > { %1562 = vrot.lane.b32.xlu0 %v5960_v46, %s5342_s19 }
 0x145   : > { %1564 = vrot.lane.b32.xlu1 %v5958_v45, %s5342_s19 }
 0x146   : > { %1594 = vrot.lane.b32.xlu0 %v5979_v34, %s5342_s19  ;;  %v1369_v34 = vrot.slane %v6043_v7, 2 }
 0x149   : > { %1596 = vrot.lane.b32.xlu1 %v5962_v47, %s5342_s19  ;;  %v1368_v47 = vrot.slane %v6045_v38, 2 }
 0x14a   : > { %1225 = vrot.lane.b32.xlu0 %v6208_v22, %s5340_s22 }
 0x14d   : > { %1227 = vrot.lane.b32.xlu1 %v6205_v55, %s5340_s22 }
 0x14e   : > { %1257 = vrot.lane.b32.xlu0 %v6220_v31, %s5340_s22 }
 0x151   : > { %1259 = vrot.lane.b32.xlu1 %v6217_v30, %s5340_s22 }
 0x152   : > { %1435 = vrot.lane.b32.xlu0 %v6232_v50, %s5341_s18 }
 0x155   : > { %1437 = vrot.lane.b32.xlu1 %v6229_v49, %s5341_s18 }
 0x156   : > { %1467 = vrot.lane.b32.xlu0 %v6243_v3, %s5341_s18 }
 0x159   : > { %1469 = vrot.lane.b32.xlu1 %v6240_v52, %s5341_s18 }
 0x15a   : > { %1697 = vrot.lane.b32.xlu0 %v6208_v22, %s5343_s20  ;;  %v1406_v22 = vrot.slane %v1036_v10, 2 }
 0x15c   : > { %v6300_v53 = vsel %vm1342_vm5, %v1404_v9, %v1406_v22  ;;  %v1015_v22 = vld [vmem:[#allocation2 + $0x88] sm:$0x3]  ;;  %v1158_v9 = vrot.slane %v6045_v38, 1 }
 0x15d   : > { %1699 = vrot.lane.b32.xlu1 %v6205_v55, %s5343_s20  ;;  %v1161_v6 = vrot.slane %v1015_v22, 1 }
 0x15e   : > { %1566 = vrot.lane.b32.xlu0 %v6001_v62, %s5342_s19  ;;  %v6334_v55 = vsel %vm1132_vm4, %v1158_v9, %v1159_v39  ;;  %v1371_v9 = vrot.slane %v1015_v22, 2  ;;  %v1408_v22 = vrot.slane %v6063_v54, 2 }
 0x15f   : > { %8807 = vst [vmem:[#allocation38_spill] sm:$0xff] %v6334_v55 }
 0x161   : > { %1568 = vrot.lane.b32.xlu1 %v5999_v61, %s5342_s19 }
 0x162   : > { %1598 = vrot.lane.b32.xlu0 %v6019_v36, %s5342_s19 }
 0x165   : > { %1600 = vrot.lane.b32.xlu1 %v6003_v63, %s5342_s19 }
 0x166   : > { %1229 = vrot.lane.b32.xlu0 %v6268_v29, %s5340_s22 }
 0x169   : > { %1231 = vrot.lane.b32.xlu1 %v6265_v28, %s5340_s22 }
 0x16a   : > { %1261 = vrot.lane.b32.xlu0 %v6280_v37, %s5340_s22 }
 0x16d   : > { %1263 = vrot.lane.b32.xlu1 %v6277_v59, %s5340_s22 }
 0x16e   : > { %1439 = vrot.lane.b32.xlu0 %v6292_v42, %s5341_s18 }
 0x171   : > { %1441 = vrot.lane.b32.xlu1 %v6289_v12, %s5341_s18 }
 0x172   : > { %1471 = vrot.lane.b32.xlu0 %v6303_v43, %s5341_s18 }
 0x175   : > { %1473 = vrot.lane.b32.xlu1 %v6300_v53, %s5341_s18 }
 0x176   : > { %1701 = vrot.lane.b32.xlu0 %v6268_v29, %s5343_s20  ;;  %v1557_v10 = vpop.permute.xlu1 %1556  ;;  %v1555_v44 = vpop.permute.xlu0 %1554 }
 0x177   : > { %1652 = vst.msk [vmem:[#allocation3 + $0x8] sm:$0xff] %vm1650_vm9, %v1557_v10  ;;  %1651 = vst.msk [vmem:[#allocation3] sm:$0xff] %vm1650_vm9, %v1555_v44  ;;  %v1199_v10 = vrot.slane %v6047_v8, 1  ;;  %v6331_v44 = vsel %vm1132_vm4, %v1159_v39, %v1161_v6 }
 0x178   : > { %8806 = vst [vmem:[#allocation37_spill] sm:$0xff] %v6331_v44 }
 0x179   : > { %1703 = vrot.lane.b32.xlu1 %v6265_v28, %s5343_s20  ;;  %v6345_v39 = vsel %vm1132_vm4, %v1199_v10, %v1201_v33  ;;  %v6348_v6 = vsel %vm1132_vm4, %v1198_v32, %v1199_v10  ;;  %v6362_v32 = vsel %vm1342_vm5, %v1368_v47, %v1369_v34  ;;  %v1411_v33 = vrot.slane %v1039_v23, 2 }
 0x17a   : > { %1570 = vrot.lane.b32.xlu0 %v6045_v38, %s5342_s19  ;;  %v6325_v29 = vpop.permute.xlu1 %1588  ;;  %v6327_v28 = vpop.permute.xlu0 %1586 }
 0x17b   : > { %8804 = vst [vmem:[#allocation35_spill] sm:$0xff] %v6325_v29  ;;  %8805 = vst [vmem:[#allocation36_spill] sm:$0xff] %v6327_v28  ;;  %v1383_v28 = vrot.slane %v6127_v21, 2 }
 0x17d   : > { %1572 = vrot.lane.b32.xlu1 %v6043_v7, %s5342_s19 }
 0x17e   : > { %1602 = vrot.lane.b32.xlu0 %v6063_v54, %s5342_s19  ;;  %v1220_v36 = vpop.permute.xlu1 %1219  ;;  %v1218_v63 = vpop.permute.xlu0 %1217  ;;  %v1203_v54 = vrot.slane %v6099_v56, 1 }
 0x17f   : > { %1313 = vst.msk [vmem:[#allocation3 + $0x18] sm:$0xff] %vm1309_vm6, %v1220_v36  ;;  %1312 = vst.msk [vmem:[#allocation3 + $0x10] sm:$0xff] %vm1309_vm6, %v1218_v63  ;;  %v1409_v36 = vrot.slane %v6047_v8, 2  ;;  %v6359_v63 = vsel %vm1342_vm5, %v1369_v34, %v1371_v9  ;;  %v1018_v9 = vld [vmem:[#allocation2 + $0xa0] sm:$0x3] }
 0x181   : > { %1604 = vrot.lane.b32.xlu1 %v6047_v8, %s5342_s19 }
 0x182   : > { %1233 = vrot.lane.b32.xlu0 %v6334_v55, %s5340_s22  ;;  %v1252_v27 = vpop.permute.xlu1 %1251 }
 0x183   : > { %1329 = vst.msk [vmem:[#allocation3 + $0x98] sm:$0xff] %vm1309_vm6, %v1252_v27  ;;  %v6375_v27 = vsel %vm1342_vm5, %v1408_v22, %v1409_v36  ;;  %v1164_v22 = vrot.slane %v6081_v16, 1 }
 0x185   : > { %1235 = vrot.lane.b32.xlu1 %v6331_v44, %s5340_s22 }
 0x186   : > { %1265 = vrot.lane.b32.xlu0 %v6348_v6, %s5340_s22  ;;  %v1430_v10 = vpop.permute.xlu1 %1429 }
 0x187   : > { %1523 = vst.msk [vmem:[#allocation3 + $0x18] sm:$0xff] %vm1519_vm7, %v1430_v10  ;;  %v1166_v10 = vrot.slane %v1018_v9, 1 }
 0x188   : > { %v1250_v26 = vpop.permute.xlu0 %1249 }
 0x189   : > { %1267 = vrot.lane.b32.xlu1 %v6345_v39, %s5340_s22  ;;  %1328 = vst.msk [vmem:[#allocation3 + $0x90] sm:$0xff] %vm1309_vm6, %v1250_v26  ;;  %v6372_v26 = vsel %vm1342_vm5, %v1409_v36, %v1411_v33 }
 0x18a   : > { %1443 = vrot.lane.b32.xlu0 %v6362_v32, %s5341_s18 }
 0x18c   : > { %v1428_v8 = vpop.permute.xlu0 %1427 }
 0x18d   : > { %1445 = vrot.lane.b32.xlu1 %v6359_v63, %s5341_s18  ;;  %1522 = vst.msk [vmem:[#allocation3 + $0x10] sm:$0xff] %vm1519_vm7, %v1428_v8 }
 0x18e   : > { %1475 = vrot.lane.b32.xlu0 %v6375_v27, %s5341_s18 }
 0x190   : > { %v1460_v34 = vpop.permute.xlu0 %1459 }
 0x191   : > { %1477 = vrot.lane.b32.xlu1 %v6372_v26, %s5341_s18  ;;  %1538 = vst.msk [vmem:[#allocation3 + $0x90] sm:$0xff] %vm1519_vm7, %v1460_v34  ;;  %v1042_v34 = vld [vmem:[#allocation2 + $0x160] sm:$0x3] }
 0x192   : > { %1705 = vrot.lane.b32.xlu0 %v6334_v55, %s5343_s20  ;;  %v1204_v55 = vrot.slane %v6097_v40, 1 }
 0x193   : > { %v1462_v47 = vpop.permute.xlu1 %1461 }
 0x194   : > { %1539 = vst.msk [vmem:[#allocation3 + $0x98] sm:$0xff] %vm1519_vm7, %v1462_v47  ;;  %v1690_v23 = vpop.permute.xlu0 %1689  ;;  %v1163_v47 = vrot.slane %v6083_v17, 1 }
 0x195   : > { %1707 = vrot.lane.b32.xlu1 %v6331_v44, %s5343_s20  ;;  %1786 = vst.msk [vmem:[#allocation3] sm:$0xff] %vm1785_vm10, %v1690_v23  ;;  %v1206_v44 = vrot.slane %v1042_v34, 1 }
 0x196   : > { %1574 = vrot.lane.b32.xlu0 %v6083_v17, %s5342_s19 }
 0x197   : > { %v1692_v8 = vpop.permute.xlu1 %1691 }
 0x198   : > { %1787 = vst.msk [vmem:[#allocation3 + $0x8] sm:$0xff] %vm1785_vm10, %v1692_v8  ;;  %v1559_v33 = vpop.permute.xlu0 %1558 }
 0x199   : > { %1576 = vrot.lane.b32.xlu1 %v6081_v16, %s5342_s19  ;;  %1653 = vst.msk [vmem:[#allocation3 + $0x10] sm:$0xff] %vm1650_vm9, %v1559_v33  ;;  %v6408_v33 = vsel %vm1132_vm4, %v1163_v47, %v1164_v22  ;;  %v1376_v47 = vrot.slane %v1018_v9, 2 }
 0x19a   : > { %1606 = vrot.lane.b32.xlu0 %v6099_v56, %s5342_s19  ;;  %8809 = vst [vmem:[#allocation40_spill] sm:$0xff] %v6408_v33 }
 0x19b   : > { %v1561_v36 = vpop.permute.xlu1 %1560 }
 0x19c   : > { %1654 = vst.msk [vmem:[#allocation3 + $0x18] sm:$0xff] %vm1650_vm9, %v1561_v36  ;;  %v1591_v23 = vpop.permute.xlu0 %1590  ;;  %v6405_v36 = vsel %vm1132_vm4, %v1164_v22, %v1166_v10  ;;  %v6419_v22 = vsel %vm1132_vm4, %v1204_v55, %v1206_v44  ;;  %v6422_v10 = vsel %vm1132_vm4, %v1203_v54, %v1204_v55  ;;  %v1416_v55 = vrot.slane %v1042_v34, 2 }
 0x19d   : > { %1608 = vrot.lane.b32.xlu1 %v6097_v40, %s5342_s19  ;;  %1669 = vst.msk [vmem:[#allocation3 + $0x90] sm:$0xff] %vm1650_vm9, %v1591_v23  ;;  %8808 = vst [vmem:[#allocation39_spill] sm:$0xff] %v6405_v36  ;;  %v1373_v23 = vrot.slane %v6083_v17, 2  ;;  %v1413_v44 = vrot.slane %v6099_v56, 2  ;;  %v1208_v56 = vrot.slane %v6121_v19, 1 }
 0x19e   : > { %1237 = vrot.lane.b32.xlu0 %v6408_v33, %s5340_s22 }
 0x19f   : > { %v1593_v8 = vpop.permute.xlu1 %1592 }
 0x1a0   : > { %1670 = vst.msk [vmem:[#allocation3 + $0x98] sm:$0xff] %vm1650_vm9, %v1593_v8  ;;  %v1222_v13 = vpop.permute.xlu0 %1221  ;;  %v1374_v8 = vrot.slane %v6081_v16, 2 }
 0x1a1   : > { %1239 = vrot.lane.b32.xlu1 %v6405_v36, %s5340_s22  ;;  %1314 = vst.msk [vmem:[#allocation3 + $0x20] sm:$0xff] %vm1309_vm6, %v1222_v13 }
 0x1a2   : > { %1269 = vrot.lane.b32.xlu0 %v6422_v10, %s5340_s22  ;;  %v6433_v13 = vsel %vm1342_vm5, %v1374_v8, %v1376_v47  ;;  %v6436_v54 = vsel %vm1342_vm5, %v1373_v23, %v1374_v8  ;;  %v1021_v23 = vld [vmem:[#allocation2 + $0xb8] sm:$0x3] }
 0x1a3   : > { %v1224_v14 = vpop.permute.xlu1 %1223 }
 0x1a4   : > { %1315 = vst.msk [vmem:[#allocation3 + $0x28] sm:$0xff] %vm1309_vm6, %v1224_v14  ;;  %v1254_v38 = vpop.permute.xlu0 %1253  ;;  %v1414_v14 = vrot.slane %v6097_v40, 2 }
 0x1a5   : > { %1271 = vrot.lane.b32.xlu1 %v6419_v22, %s5340_s22  ;;  %1330 = vst.msk [vmem:[#allocation3 + $0xa0] sm:$0xff] %vm1309_vm6, %v1254_v38 }
 0x1a6   : > { %1447 = vrot.lane.b32.xlu0 %v6436_v54, %s5341_s18  ;;  %v6446_v38 = vsel %vm1342_vm5, %v1414_v14, %v1416_v55 }
 0x1a7   : > { %v1256_v16 = vpop.permute.xlu1 %1255 }
 0x1a8   : > { %1331 = vst.msk [vmem:[#allocation3 + $0xa8] sm:$0xff] %vm1309_vm6, %v1256_v16  ;;  %v1432_v40 = vpop.permute.xlu0 %1431  ;;  %v6449_v16 = vsel %vm1342_vm5, %v1413_v44, %v1414_v14  ;;  %v1169_v44 = vrot.slane %v6105_v41, 1 }
 0x1a9   : > { %1449 = vrot.lane.b32.xlu1 %v6433_v13, %s5341_s18  ;;  %1524 = vst.msk [vmem:[#allocation3 + $0x20] sm:$0xff] %vm1519_vm7, %v1432_v40 }
 0x1aa   : > { %1479 = vrot.lane.b32.xlu0 %v6449_v16, %s5341_s18 }
 0x1ab   : > { %v1434_v9 = vpop.permute.xlu1 %1433 }
 0x1ac   : > { %1525 = vst.msk [vmem:[#allocation3 + $0x28] sm:$0xff] %vm1519_vm7, %v1434_v9  ;;  %v1464_v8 = vpop.permute.xlu0 %1463  ;;  %v1171_v9 = vrot.slane %v1021_v23, 1 }
 0x1ad   : > { %1481 = vrot.lane.b32.xlu1 %v6446_v38, %s5341_s18  ;;  %1540 = vst.msk [vmem:[#allocation3 + $0xa0] sm:$0xff] %vm1519_vm7, %v1464_v8  ;;  %v1045_v8 = vld [vmem:[#allocation2 + $0x178] sm:$0x3] }
 0x1ae   : > { %1709 = vrot.lane.b32.xlu0 %v6408_v33, %s5343_s20  ;;  %v1209_v33 = vrot.slane %v6109_v57, 1 }
 0x1af   : > { %v1466_v34 = vpop.permute.xlu1 %1465 }
 0x1b0   : > { %1541 = vst.msk [vmem:[#allocation3 + $0xa8] sm:$0xff] %vm1519_vm7, %v1466_v34  ;;  %v1694_v47 = vpop.permute.xlu0 %1693  ;;  %v1168_v34 = vrot.slane %v6107_v18, 1 }
 0x1b1   : > { %1711 = vrot.lane.b32.xlu1 %v6405_v36, %s5343_s20  ;;  %1788 = vst.msk [vmem:[#allocation3 + $0x10] sm:$0xff] %vm1785_vm10, %v1694_v47  ;;  %v1211_v36 = vrot.slane %v1045_v8, 1 }
 0x1b2   : > { %1578 = vrot.lane.b32.xlu0 %v6107_v18, %s5342_s19 }
 0x1b3   : > { %v1696_v40 = vpop.permute.xlu1 %1695 }
 0x1b4   : > { %1789 = vst.msk [vmem:[#allocation3 + $0x18] sm:$0xff] %vm1785_vm10, %v1696_v40  ;;  %v1563_v55 = vpop.permute.xlu0 %1562 }
 0x1b5   : > { %1580 = vrot.lane.b32.xlu1 %v6105_v41, %s5342_s19  ;;  %1655 = vst.msk [vmem:[#allocation3 + $0x20] sm:$0xff] %vm1650_vm9, %v1563_v55  ;;  %v6482_v55 = vsel %vm1132_vm4, %v1168_v34, %v1169_v44  ;;  %v1381_v34 = vrot.slane %v1021_v23, 2 }
 0x1b6   : > { %1610 = vrot.lane.b32.xlu0 %v6121_v19, %s5342_s19 }
 0x1b7   : > { %v1565_v14 = vpop.permute.xlu1 %1564 }
 0x1b8   : > { %1656 = vst.msk [vmem:[#allocation3 + $0x28] sm:$0xff] %vm1650_vm9, %v1565_v14  ;;  %v1595_v47 = vpop.permute.xlu0 %1594  ;;  %v6479_v14 = vsel %vm1132_vm4, %v1169_v44, %v1171_v9  ;;  %v6493_v44 = vsel %vm1132_vm4, %v1209_v33, %v1211_v36  ;;  %v6496_v9 = vsel %vm1132_vm4, %v1208_v56, %v1209_v33  ;;  %v1421_v36 = vrot.slane %v1045_v8, 2 }
 0x1b9   : > { %1612 = vrot.lane.b32.xlu1 %v6109_v57, %s5342_s19  ;;  %1671 = vst.msk [vmem:[#allocation3 + $0xa0] sm:$0xff] %vm1650_vm9, %v1595_v47  ;;  %8810 = vst [vmem:[#allocation41_spill] sm:$0xff] %v6496_v9  ;;  %v1378_v47 = vrot.slane %v6107_v18, 2  ;;  %v1418_v33 = vrot.slane %v6121_v19, 2 }
 0x1ba   : > { %1241 = vrot.lane.b32.xlu0 %v6482_v55, %s5340_s22 }
 0x1bb   : > { %v1597_v40 = vpop.permute.xlu1 %1596 }
 0x1bc   : > { %1672 = vst.msk [vmem:[#allocation3 + $0xa8] sm:$0xff] %vm1650_vm9, %v1597_v40  ;;  %v1226_v7 = vpop.permute.xlu0 %1225  ;;  %v1379_v40 = vrot.slane %v6105_v41, 2 }
 0x1bd   : > { %1243 = vrot.lane.b32.xlu1 %v6479_v14, %s5340_s22  ;;  %1316 = vst.msk [vmem:[#allocation3 + $0x30] sm:$0xff] %vm1309_vm6, %v1226_v7 }
 0x1be   : > { %1273 = vrot.lane.b32.xlu0 %v6496_v9, %s5340_s22  ;;  %v6507_v7 = vsel %vm1342_vm5, %v1379_v40, %v1381_v34  ;;  %v6510_v56 = vsel %vm1342_vm5, %v1378_v47, %v1379_v40 }
 0x1bf   : > { %v1228_v17 = vpop.permute.xlu1 %1227 }
 0x1c0   : > { %1317 = vst.msk [vmem:[#allocation3 + $0x38] sm:$0xff] %vm1309_vm6, %v1228_v17  ;;  %v1258_v62 = vpop.permute.xlu0 %1257  ;;  %v1419_v17 = vrot.slane %v6109_v57, 2 }
 0x1c1   : > { %1275 = vrot.lane.b32.xlu1 %v6493_v44, %s5340_s22  ;;  %1332 = vst.msk [vmem:[#allocation3 + $0xb0] sm:$0xff] %vm1309_vm6, %v1258_v62 }
 0x1c2   : > { %1451 = vrot.lane.b32.xlu0 %v6510_v56, %s5341_s18  ;;  %v6520_v62 = vsel %vm1342_vm5, %v1419_v17, %v1421_v36  ;;  %v6539_v36 = vld [vmem:[#allocation2 + $0x180] sm:$0xff] }
 0x1c3   : > { %v1260_v41 = vpop.permute.xlu1 %1259 }
 0x1c4   : > { %1333 = vst.msk [vmem:[#allocation3 + $0xb8] sm:$0xff] %vm1309_vm6, %v1260_v41  ;;  %v1436_v57 = vpop.permute.xlu0 %1435  ;;  %v6523_v41 = vsel %vm1342_vm5, %v1418_v33, %v1419_v17  ;;  %v6537_v17 = vld [vmem:[#allocation2 + $0x188] sm:$0xff]  ;;  %v1174_v33 = vrot.slane %v6125_v20, 1 }
 0x1c5   : > { %1453 = vrot.lane.b32.xlu1 %v6507_v7, %s5341_s18  ;;  %1526 = vst.msk [vmem:[#allocation3 + $0x30] sm:$0xff] %vm1519_vm7, %v1436_v57  ;;  %v1024_v57 = vld [vmem:[#allocation2 + $0xd0] sm:$0x3] }
 0x1c6   : > { %1483 = vrot.lane.b32.xlu0 %v6523_v41, %s5341_s18  ;;  %v1386_v61 = vrot.slane %v1024_v57, 2 }
 0x1c7   : > { %v1438_v23 = vpop.permute.xlu1 %1437 }
 0x1c8   : > { %1527 = vst.msk [vmem:[#allocation3 + $0x38] sm:$0xff] %vm1519_vm7, %v1438_v23  ;;  %v1468_v40 = vpop.permute.xlu0 %1467  ;;  %v1176_v23 = vrot.slane %v1024_v57, 1 }
 0x1c9   : > { %1485 = vrot.lane.b32.xlu1 %v6520_v62, %s5341_s18  ;;  %1542 = vst.msk [vmem:[#allocation3 + $0xb0] sm:$0xff] %vm1519_vm7, %v1468_v40 }
 0x1ca   : > { %1582 = vrot.lane.b32.xlu0 %v6127_v21, %s5342_s19 }
 0x1cb   : > { %v1470_v8 = vpop.permute.xlu1 %1469 }
 0x1cc   : > { %1543 = vst.msk [vmem:[#allocation3 + $0xb8] sm:$0xff] %vm1519_vm7, %v1470_v8  ;;  %v1698_v47 = vpop.permute.xlu0 %1697  ;;  %v1173_v8 = vrot.slane %v6127_v21, 1 }
 0x1cd   : > { %1584 = vrot.lane.b32.xlu1 %v6125_v20, %s5342_s19  ;;  %1790 = vst.msk [vmem:[#allocation3 + $0x20] sm:$0xff] %vm1785_vm10, %v1698_v47  ;;  %v6551_v47 = vsel %vm1132_vm4, %v1174_v33, %v1176_v23 }
 0x1ce   : > { %1614 = vrot.lane.b32.xlu0 %v6539_v36, %s5342_s19  ;;  %v6554_v18 = vsel %vm1132_vm4, %v1173_v8, %v1174_v33 }
 0x1cf   : > { %v1700_v34 = vpop.permute.xlu1 %1699 }
 0x1d0   : > { %1791 = vst.msk [vmem:[#allocation3 + $0x28] sm:$0xff] %vm1785_vm10, %v1700_v34  ;;  %v1567_v19 = vpop.permute.xlu0 %1566  ;;  %v1384_v34 = vrot.slane %v6125_v20, 2 }
 0x1d1   : > { %1616 = vrot.lane.b32.xlu1 %v6537_v17, %s5342_s19  ;;  %1657 = vst.msk [vmem:[#allocation3 + $0x30] sm:$0xff] %vm1650_vm9, %v1567_v19 }
 0x1d2   : > { %1245 = vrot.lane.b32.xlu0 %v6554_v18, %s5340_s22  ;;  %v6564_v19 = vsel %vm1342_vm5, %v1384_v34, %v1386_v61  ;;  %v6567_v33 = vsel %vm1342_vm5, %v1383_v28, %v1384_v34 }
 0x1d3   : > { %v1569_v40 = vpop.permute.xlu1 %1568 }
 0x1d4   : > { %1658 = vst.msk [vmem:[#allocation3 + $0x38] sm:$0xff] %vm1650_vm9, %v1569_v40  ;;  %v1599_v29 = vpop.permute.xlu0 %1598 }
 0x1d5   : > { %1247 = vrot.lane.b32.xlu1 %v6551_v47, %s5340_s22  ;;  %1673 = vst.msk [vmem:[#allocation3 + $0xb0] sm:$0xff] %vm1650_vm9, %v1599_v29 }
 0x1d6   : > { %1455 = vrot.lane.b32.xlu0 %v6567_v33, %s5341_s18 }
 0x1d7   : > { %v1601_v20 = vpop.permute.xlu1 %1600 }
 0x1d8   : > { %1674 = vst.msk [vmem:[#allocation3 + $0xb8] sm:$0xff] %vm1650_vm9, %v1601_v20  ;;  %v1230_v23 = vpop.permute.xlu0 %1229 }
 0x1d9   : > { %1457 = vrot.lane.b32.xlu1 %v6564_v19, %s5341_s18  ;;  %1318 = vst.msk [vmem:[#allocation3 + $0x40] sm:$0xff] %vm1309_vm6, %v1230_v23 }
 0x1da   : > { %1713 = vrot.lane.b32.xlu0 %v6482_v55, %s5343_s20 }
 0x1db   : > { %v1232_v57 = vpop.permute.xlu1 %1231 }
 0x1dc   : > { %1319 = vst.msk [vmem:[#allocation3 + $0x48] sm:$0xff] %vm1309_vm6, %v1232_v57  ;;  %v1262_v20 = vpop.permute.xlu0 %1261 }
 0x1dd   : > { %1715 = vrot.lane.b32.xlu1 %v6479_v14, %s5343_s20  ;;  %1334 = vst.msk [vmem:[#allocation3 + $0xc0] sm:$0xff] %vm1309_vm6, %v1262_v20 }
 0x1de   : > { %1717 = vrot.lane.b32.xlu0 %v6554_v18, %s5343_s20 }
 0x1df   : > { %v1264_v61 = vpop.permute.xlu1 %1263 }
 0x1e0   : > { %1335 = vst.msk [vmem:[#allocation3 + $0xc8] sm:$0xff] %vm1309_vm6, %v1264_v61  ;;  %v1440_v29 = vpop.permute.xlu0 %1439 }
 0x1e1   : > { %1719 = vrot.lane.b32.xlu1 %v6551_v47, %s5343_s20  ;;  %1528 = vst.msk [vmem:[#allocation3 + $0x40] sm:$0xff] %vm1519_vm7, %v1440_v29 }
 0x1e2   : > { %1721 = vrot.lane.b32.xlu0 %v5995_v51, %s5343_s20 }
 0x1e3   : > { %v1442_v28 = vpop.permute.xlu1 %1441 }
 0x1e4   : > { %1529 = vst.msk [vmem:[#allocation3 + $0x48] sm:$0xff] %vm1519_vm7, %v1442_v28  ;;  %v1472_v40 = vpop.permute.xlu0 %1471 }
 0x1e5   : > { %1723 = vrot.lane.b32.xlu1 %v5992_v58, %s5343_s20  ;;  %1544 = vst.msk [vmem:[#allocation3 + $0xc0] sm:$0xff] %vm1519_vm7, %v1472_v40  ;;  %v6621_v40 = vld [vmem:[#allocation2 + $0x190] sm:$0x3] }
 0x1e6   : > { %1725 = vrot.lane.b32.xlu0 %v6160_v48, %s5343_s20 }
 0x1e7   : > { %v1474_v8 = vpop.permute.xlu1 %1473 }
 0x1e8   : > { %1545 = vst.msk [vmem:[#allocation3 + $0xc8] sm:$0xff] %vm1519_vm7, %v1474_v8  ;;  %v1702_v57 = vpop.permute.xlu0 %1701 }
 0x1e9   : > { %1727 = vrot.lane.b32.xlu1 %v6157_v35, %s5343_s20  ;;  %1792 = vst.msk [vmem:[#allocation3 + $0x30] sm:$0xff] %vm1785_vm10, %v1702_v57 }
 0x1ea   : > { %1729 = vrot.lane.b32.xlu0 %v6220_v31, %s5343_s20 }
 0x1eb   : > { %v1704_v34 = vpop.permute.xlu1 %1703 }
 0x1ec   : > { %1793 = vst.msk [vmem:[#allocation3 + $0x38] sm:$0xff] %vm1785_vm10, %v1704_v34  ;;  %v1571_v61 = vpop.permute.xlu0 %1570 }
 0x1ed   : > { %1731 = vrot.lane.b32.xlu1 %v6217_v30, %s5343_s20  ;;  %1659 = vst.msk [vmem:[#allocation3 + $0x40] sm:$0xff] %vm1650_vm9, %v1571_v61  ;;  %v1684_v61 = vrot.slane %v6539_v36, 1 }
 0x1ee   : > { %1733 = vrot.lane.b32.xlu0 %v6280_v37, %s5343_s20 }
 0x1ef   : > { %v1573_v23 = vpop.permute.xlu1 %1572 }
 0x1f0   : > { %1660 = vst.msk [vmem:[#allocation3 + $0x48] sm:$0xff] %vm1650_vm9, %v1573_v23  ;;  %v1603_v28 = vpop.permute.xlu0 %1602  ;;  %v1685_v23 = vrot.slane %v6537_v17, 1 }
 0x1f1   : > { %1735 = vrot.lane.b32.xlu1 %v6277_v59, %s5343_s20  ;;  %1675 = vst.msk [vmem:[#allocation3 + $0xc0] sm:$0xff] %vm1650_vm9, %v1603_v28 }
 0x1f2   : > { %1737 = vrot.lane.b32.xlu0 %v6348_v6, %s5343_s20 }
 0x1f3   : > { %v1605_v20 = vpop.permute.xlu1 %1604 }
 0x1f4   : > { %1676 = vst.msk [vmem:[#allocation3 + $0xc8] sm:$0xff] %vm1650_vm9, %v1605_v20  ;;  %v1234_v8 = vpop.permute.xlu0 %1233  ;;  %v1687_v20 = vrot.slane %v6621_v40, 1 }
 0x1f5   : > { %1739 = vrot.lane.b32.xlu1 %v6345_v39, %s5343_s20  ;;  %1320 = vst.msk [vmem:[#allocation3 + $0x50] sm:$0xff] %vm1309_vm6, %v1234_v8 }
 0x1f6   : > { %1741 = vrot.lane.b32.xlu0 %v6422_v10, %s5343_s20  ;;  %v6635_v8 = vsel %vm1132_vm4, %v1685_v23, %v1687_v20 }
 0x1f7   : > { %v1236_v29 = vpop.permute.xlu1 %1235 }
 0x1f8   : > { %1321 = vst.msk [vmem:[#allocation3 + $0x58] sm:$0xff] %vm1309_vm6, %v1236_v29  ;;  %v1266_v57 = vpop.permute.xlu0 %1265 }
 0x1f9   : > { %1743 = vrot.lane.b32.xlu1 %v6419_v22, %s5343_s20  ;;  %1336 = vst.msk [vmem:[#allocation3 + $0xd0] sm:$0xff] %vm1309_vm6, %v1266_v57 }
 0x1fa   : > { %1745 = vrot.lane.b32.xlu0 %v6496_v9, %s5343_s20 }
 0x1fb   : > { %v1268_v34 = vpop.permute.xlu1 %1267 }
 0x1fc   : > { %1337 = vst.msk [vmem:[#allocation3 + $0xd8] sm:$0xff] %vm1309_vm6, %v1268_v34  ;;  %v1444_v29 = vpop.permute.xlu0 %1443  ;;  %v6638_v34 = vsel %vm1132_vm4, %v1684_v61, %v1685_v23 }
 0x1fd   : > { %1747 = vrot.lane.b32.xlu1 %v6493_v44, %s5343_s20  ;;  %1530 = vst.msk [vmem:[#allocation3 + $0x50] sm:$0xff] %vm1519_vm7, %v1444_v29 }
 0x1fe   : > { %1749 = vrot.lane.b32.xlu0 %v6638_v34, %s5343_s20 }
 0x1ff   : > { %v1446_v28 = vpop.permute.xlu1 %1445 }
 0x200   : > { %1531 = vst.msk [vmem:[#allocation3 + $0x58] sm:$0xff] %vm1519_vm7, %v1446_v28  ;;  %v1476_v9 = vpop.permute.xlu0 %1475 }
 0x201   : > { %1751 = vrot.lane.b32.xlu1 %v6635_v8, %s5343_s20  ;;  %1546 = vst.msk [vmem:[#allocation3 + $0xd0] sm:$0xff] %vm1519_vm7, %v1476_v9 }
 0x202   : > { %1823 = vrot.lane.b32.xlu0 %v6036_v5, %s5344_s21 }
 0x203   : > { %v1478_v57 = vpop.permute.xlu1 %1477 }
 0x204   : > { %1547 = vst.msk [vmem:[#allocation3 + $0xd8] sm:$0xff] %vm1519_vm7, %v1478_v57  ;;  %v1706_v61 = vpop.permute.xlu0 %1705 }
 0x205   : > { %1825 = vrot.lane.b32.xlu1 %v6033_v4, %s5344_s21  ;;  %1794 = vst.msk [vmem:[#allocation3 + $0x40] sm:$0xff] %vm1785_vm10, %v1706_v61 }
 0x206   : > { %1827 = vrot.lane.b32.xlu0 %v6172_v0, %s5344_s21 }
 0x207   : > { %v1708_v23 = vpop.permute.xlu1 %1707 }
 0x208   : > { %1795 = vst.msk [vmem:[#allocation3 + $0x48] sm:$0xff] %vm1785_vm10, %v1708_v23  ;;  %v1575_v20 = vpop.permute.xlu0 %1574 }
 0x209   : > { %1829 = vrot.lane.b32.xlu1 %v6169_v60, %s5344_s21  ;;  %1661 = vst.msk [vmem:[#allocation3 + $0x50] sm:$0xff] %vm1650_vm9, %v1575_v20 }
 0x20a   : > { %1831 = vrot.lane.b32.xlu0 %v6232_v50, %s5344_s21 }
 0x20b   : > { %v1577_v9 = vpop.permute.xlu1 %1576 }
 0x20c   : > { %1662 = vst.msk [vmem:[#allocation3 + $0x58] sm:$0xff] %vm1650_vm9, %v1577_v9  ;;  %v1607_v5 = vpop.permute.xlu0 %1606 }
 0x20d   : > { %1833 = vrot.lane.b32.xlu1 %v6229_v49, %s5344_s21  ;;  %1677 = vst.msk [vmem:[#allocation3 + $0xd0] sm:$0xff] %vm1650_vm9, %v1607_v5 }
 0x20e   : > { %1835 = vrot.lane.b32.xlu0 %v6292_v42, %s5344_s21 }
 0x20f   : > { %v1609_v4 = vpop.permute.xlu1 %1608 }
 0x210   : > { %1678 = vst.msk [vmem:[#allocation3 + $0xd8] sm:$0xff] %vm1650_vm9, %v1609_v4  ;;  %v1238_v29 = vpop.permute.xlu0 %1237 }
 0x211   : > { %1837 = vrot.lane.b32.xlu1 %v6289_v12, %s5344_s21  ;;  %1322 = vst.msk [vmem:[#allocation3 + $0x60] sm:$0xff] %vm1309_vm6, %v1238_v29 }
 0x212   : > { %1839 = vrot.lane.b32.xlu0 %v6362_v32, %s5344_s21 }
 0x213   : > { %v1240_v28 = vpop.permute.xlu1 %1239 }
 0x214   : > { %1323 = vst.msk [vmem:[#allocation3 + $0x68] sm:$0xff] %vm1309_vm6, %v1240_v28  ;;  %v1270_v23 = vpop.permute.xlu0 %1269 }
 0x215   : > { %1841 = vrot.lane.b32.xlu1 %v6359_v63, %s5344_s21  ;;  %1338 = vst.msk [vmem:[#allocation3 + $0xe0] sm:$0xff] %vm1309_vm6, %v1270_v23 }
 0x216   : > { %1843 = vrot.lane.b32.xlu0 %v6436_v54, %s5344_s21 }
 0x217   : > { %v1272_v57 = vpop.permute.xlu1 %1271 }
 0x218   : > { %1339 = vst.msk [vmem:[#allocation3 + $0xe8] sm:$0xff] %vm1309_vm6, %v1272_v57  ;;  %v1448_v9 = vpop.permute.xlu0 %1447 }
 0x219   : > { %1845 = vrot.lane.b32.xlu1 %v6433_v13, %s5344_s21  ;;  %1532 = vst.msk [vmem:[#allocation3 + $0x60] sm:$0xff] %vm1519_vm7, %v1448_v9 }
 0x21a   : > { %1847 = vrot.lane.b32.xlu0 %v6510_v56, %s5344_s21 }
 0x21b   : > { %v1450_v61 = vpop.permute.xlu1 %1449 }
 0x21c   : > { %1533 = vst.msk [vmem:[#allocation3 + $0x68] sm:$0xff] %vm1519_vm7, %v1450_v61  ;;  %v1480_v4 = vpop.permute.xlu0 %1479 }
 0x21d   : > { %1849 = vrot.lane.b32.xlu1 %v6507_v7, %s5344_s21  ;;  %1548 = vst.msk [vmem:[#allocation3 + $0xe0] sm:$0xff] %vm1519_vm7, %v1480_v4 }
 0x21e   : > { %1851 = vrot.lane.b32.xlu0 %v6567_v33, %s5344_s21 }
 0x21f   : > { %v1482_v20 = vpop.permute.xlu1 %1481 }
 0x220   : > { %1549 = vst.msk [vmem:[#allocation3 + $0xe8] sm:$0xff] %vm1519_vm7, %v1482_v20  ;;  %v1710_v28 = vpop.permute.xlu0 %1709 }
 0x221   : > { %1853 = vrot.lane.b32.xlu1 %v6564_v19, %s5344_s21  ;;  %1796 = vst.msk [vmem:[#allocation3 + $0x50] sm:$0xff] %vm1785_vm10, %v1710_v28 }
 0x222   : > { %1855 = vrot.lane.b32.xlu0 %v6076_v15, %s5344_s21 }
 0x223   : > { %v1712_v5 = vpop.permute.xlu1 %1711 }
 0x224   : > { %1797 = vst.msk [vmem:[#allocation3 + $0x58] sm:$0xff] %vm1785_vm10, %v1712_v5  ;;  %v1579_v57 = vpop.permute.xlu0 %1578 }
 0x225   : > { %1857 = vrot.lane.b32.xlu1 %v6073_v11, %s5344_s21  ;;  %1663 = vst.msk [vmem:[#allocation3 + $0x60] sm:$0xff] %vm1650_vm9, %v1579_v57 }
 0x226   : > { %1859 = vrot.lane.b32.xlu0 %v6183_v2, %s5344_s21 }
 0x227   : > { %v1581_v29 = vpop.permute.xlu1 %1580 }
 0x228   : > { %1664 = vst.msk [vmem:[#allocation3 + $0x68] sm:$0xff] %vm1650_vm9, %v1581_v29  ;;  %v1611_v61 = vpop.permute.xlu0 %1610 }
 0x229   : > { %1861 = vrot.lane.b32.xlu1 %v6180_v1, %s5344_s21  ;;  %1679 = vst.msk [vmem:[#allocation3 + $0xe0] sm:$0xff] %vm1650_vm9, %v1611_v61  ;;  %v1819_v61 = vrot.slane %v6537_v17, 2 }
 0x22a   : > { %1863 = vrot.lane.b32.xlu0 %v6243_v3, %s5344_s21 }
 0x22b   : > { %v1613_v23 = vpop.permute.xlu1 %1612 }
 0x22c   : > { %1680 = vst.msk [vmem:[#allocation3 + $0xe8] sm:$0xff] %vm1650_vm9, %v1613_v23  ;;  %v1242_v20 = vpop.permute.xlu0 %1241 }
 0x22d   : > { %1865 = vrot.lane.b32.xlu1 %v6240_v52, %s5344_s21  ;;  %1324 = vst.msk [vmem:[#allocation3 + $0x70] sm:$0xff] %vm1309_vm6, %v1242_v20  ;;  %v1821_v20 = vrot.slane %v6621_v40, 2 }
 0x22e   : > { %1867 = vrot.lane.b32.xlu0 %v6303_v43, %s5344_s21 }
 0x22f   : > { %v1244_v9 = vpop.permute.xlu1 %1243 }
 0x230   : > { %1325 = vst.msk [vmem:[#allocation3 + $0x78] sm:$0xff] %vm1309_vm6, %v1244_v9  ;;  %v1274_v5 = vpop.permute.xlu0 %1273  ;;  %v1818_v9 = vrot.slane %v6539_v36, 2 }
 0x231   : > { %1869 = vrot.lane.b32.xlu1 %v6300_v53, %s5344_s21  ;;  %1340 = vst.msk [vmem:[#allocation3 + $0xf0] sm:$0xff] %vm1309_vm6, %v1274_v5 }
 0x232   : > { %1871 = vrot.lane.b32.xlu0 %v6375_v27, %s5344_s21 }
 0x233   : > { %v1276_v4 = vpop.permute.xlu1 %1275 }
 0x234   : > { %1341 = vst.msk [vmem:[#allocation3 + $0xf8] sm:$0xff] %vm1309_vm6, %v1276_v4  ;;  %v1452_v29 = vpop.permute.xlu0 %1451 }
 0x235   : > { %1873 = vrot.lane.b32.xlu1 %v6372_v26, %s5344_s21  ;;  %1534 = vst.msk [vmem:[#allocation3 + $0x70] sm:$0xff] %vm1519_vm7, %v1452_v29  ;;  %v6743_v29 = vsel %vm1342_vm5, %v1818_v9, %v1819_v61 }
 0x236   : > { %1875 = vrot.lane.b32.xlu0 %v6449_v16, %s5344_s21 }
 0x237   : > { %v1454_v28 = vpop.permute.xlu1 %1453 }
 0x238   : > { %1535 = vst.msk [vmem:[#allocation3 + $0x78] sm:$0xff] %vm1519_vm7, %v1454_v28  ;;  %v1484_v23 = vpop.permute.xlu0 %1483  ;;  %v6740_v28 = vsel %vm1342_vm5, %v1819_v61, %v1821_v20 }
 0x239   : > { %1877 = vrot.lane.b32.xlu1 %v6446_v38, %s5344_s21  ;;  %1550 = vst.msk [vmem:[#allocation3 + $0xf0] sm:$0xff] %vm1519_vm7, %v1484_v23 }
 0x23a   : > { %1879 = vrot.lane.b32.xlu0 %v6523_v41, %s5344_s21 }
 0x23b   : > { %v1486_v57 = vpop.permute.xlu1 %1485 }
 0x23c   : > { %1551 = vst.msk [vmem:[#allocation3 + $0xf8] sm:$0xff] %vm1519_vm7, %v1486_v57  ;;  %v1583_v5 = vpop.permute.xlu0 %1582 }
 0x23d   : > { %1881 = vrot.lane.b32.xlu1 %v6520_v62, %s5344_s21  ;;  %1665 = vst.msk [vmem:[#allocation3 + $0x70] sm:$0xff] %vm1650_vm9, %v1583_v5 }
 0x23e   : > { %1883 = vrot.lane.b32.xlu0 %v6743_v29, %s5344_s21 }
 0x23f   : > { %v1585_v4 = vpop.permute.xlu1 %1584 }
 0x240   : > { %1666 = vst.msk [vmem:[#allocation3 + $0x78] sm:$0xff] %vm1650_vm9, %v1585_v4  ;;  %v1615_v57 = vpop.permute.xlu0 %1614  ;;  %v8813_v4 = vld [vmem:[#allocation12_spill] sm:$0xff] }
 0x241   : > { %1885 = vrot.lane.b32.xlu1 %v6740_v28, %s5344_s21  ;;  %1681 = vst.msk [vmem:[#allocation3 + $0xf0] sm:$0xff] %vm1650_vm9, %v1615_v57  ;;  %v8816_v57 = vld [vmem:[#allocation17_spill] sm:$0xff] }
 0x242   : > { %1954 = vrot.lane.b32.xlu0 %v5919_v25, %s5345_s24  ;;  %v8812_v25 = vld [vmem:[#allocation36_spill] sm:$0xff] }
 0x243   : > { %v1617_v40 = vpop.permute.xlu1 %1616 }
 0x244   : > { %1682 = vst.msk [vmem:[#allocation3 + $0xf8] sm:$0xff] %vm1650_vm9, %v1617_v40  ;;  %v1246_v61 = vpop.permute.xlu0 %1245  ;;  %v8815_v40 = vld [vmem:[#allocation16_spill] sm:$0xff] }
 0x245   : > { %1956 = vrot.lane.b32.xlu1 %v5917_v24, %s5345_s24  ;;  %1326 = vst.msk [vmem:[#allocation3 + $0x80] sm:$0xff] %vm1309_vm6, %v1246_v61  ;;  %v8811_v24 = vld [vmem:[#allocation35_spill] sm:$0xff] }
 0x246   : > { %1958 = vrot.lane.b32.xlu0 %v5960_v46, %s5345_s24 }
 0x247   : > { %v1248_v23 = vpop.permute.xlu1 %1247 }
 0x248   : > { %1327 = vst.msk [vmem:[#allocation3 + $0x88] sm:$0xff] %vm1309_vm6, %v1248_v23  ;;  %v1456_v20 = vpop.permute.xlu0 %1455  ;;  %vm3562_vm6 = vcmask 130144  }
 0x249   : > { %1960 = vrot.lane.b32.xlu1 %v5958_v45, %s5345_s24  ;;  %1536 = vst.msk [vmem:[#allocation3 + $0x80] sm:$0xff] %vm1519_vm7, %v1456_v20  ;;  %v8814_v45 = vld [vmem:[#allocation13_spill] sm:$0xff] }
 0x24a   : > { %1667 = vst.msk [vmem:[#allocation3 + $0x80] sm:$0xff] %vm1650_vm9, %v8812_v25  ;;  %1962 = vrot.lane.b32.xlu0 %v8814_v45, %s5345_s24  ;;  %v8818_v20 = vld [vmem:[#allocation21_spill] sm:$0xff] }
 0x24b   : > { %v1458_v9 = vpop.permute.xlu1 %1457  ;;  %v8820_v45 = vld [vmem:[#allocation25_spill] sm:$0xff] }
 0x24c   : > { %1537 = vst.msk [vmem:[#allocation3 + $0x88] sm:$0xff] %vm1519_vm7, %v1458_v9  ;;  %v1714_v46 = vpop.permute.xlu0 %1713  ;;  %v8817_v9 = vld [vmem:[#allocation20_spill] sm:$0xff]  ;;  %vm3697_vm7 = vcmask 162944  }
 0x24d   : > { %1668 = vst.msk [vmem:[#allocation3 + $0x88] sm:$0xff] %vm1650_vm9, %v8811_v24  ;;  %1964 = vrot.lane.b32.xlu1 %v8813_v4, %s5345_s24  ;;  %v8819_v4 = vld [vmem:[#allocation24_spill] sm:$0xff]  ;;  %vm3962_vm9 = vcmask 228544  }
 0x24e   : > { %1798 = vst.msk [vmem:[#allocation3 + $0x60] sm:$0xff] %vm1785_vm10, %v1714_v46  ;;  %1966 = vrot.lane.b32.xlu0 %v8816_v57, %s5345_s24 }
 0x24f   : > { %v1716_v5 = vpop.permute.xlu1 %1715 }
 0x250   : > { %1799 = vst.msk [vmem:[#allocation3 + $0x68] sm:$0xff] %vm1785_vm10, %v1716_v5  ;;  %v1718_v61 = vpop.permute.xlu0 %1717 }
 0x251   : > { %1968 = vrot.lane.b32.xlu1 %v8815_v40, %s5345_s24  ;;  %1800 = vst.msk [vmem:[#allocation3 + $0x70] sm:$0xff] %vm1785_vm10, %v1718_v61  ;;  %v8821_v40 = vld [vmem:[#allocation28_spill] sm:$0xff]  ;;  %v8822_v61 = vld [vmem:[#allocation6_spill] sm:$0xff] }
 0x252   : > { %1970 = vrot.lane.b32.xlu0 %v8818_v20, %s5345_s24 }
 0x253   : > { %v1720_v23 = vpop.permute.xlu1 %1719 }
 0x254   : > { %1801 = vst.msk [vmem:[#allocation3 + $0x78] sm:$0xff] %vm1785_vm10, %v1720_v23  ;;  %v1722_v25 = vpop.permute.xlu0 %1721 }
 0x255   : > { %1972 = vrot.lane.b32.xlu1 %v8817_v9, %s5345_s24  ;;  %1802 = vst.msk [vmem:[#allocation3 + $0x80] sm:$0xff] %vm1785_vm10, %v1722_v25  ;;  %v8823_v9 = vld [vmem:[#allocation7_spill] sm:$0xff]  ;;  %v8825_v25 = vld [vmem:[#allocation9_spill] sm:$0xff] }
 0x256   : > { %1974 = vrot.lane.b32.xlu0 %v8820_v45, %s5345_s24 }
 0x257   : > { %v1724_v24 = vpop.permute.xlu1 %1723 }
 0x258   : > { %1803 = vst.msk [vmem:[#allocation3 + $0x88] sm:$0xff] %vm1785_vm10, %v1724_v24  ;;  %v1726_v46 = vpop.permute.xlu0 %1725 }
 0x259   : > { %1976 = vrot.lane.b32.xlu1 %v8819_v4, %s5345_s24  ;;  %1804 = vst.msk [vmem:[#allocation3 + $0x90] sm:$0xff] %vm1785_vm10, %v1726_v46  ;;  %v8827_v46 = vld [vmem:[#allocation11_spill] sm:$0xff] }
 0x25a   : > { %1978 = vrot.lane.b32.xlu0 %v6127_v21, %s5345_s24  ;;  %v8824_v21 = vld [vmem:[#allocation8_spill] sm:$0xff] }
 0x25b   : > { %v1728_v5 = vpop.permute.xlu1 %1727 }
 0x25c   : > { %1805 = vst.msk [vmem:[#allocation3 + $0x98] sm:$0xff] %vm1785_vm10, %v1728_v5  ;;  %v1730_v23 = vpop.permute.xlu0 %1729  ;;  %v8826_v5 = vld [vmem:[#allocation10_spill] sm:$0xff] }
 0x25d   : > { %1980 = vrot.lane.b32.xlu1 %v8821_v40, %s5345_s24  ;;  %1806 = vst.msk [vmem:[#allocation3 + $0xa0] sm:$0xff] %vm1785_vm10, %v1730_v23  ;;  %v2384_v40 = vld [vmem:[%s8664_s3] sm:$0xff] }
 0x25e   : > { %1982 = vrot.lane.b32.xlu0 %v8823_v9, %s5345_s24 }
 0x25f   : > { %v1732_v57 = vpop.permute.xlu1 %1731 }
 0x260   : > { %1807 = vst.msk [vmem:[#allocation3 + $0xa8] sm:$0xff] %vm1785_vm10, %v1732_v57  ;;  %v1734_v24 = vpop.permute.xlu0 %1733  ;;  %v2385_v57 = vld [vmem:[%s8664_s3 + $0x8] sm:$0xff] }
 0x261   : > { %1984 = vrot.lane.b32.xlu1 %v8822_v61, %s5345_s24  ;;  %1808 = vst.msk [vmem:[#allocation3 + $0xb0] sm:$0xff] %vm1785_vm10, %v1734_v24  ;;  %v5275_v23 = vpack.c.bf16 %v2385_v57, %v2384_v40  ;;  %v8829_v24 = vld [vmem:[#allocation15_spill] sm:$0xff]  ;;  %v2388_v57 = vld [vmem:[%s8664_s3 + $0x20] sm:$0xff] }
 0x262   : > { %1986 = vrot.lane.b32.xlu0 %v8825_v25, %s5345_s24  ;;  %v2387_v25 = vld [vmem:[%s8664_s3 + $0x18] sm:$0xff]  ;;  %v8831_v40 = vld [vmem:[#allocation19_spill] sm:$0xff] }
 0x263   : > { %v1736_v20 = vpop.permute.xlu1 %1735  ;;  %5276 = vmatprep.subr.bf16.mxu1 %v5275_v23 }
 0x264   : > { %1809 = vst.msk [vmem:[#allocation3 + $0xb8] sm:$0xff] %vm1785_vm10, %v1736_v20  ;;  %v1738_v45 = vpop.permute.xlu0 %1737  ;;  %v8828_v20 = vld [vmem:[#allocation14_spill] sm:$0xff]  ;;  %5278 = vmatpush3.bf16.msra.mxu1 %v5275_v23  ;;  %v2389_v23 = vld [vmem:[%s8664_s3 + $0x28] sm:$0xff] }
 0x265   : > { %1988 = vrot.lane.b32.xlu1 %v8824_v21, %s5345_s24  ;;  %1810 = vst.msk [vmem:[#allocation3 + $0xc0] sm:$0xff] %vm1785_vm10, %v1738_v45  ;;  %v2386_v21 = vld [vmem:[%s8664_s3 + $0x10] sm:$0xff] }
 0x266   : > { %1990 = vrot.lane.b32.xlu0 %v8827_v46, %s5345_s24  ;;  %v8830_v46 = vld [vmem:[#allocation18_spill] sm:$0xff] }
 0x267   : > { %v1740_v4 = vpop.permute.xlu1 %1739 }
 0x268   : > { %1811 = vst.msk [vmem:[#allocation3 + $0xc8] sm:$0xff] %vm1785_vm10, %v1740_v4  ;;  %v1742_v9 = vpop.permute.xlu0 %1741  ;;  %v5279_v4 = vpack.c.bf16 %v2387_v25, %v2386_v21  ;;  %v8833_v21 = vld [vmem:[#allocation23_spill] sm:$0xff]  ;;  %v2390_v25 = vld [vmem:[%s8664_s3 + $0x30] sm:$0xff] }
 0x269   : > { %1992 = vrot.lane.b32.xlu1 %v8826_v5, %s5345_s24  ;;  %1812 = vst.msk [vmem:[#allocation3 + $0xd0] sm:$0xff] %vm1785_vm10, %v1742_v9 }
 0x26a   : > { %1994 = vrot.lane.b32.xlu0 %v8829_v24, %s5345_s24  ;;  %5280 = vmatprep.subr.bf16.mxu1 %v5279_v4  ;;  %v8832_v24 = vld [vmem:[#allocation22_spill] sm:$0xff] }
 0x26b   : > { %v1744_v61 = vpop.permute.xlu1 %1743  ;;  %5282 = vmatpush3.bf16.msra.mxu1 %v5279_v4  ;;  %v2391_v4 = vld [vmem:[%s8664_s3 + $0x38] sm:$0xff] }
 0x26c   : > { %1813 = vst.msk [vmem:[#allocation3 + $0xd8] sm:$0xff] %vm1785_vm10, %v1744_v61  ;;  %v1746_v5 = vpop.permute.xlu0 %1745  ;;  %v5283_v61 = vpack.c.bf16 %v2389_v23, %v2388_v57  ;;  %v8834_v57 = vld [vmem:[#allocation26_spill] sm:$0xff]  ;;  %v8835_v23 = vld [vmem:[#allocation27_spill] sm:$0xff] }
 0x26d   : > { %1996 = vrot.lane.b32.xlu1 %v8828_v20, %s5345_s24  ;;  %1814 = vst.msk [vmem:[#allocation3 + $0xe0] sm:$0xff] %vm1785_vm10, %v1746_v5 }
 0x26e   : > { %1998 = vrot.lane.b32.xlu0 %v8831_v40, %s5345_s24  ;;  %5284 = vmatprep.subr.bf16.mxu1 %v5283_v61  ;;  %v2392_v40 = vld [vmem:[%s8664_s3 + $0x40] sm:$0xff] }
 0x26f   : > { %v1748_v45 = vpop.permute.xlu1 %1747  ;;  %5286 = vmatpush3.bf16.msra.mxu1 %v5283_v61 }
 0x270   : > { %1815 = vst.msk [vmem:[#allocation3 + $0xe8] sm:$0xff] %vm1785_vm10, %v1748_v45  ;;  %v1750_v20 = vpop.permute.xlu0 %1749  ;;  %v5287_v45 = vpack.c.bf16 %v2391_v4, %v2390_v25 }
 0x271   : > { %2000 = vrot.lane.b32.xlu1 %v8830_v46, %s5345_s24  ;;  %1816 = vst.msk [vmem:[#allocation3 + $0xf0] sm:$0xff] %vm1785_vm10, %v1750_v20  ;;  %v8836_v20 = vld [vmem:[#allocation29_spill] sm:$0xff] }
 0x272   : > { %2002 = vrot.lane.b32.xlu0 %v8833_v21, %s5345_s24  ;;  %5288 = vmatprep.subr.bf16.mxu1 %v5287_v45 }
 0x273   : > { %v1752_v9 = vpop.permute.xlu1 %1751  ;;  %5290 = vmatpush3.bf16.msra.mxu1 %v5287_v45 }
 0x274   : > { %1817 = vst.msk [vmem:[#allocation3 + $0xf8] sm:$0xff] %vm1785_vm10, %v1752_v9  ;;  %v1824_v46 = vpop.permute.xlu0 %1823  ;;  %5151 = vmatprep.subr.mxu1 %v2392_v40  ;;  %vm4097_vm10 = vcmask 261344  }
 0x275   : > { %2004 = vrot.lane.b32.xlu1 %v8832_v24, %s5345_s24  ;;  %1920 = vst.msk [vmem:[#allocation3] sm:$0xff] %vm1919_vm11, %v1824_v46  ;;  %v8837_v24 = vld [vmem:[#allocation30_spill] sm:$0xff]  ;;  %v8839_v46 = vld [vmem:[#allocation32_spill] sm:$0xff] }
 0x276   : > { %2006 = vrot.lane.b32.xlu0 %v8835_v23, %s5345_s24  ;;  %v8840_v23 = vld [vmem:[#allocation33_spill] sm:$0xff] }
 0x277   : > { %v1826_v5 = vpop.permute.xlu1 %1825  ;;  %5152 = vmatpush3.msra.mxu1 %v2392_v40 }
 0x278   : > { %1921 = vst.msk [vmem:[#allocation3 + $0x8] sm:$0xff] %vm1919_vm11, %v1826_v5  ;;  %v1828_v9 = vpop.permute.xlu0 %1827  ;;  %v8838_v5 = vld [vmem:[#allocation31_spill] sm:$0xff] }
 0x279   : > { %2008 = vrot.lane.b32.xlu1 %v8834_v57, %s5345_s24  ;;  %1922 = vst.msk [vmem:[#allocation3 + $0x10] sm:$0xff] %vm1919_vm11, %v1828_v9 }
 0x27a   : > { %2089 = vrot.lane.b32.xlu0 %v8837_v24, %s5346_s12  ;;  %v8842_v24 = vld [vmem:[#allocation37_spill] sm:$0xff] }
 0x27b   : > { %v1830_v61 = vpop.permute.xlu1 %1829 }
 0x27c   : > { %1923 = vst.msk [vmem:[#allocation3 + $0x18] sm:$0xff] %vm1919_vm11, %v1830_v61  ;;  %v1832_v25 = vpop.permute.xlu0 %1831  ;;  %v8841_v61 = vld [vmem:[#allocation34_spill] sm:$0xff] }
 0x27d   : > { %2091 = vrot.lane.b32.xlu1 %v8836_v20, %s5346_s12  ;;  %1924 = vst.msk [vmem:[#allocation3 + $0x20] sm:$0xff] %vm1919_vm11, %v1832_v25 }
 0x27e   : > { %2223 = vrot.lane.b32.xlu0 %v6172_v0, %s5347_s13 }
 0x27f   : > { %v1834_v21 = vpop.permute.xlu1 %1833 }
 0x280   : > { %1925 = vst.msk [vmem:[#allocation3 + $0x28] sm:$0xff] %vm1919_vm11, %v1834_v21  ;;  %v1836_v45 = vpop.permute.xlu0 %1835  ;;  %v8843_v21 = vld [vmem:[#allocation38_spill] sm:$0xff] }
 0x281   : > { %2225 = vrot.lane.b32.xlu1 %v6169_v60, %s5347_s13  ;;  %1926 = vst.msk [vmem:[#allocation3 + $0x30] sm:$0xff] %vm1919_vm11, %v1836_v45  ;;  %v8844_v45 = vld [vmem:[#allocation39_spill] sm:$0xff] }
 0x282   : > { %2093 = vrot.lane.b32.xlu0 %v8839_v46, %s5346_s12 }
 0x283   : > { %v1838_v4 = vpop.permute.xlu1 %1837 }
 0x284   : > { %1927 = vst.msk [vmem:[#allocation3 + $0x38] sm:$0xff] %vm1919_vm11, %v1838_v4  ;;  %v1840_v57 = vpop.permute.xlu0 %1839 }
 0x285   : > { %2095 = vrot.lane.b32.xlu1 %v8838_v5, %s5346_s12  ;;  %1928 = vst.msk [vmem:[#allocation3 + $0x40] sm:$0xff] %vm1919_vm11, %v1840_v57  ;;  %v8845_v5 = vld [vmem:[#allocation40_spill] sm:$0xff] }
 0x286   : > { %2227 = vrot.lane.b32.xlu0 %v6232_v50, %s5347_s13 }
 0x287   : > { %v1842_v40 = vpop.permute.xlu1 %1841 }
 0x288   : > { %1929 = vst.msk [vmem:[#allocation3 + $0x48] sm:$0xff] %vm1919_vm11, %v1842_v40  ;;  %v1844_v0 = vpop.permute.xlu0 %1843 }
 0x289   : > { %2229 = vrot.lane.b32.xlu1 %v6229_v49, %s5347_s13  ;;  %1930 = vst.msk [vmem:[#allocation3 + $0x50] sm:$0xff] %vm1919_vm11, %v1844_v0 }
 0x28a   : > { %2097 = vrot.lane.b32.xlu0 %v8841_v61, %s5346_s12 }
 0x28b   : > { %v1846_v60 = vpop.permute.xlu1 %1845 }
 0x28c   : > { %1931 = vst.msk [vmem:[#allocation3 + $0x58] sm:$0xff] %vm1919_vm11, %v1846_v60  ;;  %v1848_v20 = vpop.permute.xlu0 %1847 }
 0x28d   : > { %2099 = vrot.lane.b32.xlu1 %v8840_v23, %s5346_s12  ;;  %1932 = vst.msk [vmem:[#allocation3 + $0x60] sm:$0xff] %vm1919_vm11, %v1848_v20 }
 0x28e   : > { %2231 = vrot.lane.b32.xlu0 %v6292_v42, %s5347_s13 }
 0x28f   : > { %v1850_v9 = vpop.permute.xlu1 %1849 }
 0x290   : > { %1933 = vst.msk [vmem:[#allocation3 + $0x68] sm:$0xff] %vm1919_vm11, %v1850_v9  ;;  %v1852_v50 = vpop.permute.xlu0 %1851 }
 0x291   : > { %2233 = vrot.lane.b32.xlu1 %v6289_v12, %s5347_s13  ;;  %1934 = vst.msk [vmem:[#allocation3 + $0x70] sm:$0xff] %vm1919_vm11, %v1852_v50 }
 0x292   : > { %2101 = vrot.lane.b32.xlu0 %v8843_v21, %s5346_s12 }
 0x293   : > { %v1854_v49 = vpop.permute.xlu1 %1853 }
 0x294   : > { %1935 = vst.msk [vmem:[#allocation3 + $0x78] sm:$0xff] %vm1919_vm11, %v1854_v49  ;;  %v1856_v4 = vpop.permute.xlu0 %1855 }
 0x295   : > { %2103 = vrot.lane.b32.xlu1 %v8842_v24, %s5346_s12  ;;  %1936 = vst.msk [vmem:[#allocation3 + $0x80] sm:$0xff] %vm1919_vm11, %v1856_v4 }
 0x296   : > { %2235 = vrot.lane.b32.xlu0 %v6362_v32, %s5347_s13 }
 0x297   : > { %v1858_v25 = vpop.permute.xlu1 %1857 }
 0x298   : > { %1937 = vst.msk [vmem:[#allocation3 + $0x88] sm:$0xff] %vm1919_vm11, %v1858_v25  ;;  %v1860_v42 = vpop.permute.xlu0 %1859 }
 0x299   : > { %2237 = vrot.lane.b32.xlu1 %v6359_v63, %s5347_s13  ;;  %1938 = vst.msk [vmem:[#allocation3 + $0x90] sm:$0xff] %vm1919_vm11, %v1860_v42 }
 0x29a   : > { %2105 = vrot.lane.b32.xlu0 %v8845_v5, %s5346_s12 }
 0x29b   : > { %v1862_v12 = vpop.permute.xlu1 %1861 }
 0x29c   : > { %1939 = vst.msk [vmem:[#allocation3 + $0x98] sm:$0xff] %vm1919_vm11, %v1862_v12  ;;  %v1864_v40 = vpop.permute.xlu0 %1863 }
 0x29d   : > { %2107 = vrot.lane.b32.xlu1 %v8844_v45, %s5346_s12  ;;  %1940 = vst.msk [vmem:[#allocation3 + $0xa0] sm:$0xff] %vm1919_vm11, %v1864_v40 }
 0x29e   : > { %2239 = vrot.lane.b32.xlu0 %v6436_v54, %s5347_s13 }
 0x29f   : > { %v1866_v46 = vpop.permute.xlu1 %1865 }
 0x2a0   : > { %1941 = vst.msk [vmem:[#allocation3 + $0xa8] sm:$0xff] %vm1919_vm11, %v1866_v46  ;;  %v1868_v32 = vpop.permute.xlu0 %1867 }
 0x2a1   : > { %2241 = vrot.lane.b32.xlu1 %v6433_v13, %s5347_s13  ;;  %1942 = vst.msk [vmem:[#allocation3 + $0xb0] sm:$0xff] %vm1919_vm11, %v1868_v32 }
 0x2a2   : > { %2109 = vrot.lane.b32.xlu0 %v6482_v55, %s5346_s12 }
 0x2a3   : > { %v1870_v63 = vpop.permute.xlu1 %1869 }
 0x2a4   : > { %1943 = vst.msk [vmem:[#allocation3 + $0xb8] sm:$0xff] %vm1919_vm11, %v1870_v63  ;;  %v1872_v60 = vpop.permute.xlu0 %1871 }
 0x2a5   : > { %2111 = vrot.lane.b32.xlu1 %v6479_v14, %s5346_s12  ;;  %1944 = vst.msk [vmem:[#allocation3 + $0xc0] sm:$0xff] %vm1919_vm11, %v1872_v60 }
 0x2a6   : > { %2243 = vrot.lane.b32.xlu0 %v6510_v56, %s5347_s13 }
 0x2a7   : > { %v1874_v57 = vpop.permute.xlu1 %1873 }
 0x2a8   : > { %1945 = vst.msk [vmem:[#allocation3 + $0xc8] sm:$0xff] %vm1919_vm11, %v1874_v57  ;;  %v1876_v54 = vpop.permute.xlu0 %1875 }
 0x2a9   : > { %2245 = vrot.lane.b32.xlu1 %v6507_v7, %s5347_s13  ;;  %1946 = vst.msk [vmem:[#allocation3 + $0xd0] sm:$0xff] %vm1919_vm11, %v1876_v54 }
 0x2aa   : > { %2113 = vrot.lane.b32.xlu0 %v6554_v18, %s5346_s12 }
 0x2ab   : > { %v1878_v13 = vpop.permute.xlu1 %1877 }
 0x2ac   : > { %1947 = vst.msk [vmem:[#allocation3 + $0xd8] sm:$0xff] %vm1919_vm11, %v1878_v13  ;;  %v1880_v55 = vpop.permute.xlu0 %1879 }
 0x2ad   : > { %2115 = vrot.lane.b32.xlu1 %v6551_v47, %s5346_s12  ;;  %1948 = vst.msk [vmem:[#allocation3 + $0xe0] sm:$0xff] %vm1919_vm11, %v1880_v55 }
 0x2ae   : > { %2247 = vrot.lane.b32.xlu0 %v6567_v33, %s5347_s13 }
 0x2af   : > { %v1882_v14 = vpop.permute.xlu1 %1881 }
 0x2b0   : > { %1949 = vst.msk [vmem:[#allocation3 + $0xe8] sm:$0xff] %vm1919_vm11, %v1882_v14  ;;  %v1884_v56 = vpop.permute.xlu0 %1883 }
 0x2b1   : > { %2249 = vrot.lane.b32.xlu1 %v6564_v19, %s5347_s13  ;;  %1950 = vst.msk [vmem:[#allocation3 + $0xf0] sm:$0xff] %vm1919_vm11, %v1884_v56 }
 0x2b2   : > { %2117 = vrot.lane.b32.xlu0 %v5995_v51, %s5346_s12 }
 0x2b3   : > { %v1886_v7 = vpop.permute.xlu1 %1885 }
 0x2b4   : > { %1951 = vst.msk [vmem:[#allocation3 + $0xf8] sm:$0xff] %vm1919_vm11, %v1886_v7  ;;  %v1955_v47 = vpop.permute.xlu0 %1954  ;;  %vm4231_vm11 = vcmask 294144  }
 0x2b5   : > { %2119 = vrot.lane.b32.xlu1 %v5992_v58, %s5346_s12  ;;  %2051 = vst.msk [vmem:[#allocation3] sm:$0xff] %vm2050_vm12, %v1955_v47 }
 0x2b6   : > { %2251 = vrot.lane.b32.xlu0 %v6076_v15, %s5347_s13 }
 0x2b7   : > { %v1957_v18 = vpop.permute.xlu1 %1956 }
 0x2b8   : > { %2052 = vst.msk [vmem:[#allocation3 + $0x8] sm:$0xff] %vm2050_vm12, %v1957_v18  ;;  %v1959_v33 = vpop.permute.xlu0 %1958 }
 0x2b9   : > { %2253 = vrot.lane.b32.xlu1 %v6073_v11, %s5347_s13  ;;  %2053 = vst.msk [vmem:[#allocation3 + $0x10] sm:$0xff] %vm2050_vm12, %v1959_v33 }
 0x2ba   : > { %2121 = vrot.lane.b32.xlu0 %v6160_v48, %s5346_s12 }
 0x2bb   : > { %v1961_v19 = vpop.permute.xlu1 %1960 }
 0x2bc   : > { %2054 = vst.msk [vmem:[#allocation3 + $0x18] sm:$0xff] %vm2050_vm12, %v1961_v19  ;;  %v1963_v51 = vpop.permute.xlu0 %1962 }
 0x2bd   : > { %2123 = vrot.lane.b32.xlu1 %v6157_v35, %s5346_s12  ;;  %2055 = vst.msk [vmem:[#allocation3 + $0x20] sm:$0xff] %vm2050_vm12, %v1963_v51 }
 0x2be   : > { %2255 = vrot.lane.b32.xlu0 %v6183_v2, %s5347_s13 }
 0x2bf   : > { %v1965_v58 = vpop.permute.xlu1 %1964 }
 0x2c0   : > { %2056 = vst.msk [vmem:[#allocation3 + $0x28] sm:$0xff] %vm2050_vm12, %v1965_v58  ;;  %v1967_v15 = vpop.permute.xlu0 %1966 }
 0x2c1   : > { %2257 = vrot.lane.b32.xlu1 %v6180_v1, %s5347_s13  ;;  %2057 = vst.msk [vmem:[#allocation3 + $0x30] sm:$0xff] %vm2050_vm12, %v1967_v15 }
 0x2c2   : > { %2125 = vrot.lane.b32.xlu0 %v6220_v31, %s5346_s12 }
 0x2c3   : > { %v1969_v11 = vpop.permute.xlu1 %1968 }
 0x2c4   : > { %2058 = vst.msk [vmem:[#allocation3 + $0x38] sm:$0xff] %vm2050_vm12, %v1969_v11  ;;  %v1971_v48 = vpop.permute.xlu0 %1970 }
 0x2c5   : > { %2127 = vrot.lane.b32.xlu1 %v6217_v30, %s5346_s12  ;;  %2059 = vst.msk [vmem:[#allocation3 + $0x40] sm:$0xff] %vm2050_vm12, %v1971_v48 }
 0x2c6   : > { %2259 = vrot.lane.b32.xlu0 %v6243_v3, %s5347_s13 }
 0x2c7   : > { %v1973_v35 = vpop.permute.xlu1 %1972 }
 0x2c8   : > { %2060 = vst.msk [vmem:[#allocation3 + $0x48] sm:$0xff] %vm2050_vm12, %v1973_v35  ;;  %v1975_v2 = vpop.permute.xlu0 %1974 }
 0x2c9   : > { %2261 = vrot.lane.b32.xlu1 %v6240_v52, %s5347_s13  ;;  %2061 = vst.msk [vmem:[#allocation3 + $0x50] sm:$0xff] %vm2050_vm12, %v1975_v2 }
 0x2ca   : > { %2129 = vrot.lane.b32.xlu0 %v6280_v37, %s5346_s12 }
 0x2cb   : > { %v1977_v1 = vpop.permute.xlu1 %1976 }
 0x2cc   : > { %2062 = vst.msk [vmem:[#allocation3 + $0x58] sm:$0xff] %vm2050_vm12, %v1977_v1  ;;  %v1979_v31 = vpop.permute.xlu0 %1978 }
 0x2cd   : > { %2131 = vrot.lane.b32.xlu1 %v6277_v59, %s5346_s12  ;;  %2063 = vst.msk [vmem:[#allocation3 + $0x60] sm:$0xff] %vm2050_vm12, %v1979_v31 }
 0x2ce   : > { %2263 = vrot.lane.b32.xlu0 %v6303_v43, %s5347_s13 }
 0x2cf   : > { %v1981_v30 = vpop.permute.xlu1 %1980 }
 0x2d0   : > { %2064 = vst.msk [vmem:[#allocation3 + $0x68] sm:$0xff] %vm2050_vm12, %v1981_v30  ;;  %v1983_v3 = vpop.permute.xlu0 %1982 }
 0x2d1   : > { %2265 = vrot.lane.b32.xlu1 %v6300_v53, %s5347_s13  ;;  %2065 = vst.msk [vmem:[#allocation3 + $0x70] sm:$0xff] %vm2050_vm12, %v1983_v3 }
 0x2d2   : > { %2133 = vrot.lane.b32.xlu0 %v6348_v6, %s5346_s12 }
 0x2d3   : > { %v1985_v52 = vpop.permute.xlu1 %1984 }
 0x2d4   : > { %2066 = vst.msk [vmem:[#allocation3 + $0x78] sm:$0xff] %vm2050_vm12, %v1985_v52  ;;  %v1987_v37 = vpop.permute.xlu0 %1986 }
 0x2d5   : > { %2135 = vrot.lane.b32.xlu1 %v6345_v39, %s5346_s12  ;;  %2067 = vst.msk [vmem:[#allocation3 + $0x80] sm:$0xff] %vm2050_vm12, %v1987_v37 }
 0x2d6   : > { %2267 = vrot.lane.b32.xlu0 %v6375_v27, %s5347_s13 }
 0x2d7   : > { %v1989_v59 = vpop.permute.xlu1 %1988 }
 0x2d8   : > { %2068 = vst.msk [vmem:[#allocation3 + $0x88] sm:$0xff] %vm2050_vm12, %v1989_v59  ;;  %v1991_v43 = vpop.permute.xlu0 %1990 }
 0x2d9   : > { %2269 = vrot.lane.b32.xlu1 %v6372_v26, %s5347_s13  ;;  %2069 = vst.msk [vmem:[#allocation3 + $0x90] sm:$0xff] %vm2050_vm12, %v1991_v43 }
 0x2da   : > { %2137 = vrot.lane.b32.xlu0 %v6422_v10, %s5346_s12 }
 0x2db   : > { %v1993_v53 = vpop.permute.xlu1 %1992 }
 0x2dc   : > { %2070 = vst.msk [vmem:[#allocation3 + $0x98] sm:$0xff] %vm2050_vm12, %v1993_v53  ;;  %v1995_v6 = vpop.permute.xlu0 %1994 }
 0x2dd   : > { %2139 = vrot.lane.b32.xlu1 %v6419_v22, %s5346_s12  ;;  %2071 = vst.msk [vmem:[#allocation3 + $0xa0] sm:$0xff] %vm2050_vm12, %v1995_v6  ;;  %v8846_v22 = vld [vmem:[#allocation41_spill] sm:$0xff] }
 0x2de   : > { %2271 = vrot.lane.b32.xlu0 %v6449_v16, %s5347_s13 }
 0x2df   : > { %v1997_v39 = vpop.permute.xlu1 %1996 }
 0x2e0   : > { %2072 = vst.msk [vmem:[#allocation3 + $0xa8] sm:$0xff] %vm2050_vm12, %v1997_v39  ;;  %v1999_v27 = vpop.permute.xlu0 %1998 }
 0x2e1   : > { %2273 = vrot.lane.b32.xlu1 %v6446_v38, %s5347_s13  ;;  %2073 = vst.msk [vmem:[#allocation3 + $0xb0] sm:$0xff] %vm2050_vm12, %v1999_v27 }
 0x2e2   : > { %2141 = vrot.lane.b32.xlu0 %v8846_v22, %s5346_s12 }
 0x2e3   : > { %v2001_v26 = vpop.permute.xlu1 %2000 }
 0x2e4   : > { %2074 = vst.msk [vmem:[#allocation3 + $0xb8] sm:$0xff] %vm2050_vm12, %v2001_v26  ;;  %v2003_v0 = vpop.permute.xlu0 %2002 }
 0x2e5   : > { %2143 = vrot.lane.b32.xlu1 %v6493_v44, %s5346_s12  ;;  %2075 = vst.msk [vmem:[#allocation3 + $0xc0] sm:$0xff] %vm2050_vm12, %v2003_v0 }
 0x2e6   : > { %2275 = vrot.lane.b32.xlu0 %v6523_v41, %s5347_s13 }
 0x2e7   : > { %v2005_v10 = vpop.permute.xlu1 %2004 }
 0x2e8   : > { %2076 = vst.msk [vmem:[#allocation3 + $0xc8] sm:$0xff] %vm2050_vm12, %v2005_v10  ;;  %v2007_v16 = vpop.permute.xlu0 %2006 }
 0x2e9   : > { %2277 = vrot.lane.b32.xlu1 %v6520_v62, %s5347_s13  ;;  %2077 = vst.msk [vmem:[#allocation3 + $0xd0] sm:$0xff] %vm2050_vm12, %v2007_v16 }
 0x2ea   : > { %2010 = vrot.lane.b32.xlu0 %v6539_v36, %s5345_s24  ;;  %v7052_v36 = vld [vmem:[#allocation2 + $0x198] sm:$0xff] }
 0x2eb   : > { %v2009_v38 = vpop.permute.xlu1 %2008 }
 0x2ec   : > { %2078 = vst.msk [vmem:[#allocation3 + $0xd8] sm:$0xff] %vm2050_vm12, %v2009_v38  ;;  %v2090_v23 = vpop.permute.xlu0 %2089 }
 0x2ed   : > { %2012 = vrot.lane.b32.xlu1 %v6537_v17, %s5345_s24  ;;  %2186 = vst.msk [vmem:[#allocation3] sm:$0xff] %vm2185_vm13, %v2090_v23  ;;  %v7050_v17 = vld [vmem:[#allocation2 + $0x1a0] sm:$0xff] }
 0x2ee   : > { %2145 = vrot.lane.b32.xlu0 %v6638_v34, %s5346_s12 }
 0x2ef   : > { %v2092_v44 = vpop.permute.xlu1 %2091 }
 0x2f0   : > { %2187 = vst.msk [vmem:[#allocation3 + $0x8] sm:$0xff] %vm2185_vm13, %v2092_v44  ;;  %v2224_v41 = vpop.permute.xlu0 %2223 }
 0x2f1   : > { %2147 = vrot.lane.b32.xlu1 %v6635_v8, %s5346_s12  ;;  %2320 = vst.msk [vmem:[#allocation3] sm:$0xff] %vm2319_vm14, %v2224_v41 }
 0x2f2   : > { %2279 = vrot.lane.b32.xlu0 %v6743_v29, %s5347_s13 }
 0x2f3   : > { %v2226_v62 = vpop.permute.xlu1 %2225 }
 0x2f4   : > { %2321 = vst.msk [vmem:[#allocation3 + $0x8] sm:$0xff] %vm2319_vm14, %v2226_v62  ;;  %v2094_v61 = vpop.permute.xlu0 %2093 }
 0x2f5   : > { %2281 = vrot.lane.b32.xlu1 %v6740_v28, %s5347_s13  ;;  %2188 = vst.msk [vmem:[#allocation3 + $0x10] sm:$0xff] %vm2185_vm13, %v2094_v61 }
 0x2f6   : > { %2014 = vrot.lane.b32.xlu0 %v7052_v36, %s5345_s24 }
 0x2f7   : > { %v2096_v8 = vpop.permute.xlu1 %2095 }
 0x2f8   : > { %2189 = vst.msk [vmem:[#allocation3 + $0x18] sm:$0xff] %vm2185_vm13, %v2096_v8  ;;  %v2228_v28 = vpop.permute.xlu0 %2227  ;;  %v2352_v29 = vld [vmem:[#allocation3] sm:$0xff] }
 0x2f9   : > { %2016 = vrot.lane.b32.xlu1 %v7050_v17, %s5345_s24  ;;  %2322 = vst.msk [vmem:[#allocation3 + $0x10] sm:$0xff] %vm2319_vm14, %v2228_v28  ;;  %5153 = vmatprep.mubr.msk.f32.mxu1 %vm2393_vm15, %v2352_v29 }
 0x2fb   : > { %v2230_v34 = vpop.permute.xlu1 %2229  ;;  %v2353_v9 = vld [vmem:[#allocation3 + $0x8] sm:$0xff] }
 0x2fc   : > { %2323 = vst.msk [vmem:[#allocation3 + $0x18] sm:$0xff] %vm2319_vm14, %v2230_v34  ;;  %5154 = vmatmul.mubr.msk.f32.vlgmr.msra.gmra.mrb[16].mxu1 %vm2393_vm15, %v2353_v9  ;;  %v2098_v49 = vpop.permute.xlu0 %2097 }
 0x2fd   : > { %2190 = vst.msk [vmem:[#allocation3 + $0x20] sm:$0xff] %vm2185_vm13, %v2098_v49 }
 0x2ff   : > { %v2100_v20 = vpop.permute.xlu1 %2099 }
 0x300   : > { %2191 = vst.msk [vmem:[#allocation3 + $0x28] sm:$0xff] %vm2185_vm13, %v2100_v20  ;;  %v2232_v24 = vpop.permute.xlu0 %2231  ;;  %v2354_v21 = vld [vmem:[#allocation3 + $0x10] sm:$0xff] }
 0x301   : > { %2324 = vst.msk [vmem:[#allocation3 + $0x20] sm:$0xff] %vm2319_vm14, %v2232_v24  ;;  %5156 = vmatprep.mubr.msk.f32.mxu1 %vm2393_vm15, %v2354_v21  ;;  %v2085_v21 = vrot.slane %v7050_v17, 1 }
 0x303   : > { %v2234_v50 = vpop.permute.xlu1 %2233  ;;  %v2355_v25 = vld [vmem:[#allocation3 + $0x18] sm:$0xff] }
 0x304   : > { %2325 = vst.msk [vmem:[#allocation3 + $0x28] sm:$0xff] %vm2319_vm14, %v2234_v50  ;;  %5157 = vmatmul.mubr.msk.f32.gmra.mrb[18].mxu1 %vm2393_vm15, %v2355_v25  ;;  %v2102_v12 = vpop.permute.xlu0 %2101  ;;  %v2219_v25 = vrot.slane %v7050_v17, 2 }
 0x305   : > { %2192 = vst.msk [vmem:[#allocation3 + $0x30] sm:$0xff] %vm2185_vm13, %v2102_v12  ;;  %v2218_v12 = vrot.slane %v7052_v36, 2 }
 0x307   : > { %v2104_v4 = vpop.permute.xlu1 %2103 }
 0x308   : > { %2193 = vst.msk [vmem:[#allocation3 + $0x38] sm:$0xff] %vm2185_vm13, %v2104_v4  ;;  %v2236_v45 = vpop.permute.xlu0 %2235  ;;  %v2356_v5 = vld [vmem:[#allocation3 + $0x20] sm:$0xff]  ;;  %v2084_v4 = vrot.slane %v7052_v36, 1 }
 0x309   : > { %2326 = vst.msk [vmem:[#allocation3 + $0x30] sm:$0xff] %vm2319_vm14, %v2236_v45  ;;  %5159 = vmatprep.mubr.msk.f32.mxu1 %vm2393_vm15, %v2356_v5  ;;  %v1051_v45 = vld [vmem:[#allocation2 + $0x1a8] sm:$0x3] }
 0x30a   : > { %v2086_v5 = vsel %vm1132_vm4, %v2084_v4, %v2085_v21 }
 0x30b   : > { %v2238_v42 = vpop.permute.xlu1 %2237  ;;  %v2357_v46 = vld [vmem:[#allocation3 + $0x28] sm:$0xff]  ;;  %2149 = vrot.lane.b32.xlu0 %v2086_v5, %s5346_s12 }
 0x30c   : > { %2327 = vst.msk [vmem:[#allocation3 + $0x38] sm:$0xff] %vm2319_vm14, %v2238_v42  ;;  %5160 = vmatmul.mubr.msk.f32.gmra.mrb[20].mxu1 %vm2393_vm15, %v2357_v46  ;;  %v2106_v63 = vpop.permute.xlu0 %2105  ;;  %v8847_v42 = vmov 0.0   ;;  %v2220_v46 = vsel %vm1342_vm5, %v2218_v12, %v2219_v25 }
 0x30d   : > { %2194 = vst.msk [vmem:[#allocation3 + $0x40] sm:$0xff] %vm2185_vm13, %v2106_v63  ;;  %v2221_v63 = vrot.slane %v1051_v45, 2 }
 0x30e   : > { %2831 = vst.msk [vmem:[#allocation4 + $0x28] sm:$0x3] %vm2827_vm0, %v8847_v42  ;;  %2828 = vst.msk [vmem:[#allocation4 + $0x10] sm:$0x3] %vm2827_vm0, %v8847_v42 }
 0x30f   : > { %v2108_v40 = vpop.permute.xlu1 %2107  ;;  %2834 = vst.msk [vmem:[#allocation4 + $0x40] sm:$0x3] %vm2827_vm0, %v8847_v42  ;;  %2837 = vst.msk [vmem:[#allocation4 + $0x58] sm:$0x3] %vm2827_vm0, %v8847_v42  ;;  %2283 = vrot.lane.b32.xlu0 %v2220_v46, %s5347_s13 }
 0x310   : > { %2195 = vst.msk [vmem:[#allocation3 + $0x48] sm:$0xff] %vm2185_vm13, %v2108_v40  ;;  %v2240_v57 = vpop.permute.xlu0 %2239  ;;  %v2358_v60 = vld [vmem:[#allocation3 + $0x30] sm:$0xff]  ;;  %v2087_v40 = vrot.slane %v1051_v45, 1 }
 0x311   : > { %2328 = vst.msk [vmem:[#allocation3 + $0x40] sm:$0xff] %vm2319_vm14, %v2240_v57  ;;  %5162 = vmatprep.mubr.msk.f32.mxu1 %vm2393_vm15, %v2358_v60 }
 0x312   : > { %2840 = vst.msk [vmem:[#allocation4 + $0x70] sm:$0x3] %vm2827_vm0, %v8847_v42  ;;  %2843 = vst.msk [vmem:[#allocation4 + $0x88] sm:$0x3] %vm2827_vm0, %v8847_v42 }
 0x313   : > { %v2242_v32 = vpop.permute.xlu1 %2241  ;;  %v2359_v13 = vld [vmem:[#allocation3 + $0x38] sm:$0xff]  ;;  %2846 = vst.msk [vmem:[#allocation4 + $0xa0] sm:$0x3] %vm2827_vm0, %v8847_v42  ;;  %2849 = vst.msk [vmem:[#allocation4 + $0xb8] sm:$0x3] %vm2827_vm0, %v8847_v42 }
 0x314   : > { %2329 = vst.msk [vmem:[#allocation3 + $0x48] sm:$0xff] %vm2319_vm14, %v2242_v32  ;;  %5163 = vmatmul.mubr.msk.f32.gmra.mrb[22].mxu1 %vm2393_vm15, %v2359_v13  ;;  %v2110_v14 = vpop.permute.xlu0 %2109 }
 0x315   : > { %2196 = vst.msk [vmem:[#allocation3 + $0x50] sm:$0xff] %vm2185_vm13, %v2110_v14  ;;  %v2222_v14 = vsel %vm1342_vm5, %v2219_v25, %v2221_v63 }
 0x316   : > { %2852 = vst.msk [vmem:[#allocation4 + $0xd0] sm:$0x3] %vm2827_vm0, %v8847_v42  ;;  %2855 = vst.msk [vmem:[#allocation4 + $0xe8] sm:$0x3] %vm2827_vm0, %v8847_v42 }
 0x317   : > { %v2112_v54 = vpop.permute.xlu1 %2111  ;;  %2858 = vst.msk [vmem:[#allocation4 + $0x100] sm:$0x3] %vm2827_vm0, %v8847_v42  ;;  %2861 = vst.msk [vmem:[#allocation4 + $0x118] sm:$0x3] %vm2827_vm0, %v8847_v42 }
 0x318   : > { %2197 = vst.msk [vmem:[#allocation3 + $0x58] sm:$0xff] %vm2185_vm13, %v2112_v54  ;;  %v2244_v7 = vpop.permute.xlu0 %2243  ;;  %v2360_v56 = vld [vmem:[#allocation3 + $0x40] sm:$0xff]  ;;  %v2088_v54 = vsel %vm1132_vm4, %v2085_v21, %v2087_v40 }
 0x319   : > { %2330 = vst.msk [vmem:[#allocation3 + $0x50] sm:$0xff] %vm2319_vm14, %v2244_v7  ;;  %5165 = vmatprep.mubr.msk.f32.mxu1 %vm2393_vm15, %v2360_v56  ;;  %2151 = vrot.lane.b32.xlu1 %v2088_v54, %s5346_s12  ;;  %v2914_v56 = vld [vmem:[#allocation4 + $0x8] sm:$0xff] }
 0x31a   : > { %2864 = vst.msk [vmem:[#allocation4 + $0x130] sm:$0x3] %vm2827_vm0, %v8847_v42  ;;  %2867 = vst.msk [vmem:[#allocation4 + $0x148] sm:$0x3] %vm2827_vm0, %v8847_v42 }
 0x31b   : > { %v2246_v55 = vpop.permute.xlu1 %2245  ;;  %v2361_v18 = vld [vmem:[#allocation3 + $0x48] sm:$0xff]  ;;  %2870 = vst.msk [vmem:[#allocation4 + $0x160] sm:$0x3] %vm2827_vm0, %v8847_v42  ;;  %2873 = vst.msk [vmem:[#allocation4 + $0x178] sm:$0x3] %vm2827_vm0, %v8847_v42 }
 0x31c   : > { %2331 = vst.msk [vmem:[#allocation3 + $0x58] sm:$0xff] %vm2319_vm14, %v2246_v55  ;;  %5166 = vmatmul.mubr.msk.f32.gmra.mrb[24].mxu1 %vm2393_vm15, %v2361_v18  ;;  %v2114_v19 = vpop.permute.xlu0 %2113  ;;  %v2915_v18 = vld [vmem:[#allocation4 + $0x10] sm:$0x3] }
 0x31d   : > { %2198 = vst.msk [vmem:[#allocation3 + $0x60] sm:$0xff] %vm2185_vm13, %v2114_v19  ;;  %2285 = vrot.lane.b32.xlu1 %v2222_v14, %s5347_s13  ;;  %v3048_v19 = vrot.slane %v2914_v56, 1 }
 0x31e   : > { %2876 = vst.msk [vmem:[#allocation4 + $0x190] sm:$0x3] %vm2827_vm0, %v8847_v42  ;;  %2879 = vst.msk [vmem:[#allocation4 + $0x1a8] sm:$0x3] %vm2827_vm0, %v8847_v42 }
 0x31f   : > { %v2116_v47 = vpop.permute.xlu1 %2115  ;;  %2968 = vst.msk [vmem:[#allocation5 + $0x8] sm:$0xff] %vm772_vm3, %v2914_v56 }
 0x320   : > { %2199 = vst.msk [vmem:[#allocation3 + $0x68] sm:$0xff] %vm2185_vm13, %v2116_v47  ;;  %v2248_v58 = vpop.permute.xlu0 %2247  ;;  %v2362_v51 = vld [vmem:[#allocation3 + $0x50] sm:$0xff]  ;;  %v2913_v47 = vld [vmem:[#allocation4] sm:$0xff] }
 0x321   : > { %2332 = vst.msk [vmem:[#allocation3 + $0x60] sm:$0xff] %vm2319_vm14, %v2248_v58  ;;  %5168 = vmatprep.mubr.msk.f32.mxu1 %vm2393_vm15, %v2362_v51  ;;  %v3047_v58 = vrot.slane %v2913_v47, 1  ;;  %v3256_v51 = vrot.slane %v2914_v56, 2 }
 0x322   : > { %2967 = vst.msk [vmem:[#allocation5] sm:$0xff] %vm772_vm3, %v2913_v47 }
 0x323   : > { %v2250_v33 = vpop.permute.xlu1 %2249  ;;  %v2363_v11 = vld [vmem:[#allocation3 + $0x58] sm:$0xff] }
 0x324   : > { %2333 = vst.msk [vmem:[#allocation3 + $0x68] sm:$0xff] %vm2319_vm14, %v2250_v33  ;;  %5169 = vmatmul.mubr.msk.f32.gmra.mrb[26].mxu1 %vm2393_vm15, %v2363_v11  ;;  %v2118_v35 = vpop.permute.xlu0 %2117  ;;  %v3050_v33 = vrot.slane %v2915_v18, 1  ;;  %v3258_v11 = vrot.slane %v2915_v18, 2 }
 0x325   : > { %2200 = vst.msk [vmem:[#allocation3 + $0x70] sm:$0xff] %vm2185_vm13, %v2118_v35 }
 0x327   : > { %v2120_v15 = vpop.permute.xlu1 %2119 }
 0x328   : > { %2201 = vst.msk [vmem:[#allocation3 + $0x78] sm:$0xff] %vm2185_vm13, %v2120_v15  ;;  %v2252_v1 = vpop.permute.xlu0 %2251  ;;  %v2364_v2 = vld [vmem:[#allocation3 + $0x60] sm:$0xff]  ;;  %v3255_v15 = vrot.slane %v2913_v47, 2 }
 0x329   : > { %2334 = vst.msk [vmem:[#allocation3 + $0x70] sm:$0xff] %vm2319_vm14, %v2252_v1  ;;  %5171 = vmatprep.mubr.msk.f32.mxu1 %vm2393_vm15, %v2364_v2 }
 0x32b   : > { %v2254_v48 = vpop.permute.xlu1 %2253  ;;  %v2365_v30 = vld [vmem:[#allocation3 + $0x68] sm:$0xff] }
 0x32c   : > { %2335 = vst.msk [vmem:[#allocation3 + $0x78] sm:$0xff] %vm2319_vm14, %v2254_v48  ;;  %5172 = vmatmul.mubr.msk.f32.gmra.mrb[28].mxu1 %vm2393_vm15, %v2365_v30  ;;  %v2122_v52 = vpop.permute.xlu0 %2121  ;;  %v3051_v30 = vsel %vm1132_vm4, %v3048_v19, %v3050_v33 }
 0x32d   : > { %2202 = vst.msk [vmem:[#allocation3 + $0x80] sm:$0xff] %vm2185_vm13, %v2122_v52  ;;  %3129 = vrot.lane.b32.xlu1 %v3051_v30, %s5338_s23  ;;  %v3259_v52 = vsel %vm1342_vm5, %v3256_v51, %v3258_v11 }
 0x32f   : > { %v2124_v31 = vpop.permute.xlu1 %2123 }
 0x330   : > { %2203 = vst.msk [vmem:[#allocation3 + $0x88] sm:$0xff] %vm2185_vm13, %v2124_v31  ;;  %v2256_v59 = vpop.permute.xlu0 %2255  ;;  %v2366_v37 = vld [vmem:[#allocation3 + $0x70] sm:$0xff]  ;;  %v3049_v31 = vsel %vm1132_vm4, %v3047_v58, %v3048_v19 }
 0x331   : > { %2336 = vst.msk [vmem:[#allocation3 + $0x80] sm:$0xff] %vm2319_vm14, %v2256_v59  ;;  %5174 = vmatprep.mubr.msk.f32.mxu1 %vm2393_vm15, %v2366_v37  ;;  %3127 = vrot.lane.b32.xlu0 %v3049_v31, %s5338_s23 }
 0x332   : > { %3337 = vrot.lane.b32.xlu1 %v3259_v52, %s5340_s22 }
 0x333   : > { %v2258_v3 = vpop.permute.xlu1 %2257  ;;  %v2367_v53 = vld [vmem:[#allocation3 + $0x78] sm:$0xff] }
 0x334   : > { %2337 = vst.msk [vmem:[#allocation3 + $0x88] sm:$0xff] %vm2319_vm14, %v2258_v3  ;;  %5175 = vmatmul.mubr.msk.f32.gmra.mrb[30].mxu1 %vm2393_vm15, %v2367_v53  ;;  %v2126_v39 = vpop.permute.xlu0 %2125  ;;  %v3257_v3 = vsel %vm1342_vm5, %v3255_v15, %v3256_v51 }
 0x335   : > { %2204 = vst.msk [vmem:[#allocation3 + $0x90] sm:$0xff] %vm2185_vm13, %v2126_v39  ;;  %3335 = vrot.lane.b32.xlu0 %v3257_v3, %s5340_s22 }
 0x337   : > { %v2128_v43 = vpop.permute.xlu1 %2127 }
 0x338   : > { %2205 = vst.msk [vmem:[#allocation3 + $0x98] sm:$0xff] %vm2185_vm13, %v2128_v43  ;;  %v2260_v26 = vpop.permute.xlu0 %2259  ;;  %v2368_v27 = vld [vmem:[#allocation3 + $0x80] sm:$0xff] }
 0x339   : > { %2338 = vst.msk [vmem:[#allocation3 + $0x90] sm:$0xff] %vm2319_vm14, %v2260_v26  ;;  %5177 = vmatprep.mubr.msk.f32.mxu1 %vm2393_vm15, %v2368_v27  ;;  %v7210_v27 = vld [vmem:[%s8665_s4] ss:$0 sm:$0xff] }
 0x33b   : > { %v2262_v6 = vpop.permute.xlu1 %2261  ;;  %v2369_v22 = vld [vmem:[#allocation3 + $0x88] sm:$0xff] }
 0x33c   : > { %2339 = vst.msk [vmem:[#allocation3 + $0x98] sm:$0xff] %vm2319_vm14, %v2262_v6  ;;  %5178 = vmatmul.mubr.msk.f32.gmra.mrb[32].mxu1 %vm2393_vm15, %v2369_v22  ;;  %v2130_v0 = vpop.permute.xlu0 %2129 }
 0x33d   : > { %2206 = vst.msk [vmem:[#allocation3 + $0xa0] sm:$0xff] %vm2185_vm13, %v2130_v0 }
 0x33f   : > { %v2132_v10 = vpop.permute.xlu1 %2131 }
 0x340   : > { %2207 = vst.msk [vmem:[#allocation3 + $0xa8] sm:$0xff] %vm2185_vm13, %v2132_v10  ;;  %v2264_v16 = vpop.permute.xlu0 %2263  ;;  %v2370_v44 = vld [vmem:[#allocation3 + $0x90] sm:$0xff] }
 0x341   : > { %2340 = vst.msk [vmem:[#allocation3 + $0xa0] sm:$0xff] %vm2319_vm14, %v2264_v16  ;;  %5180 = vmatprep.mubr.msk.f32.mxu1 %vm2393_vm15, %v2370_v44 }
 0x343   : > { %v2266_v38 = vpop.permute.xlu1 %2265  ;;  %v2371_v23 = vld [vmem:[#allocation3 + $0x98] sm:$0xff] }
 0x344   : > { %2341 = vst.msk [vmem:[#allocation3 + $0xa8] sm:$0xff] %vm2319_vm14, %v2266_v38  ;;  %5181 = vmatmul.mubr.msk.f32.gmra.mrb[34].mxu1 %vm2393_vm15, %v2371_v23  ;;  %v2134_v41 = vpop.permute.xlu0 %2133  ;;  %v7216_v38 = vld [vmem:[%s8666_s5] ss:$0 sm:$0xff] }
 0x345   : > { %2208 = vst.msk [vmem:[#allocation3 + $0xb0] sm:$0xff] %vm2185_vm13, %v2134_v41 }
 0x347   : > { %v2136_v62 = vpop.permute.xlu1 %2135 }
 0x348   : > { %2209 = vst.msk [vmem:[#allocation3 + $0xb8] sm:$0xff] %vm2185_vm13, %v2136_v62  ;;  %v2268_v61 = vpop.permute.xlu0 %2267  ;;  %v2372_v34 = vld [vmem:[#allocation3 + $0xa0] sm:$0xff] }
 0x349   : > { %2342 = vst.msk [vmem:[#allocation3 + $0xb0] sm:$0xff] %vm2319_vm14, %v2268_v61  ;;  %5183 = vmatprep.mubr.msk.f32.mxu1 %vm2393_vm15, %v2372_v34 }
 0x34b   : > { %v2270_v8 = vpop.permute.xlu1 %2269  ;;  %v2373_v28 = vld [vmem:[#allocation3 + $0xa8] sm:$0xff] }
 0x34c   : > { %2343 = vst.msk [vmem:[#allocation3 + $0xb8] sm:$0xff] %vm2319_vm14, %v2270_v8  ;;  %5184 = vmatmul.mubr.msk.f32.gmra.mrb[36].mxu1 %vm2393_vm15, %v2373_v28  ;;  %v2138_v9 = vpop.permute.xlu0 %2137 }
 0x34d   : > { %2210 = vst.msk [vmem:[#allocation3 + $0xc0] sm:$0xff] %vm2185_vm13, %v2138_v9 }
 0x34f   : > { %v2140_v29 = vpop.permute.xlu1 %2139 }
 0x350   : > { %2211 = vst.msk [vmem:[#allocation3 + $0xc8] sm:$0xff] %vm2185_vm13, %v2140_v29  ;;  %v2272_v49 = vpop.permute.xlu0 %2271  ;;  %v2374_v50 = vld [vmem:[#allocation3 + $0xb0] sm:$0xff] }
 0x351   : > { %2344 = vst.msk [vmem:[#allocation3 + $0xc0] sm:$0xff] %vm2319_vm14, %v2272_v49  ;;  %5186 = vmatprep.mubr.msk.f32.mxu1 %vm2393_vm15, %v2374_v50 }
 0x353   : > { %v2274_v20 = vpop.permute.xlu1 %2273  ;;  %v2375_v24 = vld [vmem:[#allocation3 + $0xb8] sm:$0xff] }
 0x354   : > { %2345 = vst.msk [vmem:[#allocation3 + $0xc8] sm:$0xff] %vm2319_vm14, %v2274_v20  ;;  %5187 = vmatmul.mubr.msk.f32.gmra.mrb[38].mxu1 %vm2393_vm15, %v2375_v24  ;;  %v2142_v36 = vpop.permute.xlu0 %2141 }
 0x355   : > { %2212 = vst.msk [vmem:[#allocation3 + $0xd0] sm:$0xff] %vm2185_vm13, %v2142_v36 }
 0x357   : > { %v2144_v17 = vpop.permute.xlu1 %2143 }
 0x358   : > { %2213 = vst.msk [vmem:[#allocation3 + $0xd8] sm:$0xff] %vm2185_vm13, %v2144_v17  ;;  %v2276_v57 = vpop.permute.xlu0 %2275  ;;  %v2376_v60 = vld [vmem:[#allocation3 + $0xc0] sm:$0xff] }
 0x359   : > { %2346 = vst.msk [vmem:[#allocation3 + $0xd0] sm:$0xff] %vm2319_vm14, %v2276_v57  ;;  %5189 = vmatprep.mubr.msk.f32.mxu1 %vm2393_vm15, %v2376_v60 }
 0x35b   : > { %v2278_v32 = vpop.permute.xlu1 %2277  ;;  %v2377_v13 = vld [vmem:[#allocation3 + $0xc8] sm:$0xff] }
 0x35c   : > { %2347 = vst.msk [vmem:[#allocation3 + $0xd8] sm:$0xff] %vm2319_vm14, %v2278_v32  ;;  %5190 = vmatmul.mubr.msk.f32.gmra.mrb[40].mxu1 %vm2393_vm15, %v2377_v13  ;;  %v2011_v7 = vpop.permute.xlu0 %2010 }
 0x35d   : > { %2079 = vst.msk [vmem:[#allocation3 + $0xe0] sm:$0xff] %vm2050_vm12, %v2011_v7 }
 0x35f   : > { %v2013_v55 = vpop.permute.xlu1 %2012 }
 0x360   : > { %2080 = vst.msk [vmem:[#allocation3 + $0xe8] sm:$0xff] %vm2050_vm12, %v2013_v55  ;;  %v2146_v48 = vpop.permute.xlu0 %2145  ;;  %v2378_v1 = vld [vmem:[#allocation3 + $0xd0] sm:$0xff] }
 0x361   : > { %2214 = vst.msk [vmem:[#allocation3 + $0xe0] sm:$0xff] %vm2185_vm13, %v2146_v48  ;;  %5192 = vmatprep.mubr.msk.f32.mxu1 %vm2393_vm15, %v2378_v1 }
 0x363   : > { %v2148_v35 = vpop.permute.xlu1 %2147  ;;  %v2379_v2 = vld [vmem:[#allocation3 + $0xd8] sm:$0xff] }
 0x364   : > { %2215 = vst.msk [vmem:[#allocation3 + $0xe8] sm:$0xff] %vm2185_vm13, %v2148_v35  ;;  %5193 = vmatmul.mubr.msk.f32.gmra.mrb[42].mxu1 %vm2393_vm15, %v2379_v2  ;;  %v2280_v37 = vpop.permute.xlu0 %2279 }
 0x365   : > { %2348 = vst.msk [vmem:[#allocation3 + $0xe0] sm:$0xff] %vm2319_vm14, %v2280_v37 }
 0x367   : > { %v2282_v59 = vpop.permute.xlu1 %2281 }
 0x368   : > { %2349 = vst.msk [vmem:[#allocation3 + $0xe8] sm:$0xff] %vm2319_vm14, %v2282_v59  ;;  %v2015_v6 = vpop.permute.xlu0 %2014 }
 0x369   : > { %2081 = vst.msk [vmem:[#allocation3 + $0xf0] sm:$0xff] %vm2050_vm12, %v2015_v6 }
 0x36b   : > { %v2017_v39 = vpop.permute.xlu1 %2016 }
 0x36c   : > { %v2380_v53 = vld [vmem:[#allocation3 + $0xe0] sm:$0xff]  ;;  %2082 = vst.msk [vmem:[#allocation3 + $0xf8] sm:$0xff] %vm2050_vm12, %v2017_v39  ;;  %vm4301_vm12 = vcmask 293888  }
 0x36d   : > { %5195 = vmatprep.mubr.msk.f32.mxu1 %vm2393_vm15, %v2380_v53 }
 0x36f   : > { %v2381_v43 = vld [vmem:[#allocation3 + $0xe8] sm:$0xff] }
 0x370   : > { %5196 = vmatmul.mubr.msk.f32.gmra.mrb[44].mxu1 %vm2393_vm15, %v2381_v43 }
 0x37d   : > { %v2150_v26 = vpop.permute.xlu0 %2149 }
 0x37e   : > { %2216 = vst.msk [vmem:[#allocation3 + $0xf0] sm:$0xff] %vm2185_vm13, %v2150_v26 }
 0x381   : > { %v2284_v10 = vpop.permute.xlu0 %2283 }
 0x382   : > { %2350 = vst.msk [vmem:[#allocation3 + $0xf0] sm:$0xff] %vm2319_vm14, %v2284_v10 }
 0x38b   : > { %v2152_v22 = vpop.permute.xlu1 %2151 }
 0x38c   : > { %2217 = vst.msk [vmem:[#allocation3 + $0xf8] sm:$0xff] %vm2185_vm13, %v2152_v22 }
 0x38f   : > { %v2286_v62 = vpop.permute.xlu1 %2285 }
 0x390   : > { %2351 = vst.msk [vmem:[#allocation3 + $0xf8] sm:$0xff] %vm2319_vm14, %v2286_v62 }
 0x39f   : > { %v3130_v28 = vpop.permute.xlu1 %3129 }
 0x3a0   : > { %3224 = vst.msk [vmem:[#allocation5 + $0x8] sm:$0xff] %vm965_vm8, %v3130_v28 }
 0x3a3   : > { %v3128_v29 = vpop.permute.xlu0 %3127 }
 0x3a4   : > { %3223 = vst.msk [vmem:[#allocation5] sm:$0xff] %vm965_vm8, %v3128_v29  ;;  %v3338_v24 = vpop.permute.xlu1 %3337 }
 0x3a5   : > { %3433 = vst.msk [vmem:[#allocation5 + $0x8] sm:$0xff] %vm3431_vm1, %v3338_v24 }
 0x3a7   : > { %v3336_v25 = vpop.permute.xlu0 %3335 }
 0x3a8   : > { %3432 = vst.msk [vmem:[#allocation5] sm:$0xff] %vm3431_vm1, %v3336_v25 }
 0x3cf   : > { %v5155_v0 = vpop.f32.mrb[16].mxu1 }
 0x3d0   : > { %v2723_v16 = vmul.f32 %v5155_v0, %v7210_v27  ;;  %v2556_v44 = vpop.f32.mrb[17].mxu1 }
 0x3d1   : > { %v2722_v23 = vmul.f32 %v7210_v27, %v2556_v44 }
 0x3d2   : > { %v2762_v41 = vadd.f32 %v7216_v38, %v2723_v16 }
 0x3d3   : > { %v2761_v8 = vadd.f32 %v7216_v38, %v2722_v23 }
 0x3d4   : > { %v2794_v61 = vmax.f32 %v2762_v41, 0.0 }
 0x3d5   : > { %v2793_v34 = vmax.f32 %v2761_v8, 0.0 }
 0x3d6   : > { %2882 = vst.msk [vmem:[#allocation4 + $0x21] sm:$0xff] %vm772_vm3, %v2794_v61 }
 0x3d7   : > { %2881 = vst.msk [vmem:[#allocation4 + $0x19] sm:$0xff] %vm772_vm3, %v2793_v34  ;;  %v5158_v9 = vpop.f32.mrb[18].mxu1 }
 0x3d8   : > { %v2725_v20 = vmul.f32 %v5158_v9, %v7210_v27  ;;  %v2566_v49 = vpop.f32.mrb[19].mxu1 }
 0x3d9   : > { %v2724_v50 = vmul.f32 %v7210_v27, %v2566_v49 }
 0x3da   : > { %v2764_v21 = vadd.f32 %v7216_v38, %v2725_v20 }
 0x3db   : > { %v2763_v4 = vadd.f32 %v7216_v38, %v2724_v50 }
 0x3dc   : > { %v2796_v12 = vmax.f32 %v2764_v21, 0.0 }
 0x3dd   : > { %v2795_v42 = vmax.f32 %v2763_v4, 0.0  ;;  %v2918_v17 = vld [vmem:[#allocation4 + $0x28] sm:$0x3] }
 0x3de   : > { %2884 = vst.msk [vmem:[#allocation4 + $0x39] sm:$0xff] %vm772_vm3, %v2796_v12  ;;  %v7235_v36 = vld [vmem:[#allocation4 + $0x20] sm:$0xff]  ;;  %v3055_v45 = vrot.slane %v2918_v17, 1  ;;  %v7237_v5 = vld [vmem:[#allocation4 + $0x18] sm:$0xff]  ;;  %v3263_v13 = vrot.slane %v2918_v17, 2 }
 0x3df   : > { %2883 = vst.msk [vmem:[#allocation4 + $0x31] sm:$0xff] %vm772_vm3, %v2795_v42  ;;  %v5161_v46 = vpop.f32.mrb[20].mxu1  ;;  %v3053_v40 = vrot.slane %v7235_v36, 1  ;;  %2970 = vst.msk [vmem:[#allocation5 + $0x18] sm:$0xff] %vm772_vm3, %v7235_v36  ;;  %v3052_v63 = vrot.slane %v7237_v5, 1  ;;  %v3261_v60 = vrot.slane %v7235_v36, 2 }
 0x3e0   : > { %2969 = vst.msk [vmem:[#allocation5 + $0x10] sm:$0xff] %vm772_vm3, %v7237_v5  ;;  %v2727_v32 = vmul.f32 %v5161_v46, %v7210_v27  ;;  %v2576_v57 = vpop.f32.mrb[21].mxu1  ;;  %v3260_v7 = vrot.slane %v7237_v5, 2  ;;  %v2382_v46 = vld [vmem:[#allocation3 + $0xf0] sm:$0xff] }
 0x3e1   : > { %v2726_v54 = vmul.f32 %v7210_v27, %v2576_v57  ;;  %v7250_v14 = vsel %vm1132_vm4, %v3053_v40, %v3055_v45  ;;  %v7253_v55 = vsel %vm1132_vm4, %v3052_v63, %v3053_v40  ;;  %v7263_v33 = vsel %vm1342_vm5, %v3261_v60, %v3263_v13  ;;  %v2383_v40 = vld [vmem:[#allocation3 + $0xf8] sm:$0xff]  ;;  %5198 = vmatprep.mubr.msk.f32.mxu1 %vm2393_vm15, %v2382_v46 }
 0x3e2   : > { %v2766_v56 = vadd.f32 %v7216_v38, %v2727_v32  ;;  %3133 = vrot.lane.b32.xlu1 %v7250_v14, %s5338_s23  ;;  %3131 = vrot.lane.b32.xlu0 %v7253_v55, %s5338_s23  ;;  %v7266_v58 = vsel %vm1342_vm5, %v3260_v7, %v3261_v60 }
 0x3e3   : > { %v2765_v18 = vadd.f32 %v7216_v38, %v2726_v54  ;;  %5199 = vmatmul.mubr.msk.f32.gmra.mrb[46].mxu1 %vm2393_vm15, %v2383_v40 }
 0x3e4   : > { %v2798_v47 = vmax.f32 %v2766_v56, 0.0 }
 0x3e5   : > { %v2797_v19 = vmax.f32 %v2765_v18, 0.0  ;;  %v2921_v51 = vld [vmem:[#allocation4 + $0x40] sm:$0x3] }
 0x3e6   : > { %2886 = vst.msk [vmem:[#allocation4 + $0x51] sm:$0xff] %vm772_vm3, %v2798_v47  ;;  %3341 = vrot.lane.b32.xlu1 %v7263_v33, %s5340_s22  ;;  %3339 = vrot.lane.b32.xlu0 %v7266_v58, %s5340_s22  ;;  %v7273_v11 = vld [vmem:[#allocation4 + $0x38] sm:$0xff]  ;;  %v3060_v15 = vrot.slane %v2921_v51, 1  ;;  %v7275_v35 = vld [vmem:[#allocation4 + $0x30] sm:$0xff]  ;;  %v3268_v3 = vrot.slane %v2921_v51, 2 }
 0x3e7   : > { %2885 = vst.msk [vmem:[#allocation4 + $0x49] sm:$0xff] %vm772_vm3, %v2797_v19  ;;  %v5164_v48 = vpop.f32.mrb[22].mxu1  ;;  %v3058_v1 = vrot.slane %v7273_v11, 1  ;;  %2972 = vst.msk [vmem:[#allocation5 + $0x28] sm:$0xff] %vm772_vm3, %v7273_v11  ;;  %v3057_v2 = vrot.slane %v7275_v35, 1  ;;  %v3266_v52 = vrot.slane %v7273_v11, 2 }
 0x3e8   : > { %2971 = vst.msk [vmem:[#allocation5 + $0x20] sm:$0xff] %vm772_vm3, %v7275_v35  ;;  %v2729_v30 = vmul.f32 %v5164_v48, %v7210_v27  ;;  %v2586_v31 = vpop.f32.mrb[23].mxu1  ;;  %v3265_v43 = vrot.slane %v7275_v35, 2 }
 0x3e9   : > { %v2728_v59 = vmul.f32 %v7210_v27, %v2586_v31  ;;  %v7288_v37 = vsel %vm1132_vm4, %v3058_v1, %v3060_v15  ;;  %v7291_v53 = vsel %vm1132_vm4, %v3057_v2, %v3058_v1  ;;  %v7301_v10 = vsel %vm1342_vm5, %v3266_v52, %v3268_v3 }
 0x3ea   : > { %v2768_v39 = vadd.f32 %v7216_v38, %v2729_v30  ;;  %3137 = vrot.lane.b32.xlu1 %v7288_v37, %s5338_s23  ;;  %3135 = vrot.lane.b32.xlu0 %v7291_v53, %s5338_s23  ;;  %v7304_v0 = vsel %vm1342_vm5, %v3265_v43, %v3266_v52 }
 0x3eb   : > { %v2767_v6 = vadd.f32 %v7216_v38, %v2728_v59 }
 0x3ec   : > { %v2800_v26 = vmax.f32 %v2768_v39, 0.0 }
 0x3ed   : > { %v2799_v22 = vmax.f32 %v2767_v6, 0.0  ;;  %v2924_v16 = vld [vmem:[#allocation4 + $0x58] sm:$0x3] }
 0x3ee   : > { %2888 = vst.msk [vmem:[#allocation4 + $0x69] sm:$0xff] %vm772_vm3, %v2800_v26  ;;  %3345 = vrot.lane.b32.xlu1 %v7301_v10, %s5340_s22  ;;  %3343 = vrot.lane.b32.xlu0 %v7304_v0, %s5340_s22  ;;  %v7311_v44 = vld [vmem:[#allocation4 + $0x50] sm:$0xff]  ;;  %v3065_v23 = vrot.slane %v2924_v16, 1  ;;  %v7313_v62 = vld [vmem:[#allocation4 + $0x48] sm:$0xff]  ;;  %v3273_v9 = vrot.slane %v2924_v16, 2 }
 0x3ef   : > { %2887 = vst.msk [vmem:[#allocation4 + $0x61] sm:$0xff] %vm772_vm3, %v2799_v22  ;;  %v5167_v41 = vpop.f32.mrb[24].mxu1  ;;  %v3063_v8 = vrot.slane %v7311_v44, 1  ;;  %2974 = vst.msk [vmem:[#allocation5 + $0x38] sm:$0xff] %vm772_vm3, %v7311_v44  ;;  %v3062_v61 = vrot.slane %v7313_v62, 1  ;;  %v3271_v29 = vrot.slane %v7311_v44, 2 }
 0x3f0   : > { %2973 = vst.msk [vmem:[#allocation5 + $0x30] sm:$0xff] %vm772_vm3, %v7313_v62  ;;  %v2731_v34 = vmul.f32 %v5167_v41, %v7210_v27  ;;  %v2596_v28 = vpop.f32.mrb[25].mxu1  ;;  %v3270_v24 = vrot.slane %v7313_v62, 2 }
 0x3f1   : > { %v2730_v20 = vmul.f32 %v7210_v27, %v2596_v28  ;;  %v7326_v49 = vsel %vm1132_vm4, %v3063_v8, %v3065_v23  ;;  %v7329_v50 = vsel %vm1132_vm4, %v3062_v61, %v3063_v8  ;;  %v7339_v42 = vsel %vm1342_vm5, %v3271_v29, %v3273_v9 }
 0x3f2   : > { %v2770_v21 = vadd.f32 %v7216_v38, %v2731_v34  ;;  %3141 = vrot.lane.b32.xlu1 %v7326_v49, %s5338_s23  ;;  %3139 = vrot.lane.b32.xlu0 %v7329_v50, %s5338_s23  ;;  %v7342_v17 = vsel %vm1342_vm5, %v3270_v24, %v3271_v29 }
 0x3f3   : > { %v2769_v25 = vadd.f32 %v7216_v38, %v2730_v20 }
 0x3f4   : > { %v2802_v4 = vmax.f32 %v2770_v21, 0.0 }
 0x3f5   : > { %v2801_v12 = vmax.f32 %v2769_v25, 0.0  ;;  %v2927_v45 = vld [vmem:[#allocation4 + $0x70] sm:$0x3] }
 0x3f6   : > { %2890 = vst.msk [vmem:[#allocation4 + $0x81] sm:$0xff] %vm772_vm3, %v2802_v4  ;;  %3349 = vrot.lane.b32.xlu1 %v7339_v42, %s5340_s22  ;;  %3347 = vrot.lane.b32.xlu0 %v7342_v17, %s5340_s22  ;;  %v7349_v63 = vld [vmem:[#allocation4 + $0x68] sm:$0xff]  ;;  %v3070_v32 = vrot.slane %v2927_v45, 1  ;;  %v7351_v57 = vld [vmem:[#allocation4 + $0x60] sm:$0xff]  ;;  %v3278_v47 = vrot.slane %v2927_v45, 2 }
 0x3f7   : > { %2889 = vst.msk [vmem:[#allocation4 + $0x79] sm:$0xff] %vm772_vm3, %v2801_v12  ;;  %v5170_v60 = vpop.f32.mrb[26].mxu1  ;;  %v3068_v13 = vrot.slane %v7349_v63, 1  ;;  %2976 = vst.msk [vmem:[#allocation5 + $0x48] sm:$0xff] %vm772_vm3, %v7349_v63  ;;  %v3067_v54 = vrot.slane %v7351_v57, 1  ;;  %v3276_v18 = vrot.slane %v7349_v63, 2 }
 0x3f8   : > { %2975 = vst.msk [vmem:[#allocation5 + $0x40] sm:$0xff] %vm772_vm3, %v7351_v57  ;;  %v2733_v7 = vmul.f32 %v5170_v60, %v7210_v27  ;;  %v2606_v56 = vpop.f32.mrb[27].mxu1  ;;  %v3275_v48 = vrot.slane %v7351_v57, 2 }
 0x3f9   : > { %v2732_v19 = vmul.f32 %v7210_v27, %v2606_v56  ;;  %v7366_v51 = vsel %vm1132_vm4, %v3068_v13, %v3070_v32  ;;  %v7369_v15 = vsel %vm1132_vm4, %v3067_v54, %v3068_v13  ;;  %v7379_v52 = vsel %vm1342_vm5, %v3276_v18, %v3278_v47 }
 0x3fa   : > { %v2772_v1 = vadd.f32 %v7216_v38, %v2733_v7  ;;  %3145 = vrot.lane.b32.xlu1 %v7366_v51, %s5338_s23  ;;  %3143 = vrot.lane.b32.xlu0 %v7369_v15, %s5338_s23  ;;  %8848 = vst [vmem:[#allocation35_spill] sm:$0xff] %v7379_v52  ;;  %v7382_v3 = vsel %vm1342_vm5, %v3275_v48, %v3276_v18 }
 0x3fb   : > { %v2771_v2 = vadd.f32 %v7216_v38, %v2732_v19 }
 0x3fc   : > { %v2804_v30 = vmax.f32 %v2772_v1, 0.0 }
 0x3fd   : > { %v2803_v31 = vmax.f32 %v2771_v2, 0.0  ;;  %v2930_v59 = vld [vmem:[#allocation4 + $0x88] sm:$0x3] }
 0x3fe   : > { %2892 = vst.msk [vmem:[#allocation4 + $0x99] sm:$0xff] %vm772_vm3, %v2804_v30  ;;  %3353 = vrot.lane.b32.xlu1 %v7379_v52, %s5340_s22  ;;  %3351 = vrot.lane.b32.xlu0 %v7382_v3, %s5340_s22  ;;  %v7389_v43 = vld [vmem:[#allocation4 + $0x80] sm:$0xff]  ;;  %v3075_v39 = vrot.slane %v2930_v59, 1  ;;  %v7391_v6 = vld [vmem:[#allocation4 + $0x78] sm:$0xff]  ;;  %v3283_v61 = vrot.slane %v2930_v59, 2 }
 0x3ff   : > { %2891 = vst.msk [vmem:[#allocation4 + $0x91] sm:$0xff] %vm772_vm3, %v2803_v31  ;;  %v5173_v26 = vpop.f32.mrb[28].mxu1  ;;  %v3073_v22 = vrot.slane %v7389_v43, 1  ;;  %2978 = vst.msk [vmem:[#allocation5 + $0x58] sm:$0xff] %vm772_vm3, %v7389_v43  ;;  %v3072_v16 = vrot.slane %v7391_v6, 1  ;;  %v3281_v8 = vrot.slane %v7389_v43, 2 }
 0x400   : > { %2977 = vst.msk [vmem:[#allocation5 + $0x50] sm:$0xff] %vm772_vm3, %v7391_v6  ;;  %v2735_v23 = vmul.f32 %v5173_v26, %v7210_v27  ;;  %v2616_v41 = vpop.f32.mrb[29].mxu1  ;;  %v3280_v9 = vrot.slane %v7391_v6, 2 }
 0x401   : > { %v2734_v34 = vmul.f32 %v7210_v27, %v2616_v41  ;;  %v7404_v28 = vsel %vm1132_vm4, %v3073_v22, %v3075_v39  ;;  %v7407_v29 = vsel %vm1132_vm4, %v3072_v16, %v3073_v22  ;;  %v7417_v4 = vsel %vm1342_vm5, %v3281_v8, %v3283_v61 }
 0x402   : > { %8849 = vst [vmem:[#allocation36_spill] sm:$0xff] %v7404_v28  ;;  %8850 = vst [vmem:[#allocation12_spill] sm:$0xff] %v7407_v29  ;;  %v2774_v20 = vadd.f32 %v7216_v38, %v2735_v23  ;;  %3149 = vrot.lane.b32.xlu1 %v7404_v28, %s5338_s23  ;;  %3147 = vrot.lane.b32.xlu0 %v7407_v29, %s5338_s23  ;;  %v7420_v12 = vsel %vm1342_vm5, %v3280_v9, %v3281_v8 }
 0x403   : > { %v2773_v24 = vadd.f32 %v7216_v38, %v2734_v34  ;;  %8851 = vst [vmem:[#allocation13_spill] sm:$0xff] %v7417_v4  ;;  %8852 = vst [vmem:[#allocation16_spill] sm:$0xff] %v7420_v12 }
 0x404   : > { %v2806_v21 = vmax.f32 %v2774_v20, 0.0 }
 0x405   : > { %v2805_v25 = vmax.f32 %v2773_v24, 0.0  ;;  %v2933_v45 = vld [vmem:[#allocation4 + $0xa0] sm:$0x3] }
 0x406   : > { %2894 = vst.msk [vmem:[#allocation4 + $0xb1] sm:$0xff] %vm772_vm3, %v2806_v21  ;;  %3357 = vrot.lane.b32.xlu1 %v7417_v4, %s5340_s22  ;;  %3355 = vrot.lane.b32.xlu0 %v7420_v12, %s5340_s22  ;;  %v7427_v46 = vld [vmem:[#allocation4 + $0x98] sm:$0xff]  ;;  %v3080_v40 = vrot.slane %v2933_v45, 1  ;;  %v7429_v32 = vld [vmem:[#allocation4 + $0x90] sm:$0xff]  ;;  %v3288_v47 = vrot.slane %v2933_v45, 2 }
 0x407   : > { %2893 = vst.msk [vmem:[#allocation4 + $0xa9] sm:$0xff] %vm772_vm3, %v2805_v25  ;;  %v5176_v60 = vpop.f32.mrb[30].mxu1  ;;  %v3078_v13 = vrot.slane %v7427_v46, 1  ;;  %2980 = vst.msk [vmem:[#allocation5 + $0x68] sm:$0xff] %vm772_vm3, %v7427_v46  ;;  %v3077_v54 = vrot.slane %v7429_v32, 1  ;;  %v3286_v18 = vrot.slane %v7427_v46, 2 }
 0x408   : > { %2979 = vst.msk [vmem:[#allocation5 + $0x60] sm:$0xff] %vm772_vm3, %v7429_v32  ;;  %v2737_v7 = vmul.f32 %v5176_v60, %v7210_v27  ;;  %v2626_v56 = vpop.f32.mrb[31].mxu1  ;;  %v3285_v2 = vrot.slane %v7429_v32, 2 }
 0x409   : > { %v2736_v19 = vmul.f32 %v7210_v27, %v2626_v56  ;;  %v7442_v48 = vsel %vm1132_vm4, %v3078_v13, %v3080_v40  ;;  %v7445_v1 = vsel %vm1132_vm4, %v3077_v54, %v3078_v13  ;;  %v7455_v26 = vsel %vm1342_vm5, %v3286_v18, %v3288_v47 }
 0x40a   : > { %8853 = vst [vmem:[#allocation17_spill] sm:$0xff] %v7442_v48  ;;  %8854 = vst [vmem:[#allocation20_spill] sm:$0xff] %v7445_v1  ;;  %v2776_v30 = vadd.f32 %v7216_v38, %v2737_v7  ;;  %3153 = vrot.lane.b32.xlu1 %v7442_v48, %s5338_s23  ;;  %3151 = vrot.lane.b32.xlu0 %v7445_v1, %s5338_s23  ;;  %v7458_v22 = vsel %vm1342_vm5, %v3285_v2, %v3286_v18 }
 0x40b   : > { %v2775_v31 = vadd.f32 %v7216_v38, %v2736_v19  ;;  %8855 = vst [vmem:[#allocation21_spill] sm:$0xff] %v7455_v26  ;;  %8856 = vst [vmem:[#allocation24_spill] sm:$0xff] %v7458_v22 }
 0x40c   : > { %v2808_v59 = vmax.f32 %v2776_v30, 0.0 }
 0x40d   : > { %v2807_v39 = vmax.f32 %v2775_v31, 0.0  ;;  %v7460_v16 = vld [vmem:[#allocation4 + $0xb8] sm:$0x3] }
 0x40e   : > { %2896 = vst.msk [vmem:[#allocation4 + $0xc9] sm:$0xff] %vm772_vm3, %v2808_v59  ;;  %3361 = vrot.lane.b32.xlu1 %v7455_v26, %s5340_s22  ;;  %3359 = vrot.lane.b32.xlu0 %v7458_v22, %s5340_s22  ;;  %v7467_v23 = vld [vmem:[#allocation4 + $0xb0] sm:$0xff]  ;;  %v3085_v41 = vrot.slane %v7460_v16, 1  ;;  %v7470_v8 = vld [vmem:[#allocation4 + $0xa8] sm:$0xff] }
 0x40f   : > { %2895 = vst.msk [vmem:[#allocation4 + $0xc1] sm:$0xff] %vm772_vm3, %v2807_v39  ;;  %v5179_v61 = vpop.f32.mrb[32].mxu1  ;;  %v3083_v34 = vrot.slane %v7467_v23, 1  ;;  %2982 = vst.msk [vmem:[#allocation5 + $0x78] sm:$0xff] %vm772_vm3, %v7467_v23  ;;  %v3082_v9 = vrot.slane %v7470_v8, 1  ;;  %v3291_v29 = vrot.slane %v7467_v23, 2 }
 0x410   : > { %2981 = vst.msk [vmem:[#allocation5 + $0x70] sm:$0xff] %vm772_vm3, %v7470_v8  ;;  %v2739_v20 = vmul.f32 %v5179_v61, %v7210_v27  ;;  %v2636_v24 = vpop.f32.mrb[33].mxu1  ;;  %v3290_v52 = vrot.slane %v7470_v8, 2 }
 0x411   : > { %v2738_v21 = vmul.f32 %v7210_v27, %v2636_v24  ;;  %v7482_v25 = vsel %vm1132_vm4, %v3083_v34, %v3085_v41  ;;  %v7485_v45 = vsel %vm1132_vm4, %v3082_v9, %v3083_v34 }
 0x412   : > { %8857 = vst [vmem:[#allocation25_spill] sm:$0xff] %v7482_v25  ;;  %8858 = vst [vmem:[#allocation28_spill] sm:$0xff] %v7485_v45  ;;  %v2778_v40 = vadd.f32 %v7216_v38, %v2739_v20  ;;  %3157 = vrot.lane.b32.xlu1 %v7482_v25, %s5338_s23  ;;  %3155 = vrot.lane.b32.xlu0 %v7485_v45, %s5338_s23 }
 0x413   : > { %v2777_v60 = vadd.f32 %v7216_v38, %v2738_v21 }
 0x414   : > { %v2810_v13 = vmax.f32 %v2778_v40, 0.0 }
 0x415   : > { %v2809_v54 = vmax.f32 %v2777_v60, 0.0  ;;  %v7493_v7 = vld [vmem:[#allocation4 + $0xd0] sm:$0x3] }
 0x416   : > { %2898 = vst.msk [vmem:[#allocation4 + $0xe1] sm:$0xff] %vm772_vm3, %v2810_v13  ;;  %v7496_v56 = vld [vmem:[#allocation4 + $0xc8] sm:$0xff]  ;;  %v3090_v18 = vrot.slane %v7493_v7, 1  ;;  %v7499_v47 = vld [vmem:[#allocation4 + $0xc0] sm:$0xff] }
 0x417   : > { %2897 = vst.msk [vmem:[#allocation4 + $0xd9] sm:$0xff] %vm772_vm3, %v2809_v54  ;;  %v5182_v19 = vpop.f32.mrb[34].mxu1  ;;  %v3088_v2 = vrot.slane %v7496_v56, 1  ;;  %2984 = vst.msk [vmem:[#allocation5 + $0x88] sm:$0xff] %vm772_vm3, %v7496_v56  ;;  %v3087_v30 = vrot.slane %v7499_v47, 1 }
 0x418   : > { %2983 = vst.msk [vmem:[#allocation5 + $0x80] sm:$0xff] %vm772_vm3, %v7499_v47  ;;  %v2741_v31 = vmul.f32 %v5182_v19, %v7210_v27  ;;  %v2646_v59 = vpop.f32.mrb[35].mxu1 }
 0x419   : > { %v2740_v39 = vmul.f32 %v7210_v27, %v2646_v59  ;;  %v7511_v41 = vsel %vm1132_vm4, %v3088_v2, %v3090_v18  ;;  %v7514_v61 = vsel %vm1132_vm4, %v3087_v30, %v3088_v2 }
 0x41a   : > { %8859 = vst [vmem:[#allocation6_spill] sm:$0xff] %v7511_v41  ;;  %8860 = vst [vmem:[#allocation7_spill] sm:$0xff] %v7514_v61  ;;  %v2780_v34 = vadd.f32 %v7216_v38, %v2741_v31  ;;  %3161 = vrot.lane.b32.xlu1 %v7511_v41, %s5338_s23  ;;  %3159 = vrot.lane.b32.xlu0 %v7514_v61, %s5338_s23 }
 0x41b   : > { %v2779_v9 = vadd.f32 %v7216_v38, %v2740_v39 }
 0x41c   : > { %v2812_v20 = vmax.f32 %v2780_v34, 0.0 }
 0x41d   : > { %v2811_v24 = vmax.f32 %v2779_v9, 0.0  ;;  %v7522_v21 = vld [vmem:[#allocation4 + $0xe8] sm:$0x3] }
 0x41e   : > { %2900 = vst.msk [vmem:[#allocation4 + $0xf9] sm:$0xff] %vm772_vm3, %v2812_v20  ;;  %v7525_v40 = vld [vmem:[#allocation4 + $0xe0] sm:$0xff]  ;;  %v3095_v60 = vrot.slane %v7522_v21, 1  ;;  %v7528_v13 = vld [vmem:[#allocation4 + $0xd8] sm:$0xff] }
 0x41f   : > { %2899 = vst.msk [vmem:[#allocation4 + $0xf1] sm:$0xff] %vm772_vm3, %v2811_v24  ;;  %v5185_v54 = vpop.f32.mrb[36].mxu1  ;;  %v3093_v18 = vrot.slane %v7525_v40, 1  ;;  %2986 = vst.msk [vmem:[#allocation5 + $0x98] sm:$0xff] %vm772_vm3, %v7525_v40  ;;  %v3092_v19 = vrot.slane %v7528_v13, 1 }
 0x420   : > { %2985 = vst.msk [vmem:[#allocation5 + $0x90] sm:$0xff] %vm772_vm3, %v7528_v13  ;;  %v2743_v2 = vmul.f32 %v5185_v54, %v7210_v27  ;;  %v2656_v30 = vpop.f32.mrb[37].mxu1 }
 0x421   : > { %v2742_v31 = vmul.f32 %v7210_v27, %v2656_v30  ;;  %v7540_v59 = vsel %vm1132_vm4, %v3093_v18, %v3095_v60  ;;  %v7543_v39 = vsel %vm1132_vm4, %v3092_v19, %v3093_v18 }
 0x422   : > { %8861 = vst [vmem:[#allocation8_spill] sm:$0xff] %v7540_v59  ;;  %8862 = vst [vmem:[#allocation9_spill] sm:$0xff] %v7543_v39  ;;  %v2782_v34 = vadd.f32 %v7216_v38, %v2743_v2  ;;  %3165 = vrot.lane.b32.xlu1 %v7540_v59, %s5338_s23  ;;  %3163 = vrot.lane.b32.xlu0 %v7543_v39, %s5338_s23 }
 0x423   : > { %v2781_v9 = vadd.f32 %v7216_v38, %v2742_v31 }
 0x424   : > { %v2814_v20 = vmax.f32 %v2782_v34, 0.0 }
 0x425   : > { %v2813_v24 = vmax.f32 %v2781_v9, 0.0  ;;  %v7551_v54 = vld [vmem:[#allocation4 + $0x100] sm:$0x3] }
 0x426   : > { %2902 = vst.msk [vmem:[#allocation4 + $0x111] sm:$0xff] %vm772_vm3, %v2814_v20  ;;  %v7554_v60 = vld [vmem:[#allocation4 + $0xf8] sm:$0xff]  ;;  %v3100_v18 = vrot.slane %v7551_v54, 1  ;;  %v7557_v19 = vld [vmem:[#allocation4 + $0xf0] sm:$0xff] }
 0x427   : > { %8863 = vst [vmem:[#allocation10_spill] sm:$0xff] %v7554_v60  ;;  %8864 = vst [vmem:[#allocation11_spill] sm:$0xff] %v7557_v19  ;;  %v5188_v2 = vpop.f32.mrb[38].mxu1  ;;  %v3098_v30 = vrot.slane %v7554_v60, 1  ;;  %v3097_v31 = vrot.slane %v7557_v19, 1 }
 0x428   : > { %2901 = vst.msk [vmem:[#allocation4 + $0x109] sm:$0xff] %vm772_vm3, %v2813_v24  ;;  %2988 = vst.msk [vmem:[#allocation5 + $0xa8] sm:$0xff] %vm772_vm3, %v7554_v60  ;;  %v2745_v34 = vmul.f32 %v5188_v2, %v7210_v27  ;;  %v2666_v9 = vpop.f32.mrb[39].mxu1 }
 0x429   : > { %2987 = vst.msk [vmem:[#allocation5 + $0xa0] sm:$0xff] %vm772_vm3, %v7557_v19  ;;  %v2744_v20 = vmul.f32 %v7210_v27, %v2666_v9  ;;  %v7569_v59 = vsel %vm1132_vm4, %v3098_v30, %v3100_v18  ;;  %v7572_v24 = vsel %vm1132_vm4, %v3097_v31, %v3098_v30 }
 0x42a   : > { %8865 = vst [vmem:[#allocation14_spill] sm:$0xff] %v7569_v59  ;;  %8866 = vst [vmem:[#allocation15_spill] sm:$0xff] %v7572_v24  ;;  %v2784_v39 = vadd.f32 %v7216_v38, %v2745_v34  ;;  %3169 = vrot.lane.b32.xlu1 %v7569_v59, %s5338_s23  ;;  %3167 = vrot.lane.b32.xlu0 %v7572_v24, %s5338_s23 }
 0x42b   : > { %v2783_v41 = vadd.f32 %v7216_v38, %v2744_v20 }
 0x42c   : > { %v2816_v2 = vmax.f32 %v2784_v39, 0.0 }
 0x42d   : > { %v2815_v61 = vmax.f32 %v2783_v41, 0.0  ;;  %v7580_v25 = vld [vmem:[#allocation4 + $0x118] sm:$0x3] }
 0x42e   : > { %2904 = vst.msk [vmem:[#allocation4 + $0x129] sm:$0xff] %vm772_vm3, %v2816_v2  ;;  %v3105_v30 = vrot.slane %v7580_v25, 1 }
 0x42f   : > { %v7583_v18 = vld [vmem:[#allocation4 + $0x110] sm:$0xff]  ;;  %v7586_v31 = vld [vmem:[#allocation4 + $0x108] sm:$0xff]  ;;  %2903 = vst.msk [vmem:[#allocation4 + $0x121] sm:$0xff] %vm772_vm3, %v2815_v61  ;;  %v5191_v34 = vpop.f32.mrb[40].mxu1 }
 0x430   : > { %v3103_v9 = vrot.slane %v7583_v18, 1  ;;  %2990 = vst.msk [vmem:[#allocation5 + $0xb8] sm:$0xff] %vm772_vm3, %v7583_v18  ;;  %v3102_v41 = vrot.slane %v7586_v31, 1  ;;  %2989 = vst.msk [vmem:[#allocation5 + $0xb0] sm:$0xff] %vm772_vm3, %v7586_v31  ;;  %v2747_v39 = vmul.f32 %v5191_v34, %v7210_v27  ;;  %v2676_v20 = vpop.f32.mrb[41].mxu1 }
 0x431   : > { %v2746_v2 = vmul.f32 %v7210_v27, %v2676_v20 }
 0x432   : > { %v7598_v59 = vsel %vm1132_vm4, %v3103_v9, %v3105_v30  ;;  %v7601_v61 = vsel %vm1132_vm4, %v3102_v41, %v3103_v9  ;;  %v2786_v24 = vadd.f32 %v7216_v38, %v2747_v39 }
 0x433   : > { %8867 = vst [vmem:[#allocation18_spill] sm:$0xff] %v7598_v59  ;;  %8868 = vst [vmem:[#allocation19_spill] sm:$0xff] %v7601_v61  ;;  %3173 = vrot.lane.b32.xlu1 %v7598_v59, %s5338_s23  ;;  %3171 = vrot.lane.b32.xlu0 %v7601_v61, %s5338_s23  ;;  %v2785_v45 = vadd.f32 %v7216_v38, %v2746_v2 }
 0x434   : > { %v2818_v34 = vmax.f32 %v2786_v24, 0.0 }
 0x435   : > { %v2817_v26 = vmax.f32 %v2785_v45, 0.0  ;;  %v7609_v22 = vld [vmem:[#allocation4 + $0x130] sm:$0x3] }
 0x436   : > { %2906 = vst.msk [vmem:[#allocation4 + $0x141] sm:$0xff] %vm772_vm3, %v2818_v34  ;;  %v7612_v30 = vld [vmem:[#allocation4 + $0x128] sm:$0xff]  ;;  %v3110_v9 = vrot.slane %v7609_v22, 1  ;;  %v7615_v41 = vld [vmem:[#allocation4 + $0x120] sm:$0xff] }
 0x437   : > { %8869 = vst [vmem:[#allocation22_spill] sm:$0xff] %v7612_v30  ;;  %8870 = vst [vmem:[#allocation23_spill] sm:$0xff] %v7615_v41  ;;  %v5194_v39 = vpop.f32.mrb[42].mxu1  ;;  %v3108_v20 = vrot.slane %v7612_v30, 1  ;;  %v3107_v45 = vrot.slane %v7615_v41, 1 }
 0x438   : > { %2905 = vst.msk [vmem:[#allocation4 + $0x139] sm:$0xff] %vm772_vm3, %v2817_v26  ;;  %2992 = vst.msk [vmem:[#allocation5 + $0xc8] sm:$0xff] %vm772_vm3, %v7612_v30  ;;  %v2749_v24 = vmul.f32 %v5194_v39, %v7210_v27  ;;  %v2686_v2 = vpop.f32.mrb[43].mxu1 }
 0x439   : > { %2991 = vst.msk [vmem:[#allocation5 + $0xc0] sm:$0xff] %vm772_vm3, %v7615_v41  ;;  %v2748_v34 = vmul.f32 %v7210_v27, %v2686_v2  ;;  %v7627_v59 = vsel %vm1132_vm4, %v3108_v20, %v3110_v9  ;;  %v7630_v26 = vsel %vm1132_vm4, %v3107_v45, %v3108_v20 }
 0x43a   : > { %8871 = vst [vmem:[#allocation26_spill] sm:$0xff] %v7627_v59  ;;  %8872 = vst [vmem:[#allocation27_spill] sm:$0xff] %v7630_v26  ;;  %v2788_v61 = vadd.f32 %v7216_v38, %v2749_v24  ;;  %3177 = vrot.lane.b32.xlu1 %v7627_v59, %s5338_s23  ;;  %3175 = vrot.lane.b32.xlu0 %v7630_v26, %s5338_s23 }
 0x43b   : > { %v2787_v48 = vadd.f32 %v7216_v38, %v2748_v34 }
 0x43c   : > { %v2820_v39 = vmax.f32 %v2788_v61, 0.0 }
 0x43d   : > { %v2819_v1 = vmax.f32 %v2787_v48, 0.0  ;;  %v7638_v4 = vld [vmem:[#allocation4 + $0x148] sm:$0x3] }
 0x43e   : > { %2908 = vst.msk [vmem:[#allocation4 + $0x159] sm:$0xff] %vm772_vm3, %v2820_v39  ;;  %v3115_v20 = vrot.slane %v7638_v4, 1 }
 0x43f   : > { %v7641_v9 = vld [vmem:[#allocation4 + $0x140] sm:$0xff]  ;;  %v7644_v45 = vld [vmem:[#allocation4 + $0x138] sm:$0xff]  ;;  %2907 = vst.msk [vmem:[#allocation4 + $0x151] sm:$0xff] %vm772_vm3, %v2819_v1 }
 0x440   : > { %v3113_v24 = vrot.slane %v7641_v9, 1  ;;  %2994 = vst.msk [vmem:[#allocation5 + $0xd8] sm:$0xff] %vm772_vm3, %v7641_v9  ;;  %v3112_v61 = vrot.slane %v7644_v45, 1  ;;  %2993 = vst.msk [vmem:[#allocation5 + $0xd0] sm:$0xff] %vm772_vm3, %v7644_v45 }
 0x442   : > { %v7654_v48 = vsel %vm1132_vm4, %v3113_v24, %v3115_v20  ;;  %v7657_v2 = vsel %vm1132_vm4, %v3112_v61, %v3113_v24 }
 0x443   : > { %8873 = vst [vmem:[#allocation29_spill] sm:$0xff] %v7654_v48  ;;  %8874 = vst [vmem:[#allocation30_spill] sm:$0xff] %v7657_v2  ;;  %3181 = vrot.lane.b32.xlu1 %v7654_v48, %s5338_s23  ;;  %3179 = vrot.lane.b32.xlu0 %v7657_v2, %s5338_s23  ;;  %v5197_v1 = vpop.f32.mrb[44].mxu1 }
 0x444   : > { %v2751_v34 = vmul.f32 %v5197_v1, %v7210_v27  ;;  %v2696_v39 = vpop.f32.mrb[45].mxu1 }
 0x445   : > { %v2750_v59 = vmul.f32 %v7210_v27, %v2696_v39  ;;  %v7665_v26 = vld [vmem:[#allocation4 + $0x160] sm:$0x3] }
 0x446   : > { %v2790_v20 = vadd.f32 %v7216_v38, %v2751_v34  ;;  %v7668_v12 = vld [vmem:[#allocation4 + $0x158] sm:$0xff]  ;;  %v3120_v24 = vrot.slane %v7665_v26, 1  ;;  %v7671_v61 = vld [vmem:[#allocation4 + $0x150] sm:$0xff] }
 0x447   : > { %8875 = vst [vmem:[#allocation31_spill] sm:$0xff] %v7668_v12  ;;  %8876 = vst [vmem:[#allocation32_spill] sm:$0xff] %v7671_v61  ;;  %v2789_v48 = vadd.f32 %v7216_v38, %v2750_v59  ;;  %v3118_v2 = vrot.slane %v7668_v12, 1  ;;  %v3117_v1 = vrot.slane %v7671_v61, 1 }
 0x448   : > { %2996 = vst.msk [vmem:[#allocation5 + $0xe8] sm:$0xff] %vm772_vm3, %v7668_v12  ;;  %2995 = vst.msk [vmem:[#allocation5 + $0xe0] sm:$0xff] %vm772_vm3, %v7671_v61  ;;  %v2822_v27 = vmax.f32 %v2790_v20, 0.0 }
 0x449   : > { %v2821_v34 = vmax.f32 %v2789_v48, 0.0  ;;  %v7681_v39 = vsel %vm1132_vm4, %v3118_v2, %v3120_v24  ;;  %v7684_v28 = vsel %vm1132_vm4, %v3117_v1, %v3118_v2 }
 0x44a   : > { %8877 = vst [vmem:[#allocation33_spill] sm:$0xff] %v7681_v39  ;;  %8878 = vst [vmem:[#allocation34_spill] sm:$0xff] %v7684_v28  ;;  %3185 = vrot.lane.b32.xlu1 %v7681_v39, %s5338_s23  ;;  %3183 = vrot.lane.b32.xlu0 %v7684_v28, %s5338_s23 }
 0x44b   : > { %2910 = vst.msk [vmem:[#allocation4 + $0x171] sm:$0xff] %vm772_vm3, %v2822_v27  ;;  %2909 = vst.msk [vmem:[#allocation4 + $0x169] sm:$0xff] %vm772_vm3, %v2821_v34  ;;  %v3293_v34 = vrot.slane %v7460_v16, 2 }
 0x452   : > { %v7692_v38 = vld [vmem:[#allocation4 + $0x178] sm:$0x3]  ;;  %v7694_v59 = vld [vmem:[#allocation4 + $0x170] sm:$0xff]  ;;  %v7697_v20 = vld [vmem:[#allocation4 + $0x168] sm:$0xff] }
 0x453   : > { %v3125_v48 = vrot.slane %v7692_v38, 1  ;;  %v3123_v2 = vrot.slane %v7694_v59, 1  ;;  %2998 = vst.msk [vmem:[#allocation5 + $0xf8] sm:$0xff] %vm772_vm3, %v7694_v59  ;;  %v3122_v24 = vrot.slane %v7697_v20, 1  ;;  %2997 = vst.msk [vmem:[#allocation5 + $0xf0] sm:$0xff] %vm772_vm3, %v7697_v20 }
 0x454   : > { %v3134_v1 = vpop.permute.xlu1 %3133  ;;  %v3132_v27 = vpop.permute.xlu0 %3131 }
 0x455   : > { %3226 = vst.msk [vmem:[#allocation5 + $0x18] sm:$0xff] %vm965_vm8, %v3134_v1  ;;  %3225 = vst.msk [vmem:[#allocation5 + $0x10] sm:$0xff] %vm965_vm8, %v3132_v27  ;;  %v7709_v39 = vsel %vm1132_vm4, %v3123_v2, %v3125_v48  ;;  %v7712_v28 = vsel %vm1132_vm4, %v3122_v24, %v3123_v2  ;;  %v3296_v27 = vrot.slane %v7496_v56, 2  ;;  %v3298_v48 = vrot.slane %v7493_v7, 2 }
 0x456   : > { %8879 = vst [vmem:[#allocation37_spill] sm:$0xff] %v7709_v39  ;;  %8880 = vst [vmem:[#allocation38_spill] sm:$0xff] %v7712_v28  ;;  %3189 = vrot.lane.b32.xlu1 %v7709_v39, %s5338_s23  ;;  %3187 = vrot.lane.b32.xlu0 %v7712_v28, %s5338_s23  ;;  %v7725_v2 = vsel %vm1342_vm5, %v3291_v29, %v3293_v34  ;;  %v7728_v24 = vsel %vm1342_vm5, %v3290_v52, %v3291_v29  ;;  %v3295_v39 = vrot.slane %v7499_v47, 2  ;;  %s5348_s23 = smov 12  }
 0x457   : > { %8881 = vst [vmem:[#allocation39_spill] sm:$0xff] %v7725_v2  ;;  %v3301_v29 = vrot.slane %v7525_v40, 2  ;;  %v3303_v34 = vrot.slane %v7522_v21, 2 }
 0x458   : > { %v3342_v16 = vpop.permute.xlu1 %3341  ;;  %v3340_v1 = vpop.permute.xlu0 %3339  ;;  %v7741_v52 = vsel %vm1342_vm5, %v3295_v39, %v3296_v27 }
 0x459   : > { %3435 = vst.msk [vmem:[#allocation5 + $0x18] sm:$0xff] %vm3431_vm1, %v3342_v16  ;;  %3434 = vst.msk [vmem:[#allocation5 + $0x10] sm:$0xff] %vm3431_vm1, %v3340_v1  ;;  %v7736_v16 = vsel %vm1342_vm5, %v3296_v27, %v3298_v48  ;;  %v3300_v1 = vrot.slane %v7528_v13, 2  ;;  %v7755_v21 = vsel %vm1342_vm5, %v3301_v29, %v3303_v34  ;;  %v3305_v27 = vrot.slane %v7557_v19, 2 }
 0x45a   : > { %3365 = vrot.lane.b32.xlu1 %v7725_v2, %s5340_s22  ;;  %3363 = vrot.lane.b32.xlu0 %v7728_v24, %s5340_s22  ;;  %v3313_v34 = vrot.slane %v7580_v25, 2 }
 0x45b   : > { %v7758_v39 = vsel %vm1342_vm5, %v3300_v1, %v3301_v29  ;;  %v3311_v29 = vrot.slane %v7583_v18, 2  ;;  %v3310_v1 = vrot.slane %v7586_v31, 2 }
 0x45c   : > { %v3138_v28 = vpop.permute.xlu1 %3137  ;;  %v3136_v7 = vpop.permute.xlu0 %3135 }
 0x45d   : > { %3228 = vst.msk [vmem:[#allocation5 + $0x28] sm:$0xff] %vm965_vm8, %v3138_v28  ;;  %3227 = vst.msk [vmem:[#allocation5 + $0x20] sm:$0xff] %vm965_vm8, %v3136_v7  ;;  %v3306_v28 = vrot.slane %v7554_v60, 2  ;;  %v3308_v7 = vrot.slane %v7551_v54, 2  ;;  %v7785_v25 = vsel %vm1342_vm5, %v3311_v29, %v3313_v34  ;;  %v3323_v34 = vrot.slane %v7638_v4, 2 }
 0x45e   : > { %3369 = vrot.lane.b32.xlu1 %v7736_v16, %s5340_s22  ;;  %3367 = vrot.lane.b32.xlu0 %v7741_v52, %s5340_s22 }
 0x460   : > { %v3346_v48 = vpop.permute.xlu1 %3345  ;;  %v3344_v2 = vpop.permute.xlu0 %3343 }
 0x461   : > { %3437 = vst.msk [vmem:[#allocation5 + $0x28] sm:$0xff] %vm3431_vm1, %v3346_v48  ;;  %3436 = vst.msk [vmem:[#allocation5 + $0x20] sm:$0xff] %vm3431_vm1, %v3344_v2  ;;  %v7766_v48 = vsel %vm1342_vm5, %v3306_v28, %v3308_v7  ;;  %v7771_v2 = vsel %vm1342_vm5, %v3305_v27, %v3306_v28  ;;  %v7788_v28 = vsel %vm1342_vm5, %v3310_v1, %v3311_v29  ;;  %v3315_v27 = vrot.slane %v7615_v41, 2 }
 0x462   : > { %3373 = vrot.lane.b32.xlu1 %v7755_v21, %s5340_s22  ;;  %3371 = vrot.lane.b32.xlu0 %v7758_v39, %s5340_s22  ;;  %v3321_v29 = vrot.slane %v7641_v9, 2  ;;  %v3320_v1 = vrot.slane %v7644_v45, 2 }
 0x464   : > { %v3142_v60 = vpop.permute.xlu1 %3141  ;;  %v3140_v54 = vpop.permute.xlu0 %3139  ;;  %v7815_v4 = vsel %vm1342_vm5, %v3321_v29, %v3323_v34  ;;  %v3333_v34 = vrot.slane %v7692_v38, 2 }
 0x465   : > { %3230 = vst.msk [vmem:[#allocation5 + $0x38] sm:$0xff] %vm965_vm8, %v3142_v60  ;;  %3229 = vst.msk [vmem:[#allocation5 + $0x30] sm:$0xff] %vm965_vm8, %v3140_v54  ;;  %v3316_v60 = vrot.slane %v7612_v30, 2  ;;  %v3318_v54 = vrot.slane %v7609_v22, 2 }
 0x466   : > { %3377 = vrot.lane.b32.xlu1 %v7766_v48, %s5340_s22  ;;  %3375 = vrot.lane.b32.xlu0 %v7771_v2, %s5340_s22 }
 0x468   : > { %v3350_v7 = vpop.permute.xlu1 %3349  ;;  %v3348_v19 = vpop.permute.xlu0 %3347 }
 0x469   : > { %3439 = vst.msk [vmem:[#allocation5 + $0x38] sm:$0xff] %vm3431_vm1, %v3350_v7  ;;  %3438 = vst.msk [vmem:[#allocation5 + $0x30] sm:$0xff] %vm3431_vm1, %v3348_v19  ;;  %v7796_v7 = vsel %vm1342_vm5, %v3316_v60, %v3318_v54  ;;  %v7801_v19 = vsel %vm1342_vm5, %v3315_v27, %v3316_v60  ;;  %v7818_v60 = vsel %vm1342_vm5, %v3320_v1, %v3321_v29  ;;  %v3325_v27 = vrot.slane %v7671_v61, 2 }
 0x46a   : > { %3381 = vrot.lane.b32.xlu1 %v7785_v25, %s5340_s22  ;;  %3379 = vrot.lane.b32.xlu0 %v7788_v28, %s5340_s22  ;;  %v3331_v29 = vrot.slane %v7694_v59, 2  ;;  %v3330_v1 = vrot.slane %v7697_v20, 2 }
 0x46c   : > { %v3146_v30 = vpop.permute.xlu1 %3145  ;;  %v3144_v22 = vpop.permute.xlu0 %3143 }
 0x46d   : > { %3232 = vst.msk [vmem:[#allocation5 + $0x48] sm:$0xff] %vm965_vm8, %v3146_v30  ;;  %3231 = vst.msk [vmem:[#allocation5 + $0x40] sm:$0xff] %vm965_vm8, %v3144_v22  ;;  %v3326_v30 = vrot.slane %v7668_v12, 2  ;;  %v3328_v22 = vrot.slane %v7665_v26, 2 }
 0x46e   : > { %3385 = vrot.lane.b32.xlu1 %v7796_v7, %s5340_s22  ;;  %3383 = vrot.lane.b32.xlu0 %v7801_v19, %s5340_s22 }
 0x470   : > { %v3354_v54 = vpop.permute.xlu1 %3353  ;;  %v3352_v41 = vpop.permute.xlu0 %3351 }
 0x471   : > { %3441 = vst.msk [vmem:[#allocation5 + $0x48] sm:$0xff] %vm3431_vm1, %v3354_v54  ;;  %3440 = vst.msk [vmem:[#allocation5 + $0x40] sm:$0xff] %vm3431_vm1, %v3352_v41  ;;  %v7826_v54 = vsel %vm1342_vm5, %v3326_v30, %v3328_v22  ;;  %v7831_v41 = vsel %vm1342_vm5, %v3325_v27, %v3326_v30  ;;  %v7846_v30 = vsel %vm1342_vm5, %v3330_v1, %v3331_v29 }
 0x472   : > { %3389 = vrot.lane.b32.xlu1 %v7815_v4, %s5340_s22  ;;  %3387 = vrot.lane.b32.xlu0 %v7818_v60, %s5340_s22 }
 0x474   : > { %v3150_v12 = vpop.permute.xlu1 %3149  ;;  %v3148_v26 = vpop.permute.xlu0 %3147 }
 0x475   : > { %3234 = vst.msk [vmem:[#allocation5 + $0x58] sm:$0xff] %vm965_vm8, %v3150_v12  ;;  %3233 = vst.msk [vmem:[#allocation5 + $0x50] sm:$0xff] %vm965_vm8, %v3148_v26  ;;  %v7843_v12 = vsel %vm1342_vm5, %v3331_v29, %v3333_v34 }
 0x476   : > { %3393 = vrot.lane.b32.xlu1 %v7826_v54, %s5340_s22  ;;  %3391 = vrot.lane.b32.xlu0 %v7831_v41, %s5340_s22 }
 0x478   : > { %v3358_v22 = vpop.permute.xlu1 %3357  ;;  %v3356_v61 = vpop.permute.xlu0 %3355 }
 0x479   : > { %3443 = vst.msk [vmem:[#allocation5 + $0x58] sm:$0xff] %vm3431_vm1, %v3358_v22  ;;  %3442 = vst.msk [vmem:[#allocation5 + $0x50] sm:$0xff] %vm3431_vm1, %v3356_v61 }
 0x47a   : > { %3397 = vrot.lane.b32.xlu1 %v7843_v12, %s5340_s22  ;;  %3395 = vrot.lane.b32.xlu0 %v7846_v30, %s5340_s22  ;;  %s5349_s22 = smov 20  }
 0x47c   : > { %v3154_v38 = vpop.permute.xlu1 %3153  ;;  %v3152_v27 = vpop.permute.xlu0 %3151 }
 0x47d   : > { %3236 = vst.msk [vmem:[#allocation5 + $0x68] sm:$0xff] %vm965_vm8, %v3154_v38  ;;  %3235 = vst.msk [vmem:[#allocation5 + $0x60] sm:$0xff] %vm965_vm8, %v3152_v27 }
 0x47e   : > { %3468 = vrot.lane.b32.xlu1 %v7235_v36, %s5348_s23  ;;  %3466 = vrot.lane.b32.xlu0 %v7237_v5, %s5348_s23 }
 0x480   : > { %v3362_v61 = vpop.permute.xlu1 %3361  ;;  %v3360_v26 = vpop.permute.xlu0 %3359 }
 0x481   : > { %3445 = vst.msk [vmem:[#allocation5 + $0x68] sm:$0xff] %vm3431_vm1, %v3362_v61  ;;  %3444 = vst.msk [vmem:[#allocation5 + $0x60] sm:$0xff] %vm3431_vm1, %v3360_v26 }
 0x482   : > { %3472 = vrot.lane.b32.xlu1 %v7273_v11, %s5348_s23  ;;  %3470 = vrot.lane.b32.xlu0 %v7275_v35, %s5348_s23 }
 0x484   : > { %v3158_v29 = vpop.permute.xlu1 %3157  ;;  %v3156_v34 = vpop.permute.xlu0 %3155 }
 0x485   : > { %3238 = vst.msk [vmem:[#allocation5 + $0x78] sm:$0xff] %vm965_vm8, %v3158_v29  ;;  %3237 = vst.msk [vmem:[#allocation5 + $0x70] sm:$0xff] %vm965_vm8, %v3156_v34 }
 0x486   : > { %3476 = vrot.lane.b32.xlu1 %v7311_v44, %s5348_s23  ;;  %3474 = vrot.lane.b32.xlu0 %v7313_v62, %s5348_s23 }
 0x48a   : > { %3480 = vrot.lane.b32.xlu1 %v7349_v63, %s5348_s23  ;;  %3478 = vrot.lane.b32.xlu0 %v7351_v57, %s5348_s23 }
 0x48c   : > { %v3162_v36 = vpop.permute.xlu1 %3161  ;;  %v3160_v5 = vpop.permute.xlu0 %3159 }
 0x48d   : > { %3240 = vst.msk [vmem:[#allocation5 + $0x88] sm:$0xff] %vm965_vm8, %v3162_v36  ;;  %3239 = vst.msk [vmem:[#allocation5 + $0x80] sm:$0xff] %vm965_vm8, %v3160_v5 }
 0x48e   : > { %3484 = vrot.lane.b32.xlu1 %v7389_v43, %s5348_s23  ;;  %3482 = vrot.lane.b32.xlu0 %v7391_v6, %s5348_s23 }
 0x492   : > { %3488 = vrot.lane.b32.xlu1 %v7427_v46, %s5348_s23  ;;  %3486 = vrot.lane.b32.xlu0 %v7429_v32, %s5348_s23 }
 0x494   : > { %v3166_v1 = vpop.permute.xlu1 %3165  ;;  %v3164_v22 = vpop.permute.xlu0 %3163 }
 0x495   : > { %3242 = vst.msk [vmem:[#allocation5 + $0x98] sm:$0xff] %vm965_vm8, %v3166_v1  ;;  %3241 = vst.msk [vmem:[#allocation5 + $0x90] sm:$0xff] %vm965_vm8, %v3164_v22 }
 0x496   : > { %3492 = vrot.lane.b32.xlu1 %v7467_v23, %s5348_s23  ;;  %3490 = vrot.lane.b32.xlu0 %v7470_v8, %s5348_s23 }
 0x49a   : > { %3496 = vrot.lane.b32.xlu1 %v7496_v56, %s5348_s23  ;;  %3494 = vrot.lane.b32.xlu0 %v7499_v47, %s5348_s23 }
 0x49c   : > { %v3170_v38 = vpop.permute.xlu1 %3169  ;;  %v3168_v27 = vpop.permute.xlu0 %3167 }
 0x49d   : > { %3244 = vst.msk [vmem:[#allocation5 + $0xa8] sm:$0xff] %vm965_vm8, %v3170_v38  ;;  %3243 = vst.msk [vmem:[#allocation5 + $0xa0] sm:$0xff] %vm965_vm8, %v3168_v27 }
 0x49e   : > { %3601 = vrot.lane.b32.xlu1 %v7253_v55, %s5341_s18  ;;  %3498 = vrot.lane.b32.xlu0 %v7528_v13, %s5348_s23  ;;  %v4296_v55 = vld [vmem:[%s8667_s6] sm:$0xff] }
 0x4a2   : > { %3735 = vrot.lane.b32.xlu1 %v7266_v58, %s5349_s22  ;;  %3603 = vrot.lane.b32.xlu0 %v7250_v14, %s5341_s18  ;;  %v4297_v14 = vld [vmem:[%s8667_s6 + $0x8] sm:$0xff] }
 0x4a3   : > { %v5291_v58 = vpack.c.bf16 %v4297_v14, %v4296_v55 }
 0x4a5   : > { %v3174_v61 = vpop.permute.xlu1 %3173  ;;  %v3172_v26 = vpop.permute.xlu0 %3171  ;;  %5292 = vmatprep.subr.bf16.mxu0 %v5291_v58 }
 0x4a6   : > { %3246 = vst.msk [vmem:[#allocation5 + $0xb8] sm:$0xff] %vm965_vm8, %v3174_v61  ;;  %3245 = vst.msk [vmem:[#allocation5 + $0xb0] sm:$0xff] %vm965_vm8, %v3172_v26  ;;  %3866 = vrot.lane.b32.xlu1 %v7275_v35, %s5342_s19  ;;  %3737 = vrot.lane.b32.xlu0 %v7263_v33, %s5349_s22  ;;  %v4298_v33 = vld [vmem:[%s8667_s6 + $0x10] sm:$0xff]  ;;  %v4299_v35 = vld [vmem:[%s8667_s6 + $0x18] sm:$0xff] }
 0x4a7   : > { %5294 = vmatpush3.bf16.msra.mxu0 %v5291_v58  ;;  %v5295_v29 = vpack.c.bf16 %v4299_v35, %v4298_v33 }
 0x4a9   : > { %5296 = vmatprep.subr.bf16.mxu0 %v5295_v29 }
 0x4aa   : > { %4001 = vrot.lane.b32.xlu1 %v7291_v53, %s5350_s28  ;;  %3868 = vrot.lane.b32.xlu0 %v7273_v11, %s5342_s19  ;;  %v4300_v11 = vld [vmem:[%s8667_s6 + $0x20] sm:$0xf] }
 0x4ab   : > { %5298 = vmatpush3.bf16.msra.mxu0 %v5295_v29 }
 0x4ac   : > { %v3178_v34 = vpop.permute.xlu1 %3177  ;;  %v3176_v36 = vpop.permute.xlu0 %3175  ;;  %5209 = vmatprep.subr.msk.mxu0 %vm4398_vm2, %v4300_v11 }
 0x4ad   : > { %3248 = vst.msk [vmem:[#allocation5 + $0xc8] sm:$0xff] %vm965_vm8, %v3178_v34  ;;  %3247 = vst.msk [vmem:[#allocation5 + $0xc0] sm:$0xff] %vm965_vm8, %v3176_v36 }
 0x4ae   : > { %4003 = vrot.lane.b32.xlu1 %v7288_v37, %s5350_s28  ;;  %3605 = vrot.lane.b32.xlu0 %v7291_v53, %s5341_s18 }
 0x4af   : > { %5210 = vmatpush3.msk.msra.mxu0 %vm4398_vm2, %v4300_v11 }
 0x4b2   : > { %3607 = vrot.lane.b32.xlu1 %v7288_v37, %s5341_s18  ;;  %4135 = vrot.lane.b32.xlu0 %v7304_v0, %s5343_s20 }
 0x4b5   : > { %v3182_v5 = vpop.permute.xlu1 %3181  ;;  %v3180_v1 = vpop.permute.xlu0 %3179 }
 0x4b6   : > { %3250 = vst.msk [vmem:[#allocation5 + $0xd8] sm:$0xff] %vm965_vm8, %v3182_v5  ;;  %3249 = vst.msk [vmem:[#allocation5 + $0xd0] sm:$0xff] %vm965_vm8, %v3180_v1  ;;  %4137 = vrot.lane.b32.xlu1 %v7301_v10, %s5343_s20  ;;  %3739 = vrot.lane.b32.xlu0 %v7304_v0, %s5349_s22 }
 0x4ba   : > { %3870 = vrot.lane.b32.xlu1 %v7313_v62, %s5342_s19  ;;  %3741 = vrot.lane.b32.xlu0 %v7301_v10, %s5349_s22 }
 0x4bc   : > { %v3186_v37 = vpop.permute.xlu1 %3185  ;;  %v3184_v53 = vpop.permute.xlu0 %3183 }
 0x4bd   : > { %3252 = vst.msk [vmem:[#allocation5 + $0xe8] sm:$0xff] %vm965_vm8, %v3186_v37  ;;  %3251 = vst.msk [vmem:[#allocation5 + $0xe0] sm:$0xff] %vm965_vm8, %v3184_v53 }
 0x4be   : > { %4005 = vrot.lane.b32.xlu1 %v7329_v50, %s5350_s28  ;;  %3872 = vrot.lane.b32.xlu0 %v7311_v44, %s5342_s19  ;;  %v5200_v44 = vpop.f32.mrb[46].mxu1 }
 0x4bf   : > { %v2706_v38 = vpop.f32.mrb[47].mxu1 }
 0x4c2   : > { %4007 = vrot.lane.b32.xlu1 %v7326_v49, %s5350_s28  ;;  %3609 = vrot.lane.b32.xlu0 %v7329_v50, %s5341_s18 }
 0x4c6   : > { %3611 = vrot.lane.b32.xlu1 %v7326_v49, %s5341_s18  ;;  %4139 = vrot.lane.b32.xlu0 %v7342_v17, %s5343_s20  ;;  %v5328_v49 = vld [vmem:[%s8665_s4] ss:$0 sm:$0xff] }
 0x4c7   : > { %v2753_v22 = vmul.f32 %v5328_v49, %v5200_v44  ;;  %v2752_v61 = vmul.f32 %v5328_v49, %v2706_v38 }
 0x4c8   : > { %v3190_v10 = vpop.permute.xlu1 %3189  ;;  %v3188_v0 = vpop.permute.xlu0 %3187 }
 0x4c9   : > { %3254 = vst.msk [vmem:[#allocation5 + $0xf8] sm:$0xff] %vm965_vm8, %v3190_v10  ;;  %3253 = vst.msk [vmem:[#allocation5 + $0xf0] sm:$0xff] %vm965_vm8, %v3188_v0  ;;  %vm3831_vm8 = vcmask 195744  }
 0x4ca   : > { %4141 = vrot.lane.b32.xlu1 %v7339_v42, %s5343_s20  ;;  %3743 = vrot.lane.b32.xlu0 %v7342_v17, %s5349_s22  ;;  %v5329_v17 = vld [vmem:[%s8666_s5] ss:$0 sm:$0xff] }
 0x4cb   : > { %v2792_v27 = vadd.f32 %v5329_v17, %v2753_v22  ;;  %v2791_v58 = vadd.f32 %v5329_v17, %v2752_v61  ;;  %v8887_v17 = vld [vmem:[#allocation20_spill] sm:$0xff] }
 0x4cc   : > { %v3366_v62 = vpop.permute.xlu1 %3365  ;;  %v3364_v50 = vpop.permute.xlu0 %3363 }
 0x4cd   : > { %3447 = vst.msk [vmem:[#allocation5 + $0x78] sm:$0xff] %vm3431_vm1, %v3366_v62  ;;  %3446 = vst.msk [vmem:[#allocation5 + $0x70] sm:$0xff] %vm3431_vm1, %v3364_v50  ;;  %v2824_v14 = vmax.f32 %v2792_v27, 0.0  ;;  %v8886_v62 = vld [vmem:[#allocation13_spill] sm:$0xff] }
 0x4ce   : > { %3874 = vrot.lane.b32.xlu1 %v7351_v57, %s5342_s19  ;;  %3745 = vrot.lane.b32.xlu0 %v7339_v42, %s5349_s22  ;;  %v2823_v42 = vmax.f32 %v2791_v58, 0.0 }
 0x4cf   : > { %2912 = vst.msk [vmem:[#allocation4 + $0x189] sm:$0xff] %vm772_vm3, %v2824_v14 }
 0x4d0   : > { %v3370_v26 = vpop.permute.xlu1 %3369  ;;  %v3368_v55 = vpop.permute.xlu0 %3367  ;;  %2911 = vst.msk [vmem:[#allocation4 + $0x181] sm:$0xff] %vm772_vm3, %v2823_v42  ;;  %v8890_v42 = vld [vmem:[#allocation21_spill] sm:$0xff] }
 0x4d1   : > { %3449 = vst.msk [vmem:[#allocation5 + $0x88] sm:$0xff] %vm3431_vm1, %v3370_v26  ;;  %3448 = vst.msk [vmem:[#allocation5 + $0x80] sm:$0xff] %vm3431_vm1, %v3368_v55 }
 0x4d2   : > { %4009 = vrot.lane.b32.xlu1 %v7369_v15, %s5350_s28  ;;  %3876 = vrot.lane.b32.xlu0 %v7349_v63, %s5342_s19 }
 0x4d4   : > { %v3374_v57 = vpop.permute.xlu1 %3373  ;;  %v3372_v33 = vpop.permute.xlu0 %3371 }
 0x4d5   : > { %3451 = vst.msk [vmem:[#allocation5 + $0x98] sm:$0xff] %vm3431_vm1, %v3374_v57  ;;  %3450 = vst.msk [vmem:[#allocation5 + $0x90] sm:$0xff] %vm3431_vm1, %v3372_v33 }
 0x4d6   : > { %4011 = vrot.lane.b32.xlu1 %v7366_v51, %s5350_s28  ;;  %3613 = vrot.lane.b32.xlu0 %v7369_v15, %s5341_s18  ;;  %v8882_v15 = vld [vmem:[#allocation35_spill] sm:$0xff] }
 0x4d8   : > { %v3378_v35 = vpop.permute.xlu1 %3377  ;;  %v3376_v29 = vpop.permute.xlu0 %3375 }
 0x4d9   : > { %3453 = vst.msk [vmem:[#allocation5 + $0xa8] sm:$0xff] %vm3431_vm1, %v3378_v35  ;;  %3452 = vst.msk [vmem:[#allocation5 + $0xa0] sm:$0xff] %vm3431_vm1, %v3376_v29 }
 0x4da   : > { %3615 = vrot.lane.b32.xlu1 %v7366_v51, %s5341_s18  ;;  %4143 = vrot.lane.b32.xlu0 %v7382_v3, %s5343_s20 }
 0x4dc   : > { %v3382_v63 = vpop.permute.xlu1 %3381  ;;  %v3380_v34 = vpop.permute.xlu0 %3379 }
 0x4dd   : > { %3455 = vst.msk [vmem:[#allocation5 + $0xb8] sm:$0xff] %vm3431_vm1, %v3382_v63  ;;  %3454 = vst.msk [vmem:[#allocation5 + $0xb0] sm:$0xff] %vm3431_vm1, %v3380_v34  ;;  %v8891_v63 = vld [vmem:[#allocation28_spill] sm:$0xff] }
 0x4de   : > { %4145 = vrot.lane.b32.xlu1 %v8882_v15, %s5343_s20  ;;  %3747 = vrot.lane.b32.xlu0 %v7382_v3, %s5349_s22  ;;  %v8883_v3 = vld [vmem:[#allocation12_spill] sm:$0xff] }
 0x4e0   : > { %v3386_v36 = vpop.permute.xlu1 %3385  ;;  %v3384_v11 = vpop.permute.xlu0 %3383 }
 0x4e1   : > { %3457 = vst.msk [vmem:[#allocation5 + $0xc8] sm:$0xff] %vm3431_vm1, %v3386_v36  ;;  %3456 = vst.msk [vmem:[#allocation5 + $0xc0] sm:$0xff] %vm3431_vm1, %v3384_v11 }
 0x4e2   : > { %3878 = vrot.lane.b32.xlu1 %v7391_v6, %s5342_s19  ;;  %3749 = vrot.lane.b32.xlu0 %v8882_v15, %s5349_s22  ;;  %v8884_v6 = vld [vmem:[#allocation36_spill] sm:$0xff] }
 0x4e4   : > { %v3390_v51 = vpop.permute.xlu1 %3389  ;;  %v3388_v5 = vpop.permute.xlu0 %3387 }
 0x4e5   : > { %3459 = vst.msk [vmem:[#allocation5 + $0xd8] sm:$0xff] %vm3431_vm1, %v3390_v51  ;;  %3458 = vst.msk [vmem:[#allocation5 + $0xd0] sm:$0xff] %vm3431_vm1, %v3388_v5  ;;  %v8893_v5 = vld [vmem:[#allocation39_spill] sm:$0xff] }
 0x4e6   : > { %4013 = vrot.lane.b32.xlu1 %v8883_v3, %s5350_s28  ;;  %3880 = vrot.lane.b32.xlu0 %v7389_v43, %s5342_s19  ;;  %v8885_v43 = vld [vmem:[#allocation16_spill] sm:$0xff] }
 0x4e8   : > { %v3394_v1 = vpop.permute.xlu1 %3393  ;;  %v3392_v37 = vpop.permute.xlu0 %3391 }
 0x4e9   : > { %3461 = vst.msk [vmem:[#allocation5 + $0xe8] sm:$0xff] %vm3431_vm1, %v3394_v1  ;;  %3460 = vst.msk [vmem:[#allocation5 + $0xe0] sm:$0xff] %vm3431_vm1, %v3392_v37 }
 0x4ea   : > { %4015 = vrot.lane.b32.xlu1 %v8884_v6, %s5350_s28  ;;  %3617 = vrot.lane.b32.xlu0 %v8883_v3, %s5341_s18 }
 0x4ec   : > { %v3398_v53 = vpop.permute.xlu1 %3397  ;;  %v3396_v10 = vpop.permute.xlu0 %3395 }
 0x4ed   : > { %3463 = vst.msk [vmem:[#allocation5 + $0xf8] sm:$0xff] %vm3431_vm1, %v3398_v53  ;;  %3462 = vst.msk [vmem:[#allocation5 + $0xf0] sm:$0xff] %vm3431_vm1, %v3396_v10 }
 0x4ee   : > { %3619 = vrot.lane.b32.xlu1 %v8884_v6, %s5341_s18  ;;  %4147 = vrot.lane.b32.xlu0 %v8885_v43, %s5343_s20 }
 0x4f0   : > { %v3469_v0 = vpop.permute.xlu1 %3468  ;;  %v3467_v44 = vpop.permute.xlu0 %3466 }
 0x4f1   : > { %3564 = vst.msk [vmem:[#allocation5 + $0x8] sm:$0xff] %vm3562_vm6, %v3469_v0  ;;  %3563 = vst.msk [vmem:[#allocation5] sm:$0xff] %vm3562_vm6, %v3467_v44 }
 0x4f2   : > { %4149 = vrot.lane.b32.xlu1 %v8886_v62, %s5343_s20  ;;  %3751 = vrot.lane.b32.xlu0 %v8885_v43, %s5349_s22 }
 0x4f4   : > { %v3473_v50 = vpop.permute.xlu1 %3472  ;;  %v3471_v49 = vpop.permute.xlu0 %3470 }
 0x4f5   : > { %3566 = vst.msk [vmem:[#allocation5 + $0x18] sm:$0xff] %vm3562_vm6, %v3473_v50  ;;  %3565 = vst.msk [vmem:[#allocation5 + $0x10] sm:$0xff] %vm3562_vm6, %v3471_v49 }
 0x4f6   : > { %3882 = vrot.lane.b32.xlu1 %v7429_v32, %s5342_s19  ;;  %3753 = vrot.lane.b32.xlu0 %v8886_v62, %s5349_s22  ;;  %v8888_v32 = vld [vmem:[#allocation17_spill] sm:$0xff] }
 0x4f8   : > { %v3477_v22 = vpop.permute.xlu1 %3476  ;;  %v3475_v38 = vpop.permute.xlu0 %3474 }
 0x4f9   : > { %3568 = vst.msk [vmem:[#allocation5 + $0x28] sm:$0xff] %vm3562_vm6, %v3477_v22  ;;  %3567 = vst.msk [vmem:[#allocation5 + $0x20] sm:$0xff] %vm3562_vm6, %v3475_v38 }
 0x4fa   : > { %4017 = vrot.lane.b32.xlu1 %v8887_v17, %s5350_s28  ;;  %3884 = vrot.lane.b32.xlu0 %v7427_v46, %s5342_s19  ;;  %v8889_v46 = vld [vmem:[#allocation24_spill] sm:$0xff] }
 0x4fc   : > { %v3481_v27 = vpop.permute.xlu1 %3480  ;;  %v3479_v61 = vpop.permute.xlu0 %3478 }
 0x4fd   : > { %3570 = vst.msk [vmem:[#allocation5 + $0x38] sm:$0xff] %vm3562_vm6, %v3481_v27  ;;  %3569 = vst.msk [vmem:[#allocation5 + $0x30] sm:$0xff] %vm3562_vm6, %v3479_v61 }
 0x4fe   : > { %4019 = vrot.lane.b32.xlu1 %v8888_v32, %s5350_s28  ;;  %3621 = vrot.lane.b32.xlu0 %v8887_v17, %s5341_s18 }
 0x500   : > { %v3485_v26 = vpop.permute.xlu1 %3484  ;;  %v3483_v55 = vpop.permute.xlu0 %3482 }
 0x501   : > { %3572 = vst.msk [vmem:[#allocation5 + $0x48] sm:$0xff] %vm3562_vm6, %v3485_v26  ;;  %3571 = vst.msk [vmem:[#allocation5 + $0x40] sm:$0xff] %vm3562_vm6, %v3483_v55 }
 0x502   : > { %3623 = vrot.lane.b32.xlu1 %v8888_v32, %s5341_s18  ;;  %4151 = vrot.lane.b32.xlu0 %v8889_v46, %s5343_s20  ;;  %v8897_v32 = vld [vmem:[#allocation8_spill] sm:$0xff] }
 0x504   : > { %v3489_v14 = vpop.permute.xlu1 %3488  ;;  %v3487_v58 = vpop.permute.xlu0 %3486 }
 0x505   : > { %3574 = vst.msk [vmem:[#allocation5 + $0x58] sm:$0xff] %vm3562_vm6, %v3489_v14  ;;  %3573 = vst.msk [vmem:[#allocation5 + $0x50] sm:$0xff] %vm3562_vm6, %v3487_v58 }
 0x506   : > { %4153 = vrot.lane.b32.xlu1 %v8890_v42, %s5343_s20  ;;  %3755 = vrot.lane.b32.xlu0 %v8889_v46, %s5349_s22 }
 0x508   : > { %v3493_v57 = vpop.permute.xlu1 %3492  ;;  %v3491_v33 = vpop.permute.xlu0 %3490 }
 0x509   : > { %3576 = vst.msk [vmem:[#allocation5 + $0x68] sm:$0xff] %vm3562_vm6, %v3493_v57  ;;  %3575 = vst.msk [vmem:[#allocation5 + $0x60] sm:$0xff] %vm3562_vm6, %v3491_v33  ;;  %v8898_v57 = vld [vmem:[#allocation11_spill] sm:$0xff] }
 0x50a   : > { %3886 = vrot.lane.b32.xlu1 %v7470_v8, %s5342_s19  ;;  %3757 = vrot.lane.b32.xlu0 %v8890_v42, %s5349_s22  ;;  %v8892_v8 = vld [vmem:[#allocation25_spill] sm:$0xff] }
 0x50c   : > { %v3497_v35 = vpop.permute.xlu1 %3496  ;;  %v3495_v29 = vpop.permute.xlu0 %3494 }
 0x50d   : > { %3578 = vst.msk [vmem:[#allocation5 + $0x78] sm:$0xff] %vm3562_vm6, %v3497_v35  ;;  %3577 = vst.msk [vmem:[#allocation5 + $0x70] sm:$0xff] %vm3562_vm6, %v3495_v29  ;;  %v8900_v29 = vld [vmem:[#allocation10_spill] sm:$0xff] }
 0x50e   : > { %4021 = vrot.lane.b32.xlu1 %v8891_v63, %s5350_s28  ;;  %3888 = vrot.lane.b32.xlu0 %v7467_v23, %s5342_s19 }
 0x510   : > { %v3602_v34 = vpop.permute.xlu1 %3601  ;;  %v3499_v15 = vpop.permute.xlu0 %3498 }
 0x511   : > { %3698 = vst.msk [vmem:[#allocation5] sm:$0xff] %vm3697_vm7, %v3602_v34 }
 0x512   : > { %3579 = vst.msk [vmem:[#allocation5 + $0x80] sm:$0xff] %vm3562_vm6, %v3499_v15  ;;  %4023 = vrot.lane.b32.xlu1 %v8892_v8, %s5350_s28  ;;  %3625 = vrot.lane.b32.xlu0 %v8891_v63, %s5341_s18 }
 0x514   : > { %v3736_v36 = vpop.permute.xlu1 %3735  ;;  %v3604_v11 = vpop.permute.xlu0 %3603 }
 0x515   : > { %3832 = vst.msk [vmem:[#allocation5] sm:$0xff] %vm3831_vm8, %v3736_v36 }
 0x516   : > { %3699 = vst.msk [vmem:[#allocation5 + $0x8] sm:$0xff] %vm3697_vm7, %v3604_v11  ;;  %3627 = vrot.lane.b32.xlu1 %v8892_v8, %s5341_s18  ;;  %4155 = vrot.lane.b32.xlu0 %v7728_v24, %s5343_s20  ;;  %v8901_v11 = vld [vmem:[#allocation14_spill] sm:$0xff] }
 0x518   : > { %v3867_v23 = vpop.permute.xlu1 %3866  ;;  %v3738_v51 = vpop.permute.xlu0 %3737 }
 0x519   : > { %3963 = vst.msk [vmem:[#allocation5] sm:$0xff] %vm3962_vm9, %v3867_v23 }
 0x51a   : > { %3833 = vst.msk [vmem:[#allocation5 + $0x8] sm:$0xff] %vm3831_vm8, %v3738_v51  ;;  %4157 = vrot.lane.b32.xlu1 %v8893_v5, %s5343_s20  ;;  %3759 = vrot.lane.b32.xlu0 %v7728_v24, %s5349_s22  ;;  %v8894_v24 = vld [vmem:[#allocation7_spill] sm:$0xff] }
 0x51c   : > { %v4002_v3 = vpop.permute.xlu1 %4001  ;;  %v3869_v1 = vpop.permute.xlu0 %3868 }
 0x51d   : > { %4098 = vst.msk [vmem:[#allocation5] sm:$0xff] %vm4097_vm10, %v4002_v3 }
 0x51e   : > { %3964 = vst.msk [vmem:[#allocation5 + $0x8] sm:$0xff] %vm3962_vm9, %v3869_v1  ;;  %3890 = vrot.lane.b32.xlu1 %v7499_v47, %s5342_s19  ;;  %3761 = vrot.lane.b32.xlu0 %v8893_v5, %s5349_s22  ;;  %v8895_v47 = vld [vmem:[#allocation6_spill] sm:$0xff] }
 0x520   : > { %v4004_v37 = vpop.permute.xlu1 %4003  ;;  %v3606_v6 = vpop.permute.xlu0 %3605 }
 0x521   : > { %4099 = vst.msk [vmem:[#allocation5 + $0x8] sm:$0xff] %vm4097_vm10, %v4004_v37 }
 0x522   : > { %3700 = vst.msk [vmem:[#allocation5 + $0x10] sm:$0xff] %vm3697_vm7, %v3606_v6  ;;  %4025 = vrot.lane.b32.xlu1 %v8894_v24, %s5350_s28  ;;  %3892 = vrot.lane.b32.xlu0 %v7496_v56, %s5342_s19 }
 0x524   : > { %v3608_v53 = vpop.permute.xlu1 %3607  ;;  %v4136_v10 = vpop.permute.xlu0 %4135 }
 0x525   : > { %3701 = vst.msk [vmem:[#allocation5 + $0x18] sm:$0xff] %vm3697_vm7, %v3608_v53 }
 0x526   : > { %4232 = vst.msk [vmem:[#allocation5] sm:$0xff] %vm4231_vm11, %v4136_v10  ;;  %4027 = vrot.lane.b32.xlu1 %v8895_v47, %s5350_s28  ;;  %3629 = vrot.lane.b32.xlu0 %v8894_v24, %s5341_s18 }
 0x528   : > { %v4138_v43 = vpop.permute.xlu1 %4137  ;;  %v3740_v0 = vpop.permute.xlu0 %3739 }
 0x529   : > { %4233 = vst.msk [vmem:[#allocation5 + $0x8] sm:$0xff] %vm4231_vm11, %v4138_v43 }
 0x52a   : > { %3834 = vst.msk [vmem:[#allocation5 + $0x10] sm:$0xff] %vm3831_vm8, %v3740_v0  ;;  %3631 = vrot.lane.b32.xlu1 %v8895_v47, %s5341_s18  ;;  %4159 = vrot.lane.b32.xlu0 %v7741_v52, %s5343_s20 }
 0x52c   : > { %v3871_v56 = vpop.permute.xlu1 %3870  ;;  %v3742_v44 = vpop.permute.xlu0 %3741 }
 0x52d   : > { %v4264_v62 = vld [vmem:[#allocation5] sm:$0xff]  ;;  %3965 = vst.msk [vmem:[#allocation5 + $0x10] sm:$0xff] %vm3962_vm9, %v3871_v56 }
 0x52e   : > { %3835 = vst.msk [vmem:[#allocation5 + $0x18] sm:$0xff] %vm3831_vm8, %v3742_v44  ;;  %5211 = vmatprep.mubr.msk.f32.mxu0 %vm4301_vm12, %v4264_v62  ;;  %4161 = vrot.lane.b32.xlu1 %v7736_v16, %s5343_s20  ;;  %v8903_v56 = vld [vmem:[#allocation18_spill] sm:$0xff] }
 0x52f   : > { %3763 = vrot.lane.b32.xlu0 %v7741_v52, %s5349_s22  ;;  %v8896_v52 = vld [vmem:[#allocation9_spill] sm:$0xff] }
 0x530   : > { %v4006_v50 = vpop.permute.xlu1 %4005  ;;  %v3873_v49 = vpop.permute.xlu0 %3872  ;;  %v4265_v22 = vld [vmem:[#allocation5 + $0x8] sm:$0xff] }
 0x531   : > { %4100 = vst.msk [vmem:[#allocation5 + $0x10] sm:$0xff] %vm4097_vm10, %v4006_v50  ;;  %5212 = vmatmul.mubr.msk.f32.vlgmr.msra.gmra.mrb[16].mxu0 %vm4301_vm12, %v4265_v22 }
 0x532   : > { %3966 = vst.msk [vmem:[#allocation5 + $0x18] sm:$0xff] %vm3962_vm9, %v3873_v49  ;;  %3894 = vrot.lane.b32.xlu1 %v7528_v13, %s5342_s19 }
 0x533   : > { %3765 = vrot.lane.b32.xlu0 %v7736_v16, %s5349_s22 }
 0x534   : > { %v4008_v38 = vpop.permute.xlu1 %4007  ;;  %v3610_v17 = vpop.permute.xlu0 %3609 }
 0x535   : > { %4101 = vst.msk [vmem:[#allocation5 + $0x18] sm:$0xff] %vm4097_vm10, %v4008_v38 }
 0x536   : > { %3702 = vst.msk [vmem:[#allocation5 + $0x20] sm:$0xff] %vm3697_vm7, %v3610_v17  ;;  %4029 = vrot.lane.b32.xlu1 %v8896_v52, %s5350_s28 }
 0x537   : > { %3896 = vrot.lane.b32.xlu0 %v7525_v40, %s5342_s19 }
 0x538   : > { %v3612_v27 = vpop.permute.xlu1 %3611  ;;  %v4140_v61 = vpop.permute.xlu0 %4139 }
 0x539   : > { %3703 = vst.msk [vmem:[#allocation5 + $0x28] sm:$0xff] %vm3697_vm7, %v3612_v27  ;;  %v8906_v27 = vld [vmem:[#allocation22_spill] sm:$0xff] }
 0x53a   : > { %4234 = vst.msk [vmem:[#allocation5 + $0x10] sm:$0xff] %vm4231_vm11, %v4140_v61  ;;  %3633 = vrot.lane.b32.xlu1 %v8896_v52, %s5341_s18 }
 0x53b   : > { %3500 = vrot.lane.b32.xlu0 %v7525_v40, %s5348_s23 }
 0x53c   : > { %v4142_v13 = vpop.permute.xlu1 %4141  ;;  %v3744_v16 = vpop.permute.xlu0 %3743 }
 0x53d   : > { %4235 = vst.msk [vmem:[#allocation5 + $0x18] sm:$0xff] %vm4231_vm11, %v4142_v13 }
 0x53e   : > { %3836 = vst.msk [vmem:[#allocation5 + $0x20] sm:$0xff] %vm3831_vm8, %v3744_v16  ;;  %4163 = vrot.lane.b32.xlu1 %v7758_v39, %s5343_s20 }
 0x53f   : > { %4031 = vrot.lane.b32.xlu0 %v8897_v32, %s5350_s28 }
 0x540   : > { %v3875_v26 = vpop.permute.xlu1 %3874  ;;  %v3746_v55 = vpop.permute.xlu0 %3745 }
 0x541   : > { %v4266_v46 = vld [vmem:[#allocation5 + $0x10] sm:$0xff]  ;;  %3967 = vst.msk [vmem:[#allocation5 + $0x20] sm:$0xff] %vm3962_vm9, %v3875_v26 }
 0x542   : > { %3837 = vst.msk [vmem:[#allocation5 + $0x28] sm:$0xff] %vm3831_vm8, %v3746_v55  ;;  %5214 = vmatprep.mubr.msk.f32.mxu0 %vm4301_vm12, %v4266_v46  ;;  %3767 = vrot.lane.b32.xlu1 %v7758_v39, %s5349_s22  ;;  %v8907_v55 = vld [vmem:[#allocation26_spill] sm:$0xff] }
 0x543   : > { %3635 = vrot.lane.b32.xlu0 %v8897_v32, %s5341_s18 }
 0x544   : > { %v4010_v40 = vpop.permute.xlu1 %4009  ;;  %v3877_v14 = vpop.permute.xlu0 %3876  ;;  %v4267_v58 = vld [vmem:[#allocation5 + $0x18] sm:$0xff] }
 0x545   : > { %4102 = vst.msk [vmem:[#allocation5 + $0x20] sm:$0xff] %vm4097_vm10, %v4010_v40  ;;  %5215 = vmatmul.mubr.msk.f32.gmra.mrb[18].mxu0 %vm4301_vm12, %v4267_v58 }
 0x546   : > { %3968 = vst.msk [vmem:[#allocation5 + $0x28] sm:$0xff] %vm3962_vm9, %v3877_v14  ;;  %3769 = vrot.lane.b32.xlu1 %v7755_v21, %s5349_s22 }
 0x547   : > { %4165 = vrot.lane.b32.xlu0 %v7755_v21, %s5343_s20  ;;  %v8899_v21 = vld [vmem:[#allocation15_spill] sm:$0xff] }
 0x548   : > { %v4012_v42 = vpop.permute.xlu1 %4011  ;;  %v3614_v39 = vpop.permute.xlu0 %3613 }
 0x549   : > { %4103 = vst.msk [vmem:[#allocation5 + $0x28] sm:$0xff] %vm4097_vm10, %v4012_v42 }
 0x54a   : > { %3704 = vst.msk [vmem:[#allocation5 + $0x30] sm:$0xff] %vm3697_vm7, %v3614_v39  ;;  %3502 = vrot.lane.b32.xlu1 %v8898_v57, %s5348_s23 }
 0x54b   : > { %3898 = vrot.lane.b32.xlu0 %v8898_v57, %s5342_s19 }
 0x54c   : > { %v3616_v33 = vpop.permute.xlu1 %3615  ;;  %v4144_v35 = vpop.permute.xlu0 %4143 }
 0x54d   : > { %3705 = vst.msk [vmem:[#allocation5 + $0x38] sm:$0xff] %vm3697_vm7, %v3616_v33 }
 0x54e   : > { %4236 = vst.msk [vmem:[#allocation5 + $0x20] sm:$0xff] %vm4231_vm11, %v4144_v35  ;;  %4033 = vrot.lane.b32.xlu1 %v8899_v21, %s5350_s28 }
 0x54f   : > { %3900 = vrot.lane.b32.xlu0 %v8900_v29, %s5342_s19 }
 0x550   : > { %v4146_v63 = vpop.permute.xlu1 %4145  ;;  %v3748_v34 = vpop.permute.xlu0 %3747 }
 0x551   : > { %4237 = vst.msk [vmem:[#allocation5 + $0x28] sm:$0xff] %vm4231_vm11, %v4146_v63 }
 0x552   : > { %3838 = vst.msk [vmem:[#allocation5 + $0x30] sm:$0xff] %vm3831_vm8, %v3748_v34  ;;  %3637 = vrot.lane.b32.xlu1 %v8899_v21, %s5341_s18  ;;  %v8909_v34 = vld [vmem:[#allocation29_spill] sm:$0xff] }
 0x553   : > { %3504 = vrot.lane.b32.xlu0 %v8900_v29, %s5348_s23 }
 0x554   : > { %v3879_v15 = vpop.permute.xlu1 %3878  ;;  %v3750_v8 = vpop.permute.xlu0 %3749 }
 0x555   : > { %v4268_v36 = vld [vmem:[#allocation5 + $0x20] sm:$0xff]  ;;  %3969 = vst.msk [vmem:[#allocation5 + $0x30] sm:$0xff] %vm3962_vm9, %v3879_v15 }
 0x556   : > { %3839 = vst.msk [vmem:[#allocation5 + $0x38] sm:$0xff] %vm3831_vm8, %v3750_v8  ;;  %5217 = vmatprep.mubr.msk.f32.mxu0 %vm4301_vm12, %v4268_v36  ;;  %4167 = vrot.lane.b32.xlu1 %v7771_v2, %s5343_s20 }
 0x557   : > { %4035 = vrot.lane.b32.xlu0 %v8901_v11, %s5350_s28 }
 0x558   : > { %v4014_v23 = vpop.permute.xlu1 %4013  ;;  %v3881_v51 = vpop.permute.xlu0 %3880  ;;  %v4269_v5 = vld [vmem:[#allocation5 + $0x28] sm:$0xff] }
 0x559   : > { %4104 = vst.msk [vmem:[#allocation5 + $0x30] sm:$0xff] %vm4097_vm10, %v4014_v23  ;;  %5218 = vmatmul.mubr.msk.f32.gmra.mrb[20].mxu0 %vm4301_vm12, %v4269_v5  ;;  %v8910_v5 = vld [vmem:[#allocation32_spill] sm:$0xff] }
 0x55a   : > { %3970 = vst.msk [vmem:[#allocation5 + $0x38] sm:$0xff] %vm3962_vm9, %v3881_v51  ;;  %3771 = vrot.lane.b32.xlu1 %v7771_v2, %s5349_s22 }
 0x55b   : > { %3639 = vrot.lane.b32.xlu0 %v8901_v11, %s5341_s18 }
 0x55c   : > { %v4016_v3 = vpop.permute.xlu1 %4015  ;;  %v3618_v1 = vpop.permute.xlu0 %3617 }
 0x55d   : > { %4105 = vst.msk [vmem:[#allocation5 + $0x38] sm:$0xff] %vm4097_vm10, %v4016_v3 }
 0x55e   : > { %3706 = vst.msk [vmem:[#allocation5 + $0x40] sm:$0xff] %vm3697_vm7, %v3618_v1  ;;  %3773 = vrot.lane.b32.xlu1 %v7766_v48, %s5349_s22 }
 0x55f   : > { %4169 = vrot.lane.b32.xlu0 %v7766_v48, %s5343_s20  ;;  %v8902_v48 = vld [vmem:[#allocation19_spill] sm:$0xff] }
 0x560   : > { %v3620_v37 = vpop.permute.xlu1 %3619  ;;  %v4148_v6 = vpop.permute.xlu0 %4147 }
 0x561   : > { %3707 = vst.msk [vmem:[#allocation5 + $0x48] sm:$0xff] %vm3697_vm7, %v3620_v37  ;;  %v8912_v37 = vld [vmem:[#allocation31_spill] sm:$0xff] }
 0x562   : > { %4238 = vst.msk [vmem:[#allocation5 + $0x30] sm:$0xff] %vm4231_vm11, %v4148_v6  ;;  %3506 = vrot.lane.b32.xlu1 %v7586_v31, %s5348_s23 }
 0x563   : > { %3902 = vrot.lane.b32.xlu0 %v7586_v31, %s5342_s19 }
 0x564   : > { %v4150_v2 = vpop.permute.xlu1 %4149  ;;  %v3752_v24 = vpop.permute.xlu0 %3751 }
 0x565   : > { %4239 = vst.msk [vmem:[#allocation5 + $0x38] sm:$0xff] %vm4231_vm11, %v4150_v2 }
 0x566   : > { %3840 = vst.msk [vmem:[#allocation5 + $0x40] sm:$0xff] %vm3831_vm8, %v3752_v24  ;;  %4037 = vrot.lane.b32.xlu1 %v8902_v48, %s5350_s28 }
 0x567   : > { %3904 = vrot.lane.b32.xlu0 %v7583_v18, %s5342_s19 }
 0x568   : > { %v3883_v53 = vpop.permute.xlu1 %3882  ;;  %v3754_v10 = vpop.permute.xlu0 %3753 }
 0x569   : > { %v4270_v47 = vld [vmem:[#allocation5 + $0x30] sm:$0xff]  ;;  %3971 = vst.msk [vmem:[#allocation5 + $0x40] sm:$0xff] %vm3962_vm9, %v3883_v53  ;;  %v8913_v53 = vld [vmem:[#allocation33_spill] sm:$0xff] }
 0x56a   : > { %3841 = vst.msk [vmem:[#allocation5 + $0x48] sm:$0xff] %vm3831_vm8, %v3754_v10  ;;  %5220 = vmatprep.mubr.msk.f32.mxu0 %vm4301_vm12, %v4270_v47  ;;  %3641 = vrot.lane.b32.xlu1 %v8902_v48, %s5341_s18 }
 0x56b   : > { %3508 = vrot.lane.b32.xlu0 %v7583_v18, %s5348_s23 }
 0x56c   : > { %v4018_v31 = vpop.permute.xlu1 %4017  ;;  %v3885_v43 = vpop.permute.xlu0 %3884  ;;  %v4271_v0 = vld [vmem:[#allocation5 + $0x38] sm:$0xff] }
 0x56d   : > { %4106 = vst.msk [vmem:[#allocation5 + $0x40] sm:$0xff] %vm4097_vm10, %v4018_v31  ;;  %5221 = vmatmul.mubr.msk.f32.gmra.mrb[22].mxu0 %vm4301_vm12, %v4271_v0 }
 0x56e   : > { %3972 = vst.msk [vmem:[#allocation5 + $0x48] sm:$0xff] %vm3962_vm9, %v3885_v43  ;;  %4171 = vrot.lane.b32.xlu1 %v7788_v28, %s5343_s20 }
 0x56f   : > { %4039 = vrot.lane.b32.xlu0 %v8903_v56, %s5350_s28 }
 0x570   : > { %v4020_v44 = vpop.permute.xlu1 %4019  ;;  %v3622_v62 = vpop.permute.xlu0 %3621 }
 0x571   : > { %4107 = vst.msk [vmem:[#allocation5 + $0x48] sm:$0xff] %vm4097_vm10, %v4020_v44 }
 0x572   : > { %3708 = vst.msk [vmem:[#allocation5 + $0x50] sm:$0xff] %vm3697_vm7, %v3622_v62  ;;  %3775 = vrot.lane.b32.xlu1 %v7788_v28, %s5349_s22  ;;  %v8904_v28 = vld [vmem:[#allocation23_spill] sm:$0xff] }
 0x573   : > { %3643 = vrot.lane.b32.xlu0 %v8903_v56, %s5341_s18 }
 0x574   : > { %v3624_v18 = vpop.permute.xlu1 %3623  ;;  %v4152_v50 = vpop.permute.xlu0 %4151 }
 0x575   : > { %3709 = vst.msk [vmem:[#allocation5 + $0x58] sm:$0xff] %vm3697_vm7, %v3624_v18 }
 0x576   : > { %4240 = vst.msk [vmem:[#allocation5 + $0x40] sm:$0xff] %vm4231_vm11, %v4152_v50  ;;  %3777 = vrot.lane.b32.xlu1 %v7785_v25, %s5349_s22 }
 0x577   : > { %4173 = vrot.lane.b32.xlu0 %v7785_v25, %s5343_s20  ;;  %v8905_v25 = vld [vmem:[#allocation27_spill] sm:$0xff] }
 0x578   : > { %v4154_v49 = vpop.permute.xlu1 %4153  ;;  %v3756_v22 = vpop.permute.xlu0 %3755 }
 0x579   : > { %4241 = vst.msk [vmem:[#allocation5 + $0x48] sm:$0xff] %vm4231_vm11, %v4154_v49 }
 0x57a   : > { %3842 = vst.msk [vmem:[#allocation5 + $0x50] sm:$0xff] %vm3831_vm8, %v3756_v22  ;;  %3510 = vrot.lane.b32.xlu1 %v8904_v28, %s5348_s23 }
 0x57b   : > { %3906 = vrot.lane.b32.xlu0 %v8904_v28, %s5342_s19  ;;  %v8915_v28 = vld [vmem:[#allocation37_spill] sm:$0xff] }
 0x57c   : > { %v3887_v38 = vpop.permute.xlu1 %3886  ;;  %v3758_v17 = vpop.permute.xlu0 %3757 }
 0x57d   : > { %v4272_v52 = vld [vmem:[#allocation5 + $0x40] sm:$0xff]  ;;  %3973 = vst.msk [vmem:[#allocation5 + $0x50] sm:$0xff] %vm3962_vm9, %v3887_v38 }
 0x57e   : > { %3843 = vst.msk [vmem:[#allocation5 + $0x58] sm:$0xff] %vm3831_vm8, %v3758_v17  ;;  %5223 = vmatprep.mubr.msk.f32.mxu0 %vm4301_vm12, %v4272_v52  ;;  %4041 = vrot.lane.b32.xlu1 %v8905_v25, %s5350_s28 }
 0x57f   : > { %3908 = vrot.lane.b32.xlu0 %v8906_v27, %s5342_s19 }
 0x580   : > { %v4022_v61 = vpop.permute.xlu1 %4021  ;;  %v3889_v13 = vpop.permute.xlu0 %3888  ;;  %v4273_v16 = vld [vmem:[#allocation5 + $0x48] sm:$0xff] }
 0x581   : > { %4108 = vst.msk [vmem:[#allocation5 + $0x50] sm:$0xff] %vm4097_vm10, %v4022_v61  ;;  %5224 = vmatmul.mubr.msk.f32.gmra.mrb[24].mxu0 %vm4301_vm12, %v4273_v16  ;;  %v2962_v61 = vld [vmem:[#allocation4 + $0x188] sm:$0xff] }
 0x582   : > { %3974 = vst.msk [vmem:[#allocation5 + $0x58] sm:$0xff] %vm3962_vm9, %v3889_v13  ;;  %3645 = vrot.lane.b32.xlu1 %v8905_v25, %s5341_s18 }
 0x583   : > { %3512 = vrot.lane.b32.xlu0 %v8906_v27, %s5348_s23  ;;  %v2961_v27 = vld [vmem:[#allocation4 + $0x180] sm:$0xff] }
 0x584   : > { %v4024_v32 = vpop.permute.xlu1 %4023  ;;  %v3626_v26 = vpop.permute.xlu0 %3625 }
 0x585   : > { %4109 = vst.msk [vmem:[#allocation5 + $0x58] sm:$0xff] %vm4097_vm10, %v4024_v32  ;;  %v3596_v32 = vrot.slane %v2961_v27, 1 }
 0x586   : > { %3710 = vst.msk [vmem:[#allocation5 + $0x60] sm:$0xff] %vm3697_vm7, %v3626_v26  ;;  %4175 = vrot.lane.b32.xlu1 %v7801_v19, %s5343_s20  ;;  %v3597_v26 = vrot.slane %v2962_v61, 1 }
 0x587   : > { %4043 = vrot.lane.b32.xlu0 %v8907_v55, %s5350_s28 }
 0x588   : > { %v3628_v46 = vpop.permute.xlu1 %3627  ;;  %v4156_v40 = vpop.permute.xlu0 %4155 }
 0x589   : > { %3711 = vst.msk [vmem:[#allocation5 + $0x68] sm:$0xff] %vm3697_vm7, %v3628_v46 }
 0x58a   : > { %4242 = vst.msk [vmem:[#allocation5 + $0x50] sm:$0xff] %vm4231_vm11, %v4156_v40  ;;  %3779 = vrot.lane.b32.xlu1 %v7801_v19, %s5349_s22  ;;  %v2963_v40 = vld [vmem:[#allocation4 + $0x190] sm:$0x3] }
 0x58b   : > { %3647 = vrot.lane.b32.xlu0 %v8907_v55, %s5341_s18 }
 0x58c   : > { %v4158_v14 = vpop.permute.xlu1 %4157  ;;  %v3760_v58 = vpop.permute.xlu0 %3759 }
 0x58d   : > { %4243 = vst.msk [vmem:[#allocation5 + $0x58] sm:$0xff] %vm4231_vm11, %v4158_v14 }
 0x58e   : > { %3844 = vst.msk [vmem:[#allocation5 + $0x60] sm:$0xff] %vm3831_vm8, %v3760_v58  ;;  %3781 = vrot.lane.b32.xlu1 %v7796_v7, %s5349_s22 }
 0x58f   : > { %4177 = vrot.lane.b32.xlu0 %v7796_v7, %s5343_s20  ;;  %v8908_v7 = vld [vmem:[#allocation30_spill] sm:$0xff] }
 0x590   : > { %v3891_v42 = vpop.permute.xlu1 %3890  ;;  %v3762_v39 = vpop.permute.xlu0 %3761 }
 0x591   : > { %v4274_v57 = vld [vmem:[#allocation5 + $0x50] sm:$0xff]  ;;  %3975 = vst.msk [vmem:[#allocation5 + $0x60] sm:$0xff] %vm3962_vm9, %v3891_v42  ;;  %v3730_v42 = vrot.slane %v2961_v27, 2 }
 0x592   : > { %3845 = vst.msk [vmem:[#allocation5 + $0x68] sm:$0xff] %vm3831_vm8, %v3762_v39  ;;  %5226 = vmatprep.mubr.msk.f32.mxu0 %vm4301_vm12, %v4274_v57  ;;  %3514 = vrot.lane.b32.xlu1 %v7644_v45, %s5348_s23  ;;  %v3731_v39 = vrot.slane %v2962_v61, 2  ;;  %v3599_v57 = vrot.slane %v2963_v40, 1 }
 0x593   : > { %3910 = vrot.lane.b32.xlu0 %v7644_v45, %s5342_s19 }
 0x594   : > { %v4026_v19 = vpop.permute.xlu1 %4025  ;;  %v3893_v33 = vpop.permute.xlu0 %3892  ;;  %v4275_v35 = vld [vmem:[#allocation5 + $0x58] sm:$0xff] }
 0x595   : > { %4110 = vst.msk [vmem:[#allocation5 + $0x60] sm:$0xff] %vm4097_vm10, %v4026_v19  ;;  %5227 = vmatmul.mubr.msk.f32.gmra.mrb[26].mxu0 %vm4301_vm12, %v4275_v35  ;;  %v3600_v35 = vsel %vm1132_vm4, %v3597_v26, %v3599_v57 }
 0x596   : > { %3976 = vst.msk [vmem:[#allocation5 + $0x68] sm:$0xff] %vm3962_vm9, %v3893_v33  ;;  %4045 = vrot.lane.b32.xlu1 %v8908_v7, %s5350_s28 }
 0x597   : > { %3912 = vrot.lane.b32.xlu0 %v7641_v9, %s5342_s19 }
 0x598   : > { %v4028_v21 = vpop.permute.xlu1 %4027  ;;  %v3630_v29 = vpop.permute.xlu0 %3629 }
 0x599   : > { %4111 = vst.msk [vmem:[#allocation5 + $0x68] sm:$0xff] %vm4097_vm10, %v4028_v21 }
 0x59a   : > { %3712 = vst.msk [vmem:[#allocation5 + $0x70] sm:$0xff] %vm3697_vm7, %v3630_v29  ;;  %3649 = vrot.lane.b32.xlu1 %v8908_v7, %s5341_s18  ;;  %v3732_v7 = vsel %vm1342_vm5, %v3730_v42, %v3731_v39 }
 0x59b   : > { %3516 = vrot.lane.b32.xlu0 %v7641_v9, %s5348_s23 }
 0x59c   : > { %v3632_v45 = vpop.permute.xlu1 %3631  ;;  %v4160_v63 = vpop.permute.xlu0 %4159 }
 0x59d   : > { %3713 = vst.msk [vmem:[#allocation5 + $0x78] sm:$0xff] %vm3697_vm7, %v3632_v45 }
 0x59e   : > { %4244 = vst.msk [vmem:[#allocation5 + $0x60] sm:$0xff] %vm4231_vm11, %v4160_v63  ;;  %4179 = vrot.lane.b32.xlu1 %v7818_v60, %s5343_s20  ;;  %v3733_v63 = vrot.slane %v2963_v40, 2 }
 0x59f   : > { %4047 = vrot.lane.b32.xlu0 %v8909_v34, %s5350_s28 }
 0x5a0   : > { %v4162_v15 = vpop.permute.xlu1 %4161 }
 0x5a1   : > { %v3764_v8 = vpop.permute.xlu0 %3763  ;;  %4245 = vst.msk [vmem:[#allocation5 + $0x68] sm:$0xff] %vm4231_vm11, %v4162_v15 }
 0x5a2   : > { %3846 = vst.msk [vmem:[#allocation5 + $0x70] sm:$0xff] %vm3831_vm8, %v3764_v8  ;;  %3783 = vrot.lane.b32.xlu1 %v7818_v60, %s5349_s22  ;;  %v2964_v8 = vld [vmem:[#allocation4 + $0x198] sm:$0xff] }
 0x5a3   : > { %3651 = vrot.lane.b32.xlu0 %v8909_v34, %s5341_s18 }
 0x5a4   : > { %v3895_v9 = vpop.permute.xlu1 %3894 }
 0x5a5   : > { %v3766_v36 = vpop.permute.xlu0 %3765  ;;  %v4276_v11 = vld [vmem:[#allocation5 + $0x60] sm:$0xff]  ;;  %3977 = vst.msk [vmem:[#allocation5 + $0x70] sm:$0xff] %vm3962_vm9, %v3895_v9  ;;  %v2965_v9 = vld [vmem:[#allocation4 + $0x1a0] sm:$0xff] }
 0x5a6   : > { %3847 = vst.msk [vmem:[#allocation5 + $0x78] sm:$0xff] %vm3831_vm8, %v3766_v36  ;;  %5229 = vmatprep.mubr.msk.f32.mxu0 %vm4301_vm12, %v4276_v11  ;;  %3785 = vrot.lane.b32.xlu1 %v7815_v4, %s5349_s22  ;;  %v2966_v36 = vld [vmem:[#allocation4 + $0x1a8] sm:$0x3]  ;;  %v3734_v11 = vsel %vm1342_vm5, %v3731_v39, %v3733_v63 }
 0x5a7   : > { %4181 = vrot.lane.b32.xlu0 %v7815_v4, %s5343_s20  ;;  %v8911_v4 = vld [vmem:[#allocation34_spill] sm:$0xff] }
 0x5a8   : > { %v4030_v23 = vpop.permute.xlu1 %4029  ;;  %v4277_v51 = vld [vmem:[#allocation5 + $0x68] sm:$0xff] }
 0x5a9   : > { %v3897_v60 = vpop.permute.xlu0 %3896  ;;  %4112 = vst.msk [vmem:[#allocation5 + $0x70] sm:$0xff] %vm4097_vm10, %v4030_v23  ;;  %5230 = vmatmul.mubr.msk.f32.gmra.mrb[28].mxu0 %vm4301_vm12, %v4277_v51  ;;  %v3996_v23 = vrot.slane %v2964_v8, 1  ;;  %v3999_v51 = vrot.slane %v2966_v36, 1 }
 0x5aa   : > { %3978 = vst.msk [vmem:[#allocation5 + $0x78] sm:$0xff] %vm3962_vm9, %v3897_v60  ;;  %3518 = vrot.lane.b32.xlu1 %v8910_v5, %s5348_s23  ;;  %v3997_v60 = vrot.slane %v2965_v9, 1 }
 0x5ab   : > { %3914 = vrot.lane.b32.xlu0 %v8910_v5, %s5342_s19 }
 0x5ac   : > { %v3634_v3 = vpop.permute.xlu1 %3633 }
 0x5ad   : > { %v3501_v1 = vpop.permute.xlu0 %3500  ;;  %3714 = vst.msk [vmem:[#allocation5 + $0x80] sm:$0xff] %vm3697_vm7, %v3634_v3 }
 0x5ae   : > { %3580 = vst.msk [vmem:[#allocation5 + $0x88] sm:$0xff] %vm3562_vm6, %v3501_v1  ;;  %4049 = vrot.lane.b32.xlu1 %v8911_v4, %s5350_s28 }
 0x5af   : > { %3916 = vrot.lane.b32.xlu0 %v8912_v37, %s5342_s19 }
 0x5b0   : > { %v4164_v6 = vpop.permute.xlu1 %4163 }
 0x5b1   : > { %v4032_v2 = vpop.permute.xlu0 %4031  ;;  %4246 = vst.msk [vmem:[#allocation5 + $0x70] sm:$0xff] %vm4231_vm11, %v4164_v6  ;;  %v3998_v6 = vsel %vm1132_vm4, %v3996_v23, %v3997_v60 }
 0x5b2   : > { %4113 = vst.msk [vmem:[#allocation5 + $0x78] sm:$0xff] %vm4097_vm10, %v4032_v2  ;;  %3653 = vrot.lane.b32.xlu1 %v8911_v4, %s5341_s18  ;;  %v4130_v4 = vrot.slane %v2964_v8, 2  ;;  %v4000_v2 = vsel %vm1132_vm4, %v3997_v60, %v3999_v51 }
 0x5b3   : > { %3520 = vrot.lane.b32.xlu0 %v8912_v37, %s5348_s23  ;;  %v4131_v37 = vrot.slane %v2965_v9, 2 }
 0x5b4   : > { %v3768_v24 = vpop.permute.xlu1 %3767 }
 0x5b5   : > { %v3636_v48 = vpop.permute.xlu0 %3635  ;;  %3848 = vst.msk [vmem:[#allocation5 + $0x80] sm:$0xff] %vm3831_vm8, %v3768_v24  ;;  %v4133_v24 = vrot.slane %v2966_v36, 2 }
 0x5b6   : > { %3715 = vst.msk [vmem:[#allocation5 + $0x88] sm:$0xff] %vm3697_vm7, %v3636_v48  ;;  %4183 = vrot.lane.b32.xlu1 %v7831_v41, %s5343_s20 }
 0x5b7   : > { %4051 = vrot.lane.b32.xlu0 %v8913_v53, %s5350_s28 }
 0x5b8   : > { %v3770_v10 = vpop.permute.xlu1 %3769  ;;  %v4278_v31 = vld [vmem:[#allocation5 + $0x70] sm:$0xff] }
 0x5b9   : > { %v4166_v47 = vpop.permute.xlu0 %4165  ;;  %3849 = vst.msk [vmem:[#allocation5 + $0x88] sm:$0xff] %vm3831_vm8, %v3770_v10  ;;  %5232 = vmatprep.mubr.msk.f32.mxu0 %vm4301_vm12, %v4278_v31  ;;  %v4132_v10 = vsel %vm1342_vm5, %v4130_v4, %v4131_v37 }
 0x5ba   : > { %4247 = vst.msk [vmem:[#allocation5 + $0x78] sm:$0xff] %vm4231_vm11, %v4166_v47  ;;  %3787 = vrot.lane.b32.xlu1 %v7831_v41, %s5349_s22  ;;  %v4134_v47 = vsel %vm1342_vm5, %v4131_v37, %v4133_v24 }
 0x5bb   : > { %3655 = vrot.lane.b32.xlu0 %v8913_v53, %s5341_s18 }
 0x5bc   : > { %v3503_v43 = vpop.permute.xlu1 %3502 }
 0x5bd   : > { %v3899_v0 = vpop.permute.xlu0 %3898  ;;  %3581 = vst.msk [vmem:[#allocation5 + $0x90] sm:$0xff] %vm3562_vm6, %v3503_v43 }
 0x5be   : > { %3979 = vst.msk [vmem:[#allocation5 + $0x80] sm:$0xff] %vm3962_vm9, %v3899_v0  ;;  %3789 = vrot.lane.b32.xlu1 %v7826_v54, %s5349_s22 }
 0x5bf   : > { %4185 = vrot.lane.b32.xlu0 %v7826_v54, %s5343_s20  ;;  %v8914_v54 = vld [vmem:[#allocation38_spill] sm:$0xff] }
 0x5c0   : > { %v4034_v56 = vpop.permute.xlu1 %4033 }
 0x5c1   : > { %v3901_v44 = vpop.permute.xlu0 %3900  ;;  %v4279_v62 = vld [vmem:[#allocation5 + $0x78] sm:$0xff]  ;;  %4114 = vst.msk [vmem:[#allocation5 + $0x80] sm:$0xff] %vm4097_vm10, %v4034_v56 }
 0x5c2   : > { %3980 = vst.msk [vmem:[#allocation5 + $0x88] sm:$0xff] %vm3962_vm9, %v3901_v44  ;;  %5233 = vmatmul.mubr.msk.f32.gmra.mrb[30].mxu0 %vm4301_vm12, %v4279_v62  ;;  %3522 = vrot.lane.b32.xlu1 %v7697_v20, %s5348_s23 }
 0x5c3   : > { %3918 = vrot.lane.b32.xlu0 %v7697_v20, %s5342_s19 }
 0x5c4   : > { %v3638_v41 = vpop.permute.xlu1 %3637 }
 0x5c5   : > { %v3505_v18 = vpop.permute.xlu0 %3504  ;;  %3716 = vst.msk [vmem:[#allocation5 + $0x90] sm:$0xff] %vm3697_vm7, %v3638_v41 }
 0x5c6   : > { %3582 = vst.msk [vmem:[#allocation5 + $0x98] sm:$0xff] %vm3562_vm6, %v3505_v18  ;;  %4053 = vrot.lane.b32.xlu1 %v8914_v54, %s5350_s28  ;;  %v8451_v18 = vld [vmem:[%s8668_s7] ss:$0 sm:$0xff] }
 0x5c7   : > { %3920 = vrot.lane.b32.xlu0 %v7694_v59, %s5342_s19 }
 0x5c8   : > { %v4168_v50 = vpop.permute.xlu1 %4167 }
 0x5c9   : > { %v4036_v49 = vpop.permute.xlu0 %4035  ;;  %4248 = vst.msk [vmem:[#allocation5 + $0x80] sm:$0xff] %vm4231_vm11, %v4168_v50 }
 0x5ca   : > { %4115 = vst.msk [vmem:[#allocation5 + $0x88] sm:$0xff] %vm4097_vm10, %v4036_v49  ;;  %3657 = vrot.lane.b32.xlu1 %v8914_v54, %s5341_s18  ;;  %v8456_v49 = vld [vmem:[%s8669_s8] ss:$0 sm:$0xff] }
 0x5cb   : > { %3524 = vrot.lane.b32.xlu0 %v7694_v59, %s5348_s23 }
 0x5cc   : > { %v3772_v20 = vpop.permute.xlu1 %3771 }
 0x5cd   : > { %v3640_v22 = vpop.permute.xlu0 %3639  ;;  %3850 = vst.msk [vmem:[#allocation5 + $0x90] sm:$0xff] %vm3831_vm8, %v3772_v20 }
 0x5ce   : > { %3717 = vst.msk [vmem:[#allocation5 + $0x98] sm:$0xff] %vm3697_vm7, %v3640_v22  ;;  %4187 = vrot.lane.b32.xlu1 %v7846_v30, %s5343_s20 }
 0x5cf   : > { %4055 = vrot.lane.b32.xlu0 %v8915_v28, %s5350_s28 }
 0x5d0   : > { %v3774_v38 = vpop.permute.xlu1 %3773  ;;  %v4280_v52 = vld [vmem:[#allocation5 + $0x80] sm:$0xff] }
 0x5d1   : > { %v4170_v17 = vpop.permute.xlu0 %4169  ;;  %3851 = vst.msk [vmem:[#allocation5 + $0x98] sm:$0xff] %vm3831_vm8, %v3774_v38  ;;  %5235 = vmatprep.mubr.msk.f32.mxu0 %vm4301_vm12, %v4280_v52 }
 0x5d2   : > { %4249 = vst.msk [vmem:[#allocation5 + $0x88] sm:$0xff] %vm4231_vm11, %v4170_v17  ;;  %3791 = vrot.lane.b32.xlu1 %v7846_v30, %s5349_s22 }
 0x5d3   : > { %3659 = vrot.lane.b32.xlu0 %v8915_v28, %s5341_s18 }
 0x5d4   : > { %v3507_v59 = vpop.permute.xlu1 %3506 }
 0x5d5   : > { %v3903_v25 = vpop.permute.xlu0 %3902  ;;  %3583 = vst.msk [vmem:[#allocation5 + $0xa0] sm:$0xff] %vm3562_vm6, %v3507_v59 }
 0x5d6   : > { %3981 = vst.msk [vmem:[#allocation5 + $0x90] sm:$0xff] %vm3962_vm9, %v3903_v25  ;;  %3793 = vrot.lane.b32.xlu1 %v7843_v12, %s5349_s22 }
 0x5d7   : > { %4189 = vrot.lane.b32.xlu0 %v7843_v12, %s5343_s20  ;;  %v3598_v12 = vsel %vm1132_vm4, %v3596_v32, %v3597_v26 }
 0x5d8   : > { %v4038_v13 = vpop.permute.xlu1 %4037 }
 0x5d9   : > { %v3905_v16 = vpop.permute.xlu0 %3904  ;;  %v4281_v30 = vld [vmem:[#allocation5 + $0x88] sm:$0xff]  ;;  %4116 = vst.msk [vmem:[#allocation5 + $0x90] sm:$0xff] %vm4097_vm10, %v4038_v13 }
 0x5da   : > { %3982 = vst.msk [vmem:[#allocation5 + $0x98] sm:$0xff] %vm3962_vm9, %v3905_v16  ;;  %5236 = vmatmul.mubr.msk.f32.gmra.mrb[32].mxu0 %vm4301_vm12, %v4281_v30  ;;  %3526 = vrot.lane.b32.xlu1 %v2961_v27, %s5348_s23 }
 0x5db   : > { %3922 = vrot.lane.b32.xlu0 %v2961_v27, %s5342_s19 }
 0x5dc   : > { %v3642_v55 = vpop.permute.xlu1 %3641 }
 0x5dd   : > { %v3509_v46 = vpop.permute.xlu0 %3508  ;;  %3718 = vst.msk [vmem:[#allocation5 + $0xa0] sm:$0xff] %vm3697_vm7, %v3642_v55 }
 0x5de   : > { %3584 = vst.msk [vmem:[#allocation5 + $0xa8] sm:$0xff] %vm3562_vm6, %v3509_v46  ;;  %4057 = vrot.lane.b32.xlu1 %v3598_v12, %s5350_s28 }
 0x5df   : > { %3924 = vrot.lane.b32.xlu0 %v2962_v61, %s5342_s19 }
 0x5e0   : > { %v4172_v14 = vpop.permute.xlu1 %4171 }
 0x5e1   : > { %v4040_v58 = vpop.permute.xlu0 %4039  ;;  %4250 = vst.msk [vmem:[#allocation5 + $0x90] sm:$0xff] %vm4231_vm11, %v4172_v14 }
 0x5e2   : > { %4117 = vst.msk [vmem:[#allocation5 + $0x98] sm:$0xff] %vm4097_vm10, %v4040_v58  ;;  %3661 = vrot.lane.b32.xlu1 %v3598_v12, %s5341_s18 }
 0x5e3   : > { %3528 = vrot.lane.b32.xlu0 %v2962_v61, %s5348_s23 }
 0x5e4   : > { %v3776_v19 = vpop.permute.xlu1 %3775 }
 0x5e5   : > { %v3644_v33 = vpop.permute.xlu0 %3643  ;;  %3852 = vst.msk [vmem:[#allocation5 + $0xa0] sm:$0xff] %vm3831_vm8, %v3776_v19 }
 0x5e6   : > { %3719 = vst.msk [vmem:[#allocation5 + $0xa8] sm:$0xff] %vm3697_vm7, %v3644_v33  ;;  %4191 = vrot.lane.b32.xlu1 %v3732_v7, %s5343_s20 }
 0x5e7   : > { %4059 = vrot.lane.b32.xlu0 %v3600_v35, %s5350_s28 }
 0x5e8   : > { %v3778_v21 = vpop.permute.xlu1 %3777  ;;  %v4282_v45 = vld [vmem:[#allocation5 + $0x90] sm:$0xff] }
 0x5e9   : > { %v4174_v29 = vpop.permute.xlu0 %4173  ;;  %3853 = vst.msk [vmem:[#allocation5 + $0xa8] sm:$0xff] %vm3831_vm8, %v3778_v21  ;;  %5238 = vmatprep.mubr.msk.f32.mxu0 %vm4301_vm12, %v4282_v45 }
 0x5ea   : > { %4251 = vst.msk [vmem:[#allocation5 + $0x98] sm:$0xff] %vm4231_vm11, %v4174_v29  ;;  %3795 = vrot.lane.b32.xlu1 %v3732_v7, %s5349_s22 }
 0x5eb   : > { %3663 = vrot.lane.b32.xlu0 %v3600_v35, %s5341_s18 }
 0x5ec   : > { %v3511_v34 = vpop.permute.xlu1 %3510 }
 0x5ed   : > { %v3907_v15 = vpop.permute.xlu0 %3906  ;;  %3585 = vst.msk [vmem:[#allocation5 + $0xb0] sm:$0xff] %vm3562_vm6, %v3511_v34 }
 0x5ee   : > { %3983 = vst.msk [vmem:[#allocation5 + $0xa0] sm:$0xff] %vm3962_vm9, %v3907_v15  ;;  %3797 = vrot.lane.b32.xlu1 %v3734_v11, %s5349_s22 }
 0x5ef   : > { %4193 = vrot.lane.b32.xlu0 %v3734_v11, %s5343_s20 }
 0x5f0   : > { %v4042_v5 = vpop.permute.xlu1 %4041 }
 0x5f1   : > { %v3909_v3 = vpop.permute.xlu0 %3908  ;;  %v4283_v1 = vld [vmem:[#allocation5 + $0x98] sm:$0xff]  ;;  %4118 = vst.msk [vmem:[#allocation5 + $0xa0] sm:$0xff] %vm4097_vm10, %v4042_v5 }
 0x5f2   : > { %3984 = vst.msk [vmem:[#allocation5 + $0xa8] sm:$0xff] %vm3962_vm9, %v3909_v3  ;;  %5239 = vmatmul.mubr.msk.f32.gmra.mrb[34].mxu0 %vm4301_vm12, %v4283_v1  ;;  %3928 = vrot.lane.b32.xlu1 %v2965_v9, %s5342_s19 }
 0x5f3   : > { %3926 = vrot.lane.b32.xlu0 %v2964_v8, %s5342_s19 }
 0x5f4   : > { %v3646_v48 = vpop.permute.xlu1 %3645 }
 0x5f5   : > { %v3513_v53 = vpop.permute.xlu0 %3512  ;;  %3720 = vst.msk [vmem:[#allocation5 + $0xb0] sm:$0xff] %vm3697_vm7, %v3646_v48 }
 0x5f6   : > { %3586 = vst.msk [vmem:[#allocation5 + $0xb8] sm:$0xff] %vm3562_vm6, %v3513_v53  ;;  %4063 = vrot.lane.b32.xlu1 %v4000_v2, %s5350_s28 }
 0x5f7   : > { %4061 = vrot.lane.b32.xlu0 %v3998_v6, %s5350_s28 }
 0x5f8   : > { %v4176_v31 = vpop.permute.xlu1 %4175 }
 0x5f9   : > { %v4044_v43 = vpop.permute.xlu0 %4043  ;;  %4252 = vst.msk [vmem:[#allocation5 + $0xa0] sm:$0xff] %vm4231_vm11, %v4176_v31 }
 0x5fa   : > { %4119 = vst.msk [vmem:[#allocation5 + $0xa8] sm:$0xff] %vm4097_vm10, %v4044_v43  ;;  %4197 = vrot.lane.b32.xlu1 %v4134_v47, %s5343_s20 }
 0x5fb   : > { %4195 = vrot.lane.b32.xlu0 %v4132_v10, %s5343_s20 }
 0x5fc   : > { %v3780_v0 = vpop.permute.xlu1 %3779 }
 0x5fd   : > { %v3648_v56 = vpop.permute.xlu0 %3647  ;;  %3854 = vst.msk [vmem:[#allocation5 + $0xb0] sm:$0xff] %vm3831_vm8, %v3780_v0 }
 0x5fe   : > { %3721 = vst.msk [vmem:[#allocation5 + $0xb8] sm:$0xff] %vm3697_vm7, %v3648_v56 }
 0x600   : > { %v3782_v44 = vpop.permute.xlu1 %3781  ;;  %v4284_v41 = vld [vmem:[#allocation5 + $0xa0] sm:$0xff] }
 0x601   : > { %v4178_v62 = vpop.permute.xlu0 %4177  ;;  %3855 = vst.msk [vmem:[#allocation5 + $0xb8] sm:$0xff] %vm3831_vm8, %v3782_v44  ;;  %5241 = vmatprep.mubr.msk.f32.mxu0 %vm4301_vm12, %v4284_v41 }
 0x602   : > { %4253 = vst.msk [vmem:[#allocation5 + $0xa8] sm:$0xff] %vm4231_vm11, %v4178_v62 }
 0x604   : > { %v3515_v54 = vpop.permute.xlu1 %3514  ;;  %v5213_v50 = vpop.f32.mrb[16].mxu0 }
 0x605   : > { %3587 = vst.msk [vmem:[#allocation5 + $0xc0] sm:$0xff] %vm3562_vm6, %v3515_v54  ;;  %v4635_v20 = vmul.f32 %v5213_v50, %v8451_v18  ;;  %v3911_v22 = vpop.permute.xlu0 %3910  ;;  %v4468_v28 = vpop.f32.mrb[17].mxu0 }
 0x606   : > { %3985 = vst.msk [vmem:[#allocation5 + $0xb0] sm:$0xff] %vm3962_vm9, %v3911_v22  ;;  %v4634_v38 = vmul.f32 %v8451_v18, %v4468_v28 }
 0x607   : > { %v4674_v17 = vadd.f32 %v8456_v49, %v4635_v20 }
 0x608   : > { %v4673_v52 = vadd.f32 %v8456_v49, %v4634_v38  ;;  %v4046_v59 = vpop.permute.xlu1 %4045 }
 0x609   : > { %v4285_v25 = vld [vmem:[#allocation5 + $0xa8] sm:$0xff]  ;;  %v4706_v27 = vmax.f32 %v4674_v17, 0.0  ;;  %4120 = vst.msk [vmem:[#allocation5 + $0xb0] sm:$0xff] %vm4097_vm10, %v4046_v59  ;;  %v3913_v61 = vpop.permute.xlu0 %3912 }
 0x60a   : > { %5242 = vmatmul.mubr.msk.f32.gmra.mrb[36].mxu0 %vm4301_vm12, %v4285_v25  ;;  %v4705_v13 = vmax.f32 %v4673_v52, 0.0  ;;  %3986 = vst.msk [vmem:[#allocation5 + $0xb8] sm:$0xff] %vm3962_vm9, %v3913_v61 }
 0x60b   : > { %4738 = vst.msk [vmem:[%s8468_s27 + $0x8] sm:$0xff] %vm772_vm3, %v4706_v27 }
 0x60c   : > { %4737 = vst.msk [vmem:[%s8468_s27] sm:$0xff] %vm772_vm3, %v4705_v13  ;;  %v3650_v16 = vpop.permute.xlu1 %3649 }
 0x60d   : > { %3722 = vst.msk [vmem:[#allocation5 + $0xc0] sm:$0xff] %vm3697_vm7, %v3650_v16  ;;  %v3517_v30 = vpop.permute.xlu0 %3516 }
 0x60e   : > { %3588 = vst.msk [vmem:[#allocation5 + $0xc8] sm:$0xff] %vm3562_vm6, %v3517_v30 }
 0x610   : > { %v4180_v32 = vpop.permute.xlu1 %4179 }
 0x611   : > { %4254 = vst.msk [vmem:[#allocation5 + $0xb0] sm:$0xff] %vm4231_vm11, %v4180_v32  ;;  %v4048_v26 = vpop.permute.xlu0 %4047 }
 0x612   : > { %4121 = vst.msk [vmem:[#allocation5 + $0xb8] sm:$0xff] %vm4097_vm10, %v4048_v26 }
 0x614   : > { %v3784_v55 = vpop.permute.xlu1 %3783 }
 0x615   : > { %3856 = vst.msk [vmem:[#allocation5 + $0xc0] sm:$0xff] %vm3831_vm8, %v3784_v55  ;;  %v3652_v46 = vpop.permute.xlu0 %3651 }
 0x616   : > { %3723 = vst.msk [vmem:[#allocation5 + $0xc8] sm:$0xff] %vm3697_vm7, %v3652_v46 }
 0x618   : > { %v3786_v12 = vpop.permute.xlu1 %3785  ;;  %v5216_v40 = vpop.f32.mrb[18].mxu0  ;;  %v4286_v14 = vld [vmem:[#allocation5 + $0xb0] sm:$0xff] }
 0x619   : > { %3857 = vst.msk [vmem:[#allocation5 + $0xc8] sm:$0xff] %vm3831_vm8, %v3786_v12  ;;  %v4637_v58 = vmul.f32 %v5216_v40, %v8451_v18  ;;  %v4182_v42 = vpop.permute.xlu0 %4181  ;;  %v4478_v39 = vpop.f32.mrb[19].mxu0  ;;  %5244 = vmatprep.mubr.msk.f32.mxu0 %vm4301_vm12, %v4286_v14 }
 0x61a   : > { %4255 = vst.msk [vmem:[#allocation5 + $0xb8] sm:$0xff] %vm4231_vm11, %v4182_v42  ;;  %v4636_v57 = vmul.f32 %v8451_v18, %v4478_v39 }
 0x61b   : > { %v4676_v19 = vadd.f32 %v8456_v49, %v4637_v58 }
 0x61c   : > { %v4675_v33 = vadd.f32 %v8456_v49, %v4636_v57  ;;  %v3519_v35 = vpop.permute.xlu1 %3518 }
 0x61d   : > { %v4708_v7 = vmax.f32 %v4676_v19, 0.0  ;;  %3589 = vst.msk [vmem:[#allocation5 + $0xd0] sm:$0xff] %vm3562_vm6, %v3519_v35  ;;  %v3915_v21 = vpop.permute.xlu0 %3914 }
 0x61e   : > { %v4707_v29 = vmax.f32 %v4675_v33, 0.0  ;;  %3987 = vst.msk [vmem:[#allocation5 + $0xc0] sm:$0xff] %vm3962_vm9, %v3915_v21 }
 0x61f   : > { %4740 = vst.msk [vmem:[%s8468_s27 + $0x18] sm:$0xff] %vm772_vm3, %v4708_v7 }
 0x620   : > { %4739 = vst.msk [vmem:[%s8468_s27 + $0x10] sm:$0xff] %vm772_vm3, %v4707_v29  ;;  %v4050_v45 = vpop.permute.xlu1 %4049 }
 0x621   : > { %4122 = vst.msk [vmem:[#allocation5 + $0xc0] sm:$0xff] %vm4097_vm10, %v4050_v45  ;;  %v3917_v63 = vpop.permute.xlu0 %3916  ;;  %v4287_v34 = vld [vmem:[#allocation5 + $0xb8] sm:$0xff] }
 0x622   : > { %3988 = vst.msk [vmem:[#allocation5 + $0xc8] sm:$0xff] %vm3962_vm9, %v3917_v63  ;;  %5245 = vmatmul.mubr.msk.f32.gmra.mrb[38].mxu0 %vm4301_vm12, %v4287_v34 }
 0x624   : > { %v3654_v15 = vpop.permute.xlu1 %3653 }
 0x625   : > { %3724 = vst.msk [vmem:[#allocation5 + $0xd0] sm:$0xff] %vm3697_vm7, %v3654_v15  ;;  %v3521_v8 = vpop.permute.xlu0 %3520 }
 0x626   : > { %3590 = vst.msk [vmem:[#allocation5 + $0xd8] sm:$0xff] %vm3562_vm6, %v3521_v8 }
 0x628   : > { %v4184_v9 = vpop.permute.xlu1 %4183 }
 0x629   : > { %4256 = vst.msk [vmem:[#allocation5 + $0xc0] sm:$0xff] %vm4231_vm11, %v4184_v9  ;;  %v4052_v36 = vpop.permute.xlu0 %4051 }
 0x62a   : > { %4123 = vst.msk [vmem:[#allocation5 + $0xc8] sm:$0xff] %vm4097_vm10, %v4052_v36 }
 0x62c   : > { %v3788_v11 = vpop.permute.xlu1 %3787  ;;  %v5219_v23 = vpop.f32.mrb[20].mxu0 }
 0x62d   : > { %3858 = vst.msk [vmem:[#allocation5 + $0xd0] sm:$0xff] %vm3831_vm8, %v3788_v11  ;;  %v4639_v60 = vmul.f32 %v5219_v23, %v8451_v18  ;;  %v3656_v51 = vpop.permute.xlu0 %3655  ;;  %v4488_v5 = vpop.f32.mrb[21].mxu0 }
 0x62e   : > { %3725 = vst.msk [vmem:[#allocation5 + $0xd8] sm:$0xff] %vm3697_vm7, %v3656_v51  ;;  %v4638_v3 = vmul.f32 %v8451_v18, %v4488_v5 }
 0x62f   : > { %v4678_v1 = vadd.f32 %v8456_v49, %v4639_v60 }
 0x630   : > { %v4677_v4 = vadd.f32 %v8456_v49, %v4638_v3  ;;  %v3790_v37 = vpop.permute.xlu1 %3789  ;;  %v4288_v6 = vld [vmem:[#allocation5 + $0xc0] sm:$0xff] }
 0x631   : > { %v4710_v2 = vmax.f32 %v4678_v1, 0.0  ;;  %3859 = vst.msk [vmem:[#allocation5 + $0xd8] sm:$0xff] %vm3831_vm8, %v3790_v37  ;;  %v4186_v24 = vpop.permute.xlu0 %4185  ;;  %5247 = vmatprep.mubr.msk.f32.mxu0 %vm4301_vm12, %v4288_v6 }
 0x632   : > { %v4709_v48 = vmax.f32 %v4677_v4, 0.0  ;;  %4257 = vst.msk [vmem:[#allocation5 + $0xc8] sm:$0xff] %vm4231_vm11, %v4186_v24 }
 0x633   : > { %4742 = vst.msk [vmem:[%s8468_s27 + $0x28] sm:$0xff] %vm772_vm3, %v4710_v2 }
 0x634   : > { %4741 = vst.msk [vmem:[%s8468_s27 + $0x20] sm:$0xff] %vm772_vm3, %v4709_v48  ;;  %v3523_v53 = vpop.permute.xlu1 %3522 }
 0x635   : > { %3591 = vst.msk [vmem:[#allocation5 + $0xe0] sm:$0xff] %vm3562_vm6, %v3523_v53  ;;  %v3919_v10 = vpop.permute.xlu0 %3918 }
 0x636   : > { %3989 = vst.msk [vmem:[#allocation5 + $0xd0] sm:$0xff] %vm3962_vm9, %v3919_v10 }
 0x638   : > { %v4054_v47 = vpop.permute.xlu1 %4053 }
 0x639   : > { %4124 = vst.msk [vmem:[#allocation5 + $0xd0] sm:$0xff] %vm4097_vm10, %v4054_v47  ;;  %v3921_v31 = vpop.permute.xlu0 %3920  ;;  %v4289_v43 = vld [vmem:[#allocation5 + $0xc8] sm:$0xff] }
 0x63a   : > { %3990 = vst.msk [vmem:[#allocation5 + $0xd8] sm:$0xff] %vm3962_vm9, %v3921_v31  ;;  %5248 = vmatmul.mubr.msk.f32.gmra.mrb[40].mxu0 %vm4301_vm12, %v4289_v43 }
 0x63c   : > { %v3658_v0 = vpop.permute.xlu1 %3657 }
 0x63d   : > { %3726 = vst.msk [vmem:[#allocation5 + $0xe0] sm:$0xff] %vm3697_vm7, %v3658_v0  ;;  %v3525_v56 = vpop.permute.xlu0 %3524 }
 0x63e   : > { %3592 = vst.msk [vmem:[#allocation5 + $0xe8] sm:$0xff] %vm3562_vm6, %v3525_v56 }
 0x640   : > { %v4188_v44 = vpop.permute.xlu1 %4187  ;;  %v5222_v62 = vpop.f32.mrb[22].mxu0 }
 0x641   : > { %4258 = vst.msk [vmem:[#allocation5 + $0xd0] sm:$0xff] %vm4231_vm11, %v4188_v44  ;;  %v4641_v41 = vmul.f32 %v5222_v62, %v8451_v18  ;;  %v4056_v54 = vpop.permute.xlu0 %4055  ;;  %v4498_v50 = vpop.f32.mrb[23].mxu0 }
 0x642   : > { %4125 = vst.msk [vmem:[#allocation5 + $0xd8] sm:$0xff] %vm4097_vm10, %v4056_v54  ;;  %v4640_v20 = vmul.f32 %v8451_v18, %v4498_v50 }
 0x643   : > { %v4680_v22 = vadd.f32 %v8456_v49, %v4641_v41 }
 0x644   : > { %v4679_v28 = vadd.f32 %v8456_v49, %v4640_v20  ;;  %v3792_v38 = vpop.permute.xlu1 %3791 }
 0x645   : > { %v4712_v17 = vmax.f32 %v4680_v22, 0.0  ;;  %3860 = vst.msk [vmem:[#allocation5 + $0xe0] sm:$0xff] %vm3831_vm8, %v3792_v38  ;;  %v3660_v52 = vpop.permute.xlu0 %3659 }
 0x646   : > { %v4711_v59 = vmax.f32 %v4679_v28, 0.0  ;;  %3727 = vst.msk [vmem:[#allocation5 + $0xe8] sm:$0xff] %vm3697_vm7, %v3660_v52 }
 0x647   : > { %4744 = vst.msk [vmem:[%s8468_s27 + $0x38] sm:$0xff] %vm772_vm3, %v4712_v17 }
 0x648   : > { %4743 = vst.msk [vmem:[%s8468_s27 + $0x30] sm:$0xff] %vm772_vm3, %v4711_v59  ;;  %v3794_v25 = vpop.permute.xlu1 %3793  ;;  %v4290_v27 = vld [vmem:[#allocation5 + $0xd0] sm:$0xff] }
 0x649   : > { %3861 = vst.msk [vmem:[#allocation5 + $0xe8] sm:$0xff] %vm3831_vm8, %v3794_v25  ;;  %v4190_v61 = vpop.permute.xlu0 %4189  ;;  %5250 = vmatprep.mubr.msk.f32.mxu0 %vm4301_vm12, %v4290_v27 }
 0x64a   : > { %4259 = vst.msk [vmem:[#allocation5 + $0xd8] sm:$0xff] %vm4231_vm11, %v4190_v61 }
 0x64c   : > { %v3527_v13 = vpop.permute.xlu1 %3526 }
 0x64d   : > { %3593 = vst.msk [vmem:[#allocation5 + $0xf0] sm:$0xff] %vm3562_vm6, %v3527_v13  ;;  %v3923_v16 = vpop.permute.xlu0 %3922 }
 0x64e   : > { %3991 = vst.msk [vmem:[#allocation5 + $0xe0] sm:$0xff] %vm3962_vm9, %v3923_v16 }
 0x650   : > { %v4058_v30 = vpop.permute.xlu1 %4057 }
 0x651   : > { %v3925_v32 = vpop.permute.xlu0 %3924  ;;  %4126 = vst.msk [vmem:[#allocation5 + $0xe0] sm:$0xff] %vm4097_vm10, %v4058_v30  ;;  %v4291_v26 = vld [vmem:[#allocation5 + $0xd8] sm:$0xff] }
 0x652   : > { %3992 = vst.msk [vmem:[#allocation5 + $0xe8] sm:$0xff] %vm3962_vm9, %v3925_v32  ;;  %5251 = vmatmul.mubr.msk.f32.gmra.mrb[42].mxu0 %vm4301_vm12, %v4291_v26 }
 0x654   : > { %v5225_v55 = vpop.f32.mrb[24].mxu0  ;;  %v3662_v46 = vpop.permute.xlu1 %3661 }
 0x655   : > { %v4643_v12 = vmul.f32 %v5225_v55, %v8451_v18  ;;  %v3529_v40 = vpop.permute.xlu0 %3528  ;;  %3728 = vst.msk [vmem:[#allocation5 + $0xf0] sm:$0xff] %vm3697_vm7, %v3662_v46  ;;  %v4508_v14 = vpop.f32.mrb[25].mxu0 }
 0x656   : > { %3594 = vst.msk [vmem:[#allocation5 + $0xf8] sm:$0xff] %vm3562_vm6, %v3529_v40  ;;  %v4642_v58 = vmul.f32 %v8451_v18, %v4508_v14 }
 0x657   : > { %v4682_v42 = vadd.f32 %v8456_v49, %v4643_v12 }
 0x658   : > { %v4681_v39 = vadd.f32 %v8456_v49, %v4642_v58  ;;  %v4192_v57 = vpop.permute.xlu1 %4191 }
 0x659   : > { %v4714_v19 = vmax.f32 %v4682_v42, 0.0  ;;  %v4060_v33 = vpop.permute.xlu0 %4059  ;;  %4260 = vst.msk [vmem:[#allocation5 + $0xe0] sm:$0xff] %vm4231_vm11, %v4192_v57 }
 0x65a   : > { %v4713_v35 = vmax.f32 %v4681_v39, 0.0  ;;  %4127 = vst.msk [vmem:[#allocation5 + $0xe8] sm:$0xff] %vm4097_vm10, %v4060_v33 }
 0x65b   : > { %4746 = vst.msk [vmem:[%s8468_s27 + $0x48] sm:$0xff] %vm772_vm3, %v4714_v19 }
 0x65c   : > { %4745 = vst.msk [vmem:[%s8468_s27 + $0x40] sm:$0xff] %vm772_vm3, %v4713_v35  ;;  %v3796_v7 = vpop.permute.xlu1 %3795 }
 0x65d   : > { %v3664_v21 = vpop.permute.xlu0 %3663  ;;  %3862 = vst.msk [vmem:[#allocation5 + $0xf0] sm:$0xff] %vm3831_vm8, %v3796_v7 }
 0x65e   : > { %3729 = vst.msk [vmem:[#allocation5 + $0xf8] sm:$0xff] %vm3697_vm7, %v3664_v21 }
 0x660   : > { %v3798_v29 = vpop.permute.xlu1 %3797  ;;  %v4292_v45 = vld [vmem:[#allocation5 + $0xe0] sm:$0xff] }
 0x661   : > { %v4194_v63 = vpop.permute.xlu0 %4193  ;;  %3863 = vst.msk [vmem:[#allocation5 + $0xf8] sm:$0xff] %vm3831_vm8, %v3798_v29  ;;  %5253 = vmatprep.mubr.msk.f32.mxu0 %vm4301_vm12, %v4292_v45 }
 0x662   : > { %4261 = vst.msk [vmem:[#allocation5 + $0xe8] sm:$0xff] %vm4231_vm11, %v4194_v63 }
 0x664   : > { %v3929_v34 = vpop.permute.xlu1 %3928 }
 0x665   : > { %v3927_v15 = vpop.permute.xlu0 %3926  ;;  %3994 = vst.msk [vmem:[#allocation5 + $0xf8] sm:$0xff] %vm3962_vm9, %v3929_v34 }
 0x666   : > { %3993 = vst.msk [vmem:[#allocation5 + $0xf0] sm:$0xff] %vm3962_vm9, %v3927_v15 }
 0x668   : > { %v5228_v8 = vpop.f32.mrb[26].mxu0  ;;  %v4064_v9 = vpop.permute.xlu1 %4063 }
 0x669   : > { %v4645_v36 = vmul.f32 %v5228_v8, %v8451_v18  ;;  %v4062_v11 = vpop.permute.xlu0 %4061  ;;  %v4518_v23 = vpop.f32.mrb[27].mxu0  ;;  %v4293_v60 = vld [vmem:[#allocation5 + $0xe8] sm:$0xff]  ;;  %4129 = vst.msk [vmem:[#allocation5 + $0xf8] sm:$0xff] %vm4097_vm10, %v4064_v9 }
 0x66a   : > { %4128 = vst.msk [vmem:[#allocation5 + $0xf0] sm:$0xff] %vm4097_vm10, %v4062_v11  ;;  %v4644_v51 = vmul.f32 %v8451_v18, %v4518_v23  ;;  %5254 = vmatmul.mubr.msk.f32.gmra.mrb[44].mxu0 %vm4301_vm12, %v4293_v60 }
 0x66b   : > { %v4684_v5 = vadd.f32 %v8456_v49, %v4645_v36 }
 0x66c   : > { %v4683_v3 = vadd.f32 %v8456_v49, %v4644_v51  ;;  %v4198_v1 = vpop.permute.xlu1 %4197 }
 0x66d   : > { %v4716_v4 = vmax.f32 %v4684_v5, 0.0  ;;  %v4196_v37 = vpop.permute.xlu0 %4195  ;;  %4263 = vst.msk [vmem:[#allocation5 + $0xf8] sm:$0xff] %vm4231_vm11, %v4198_v1 }
 0x66e   : > { %v4715_v6 = vmax.f32 %v4683_v3, 0.0  ;;  %4262 = vst.msk [vmem:[#allocation5 + $0xf0] sm:$0xff] %vm4231_vm11, %v4196_v37 }
 0x66f   : > { %4748 = vst.msk [vmem:[%s8468_s27 + $0x58] sm:$0xff] %vm772_vm3, %v4716_v4 }
 0x670   : > { %4747 = vst.msk [vmem:[%s8468_s27 + $0x50] sm:$0xff] %vm772_vm3, %v4715_v6 }
 0x674   : > { %v4295_v2 = vld [vmem:[#allocation5 + $0xf8] sm:$0xff] }
 0x675   : > { %v4294_v24 = vld [vmem:[#allocation5 + $0xf0] sm:$0xff] }
 0x676   : > { %5256 = vmatprep.mubr.msk.f32.mxu0 %vm4301_vm12, %v4294_v24 }
 0x677   : > { %5257 = vmatmul.mubr.msk.f32.gmra.mrb[46].mxu0 %vm4301_vm12, %v4295_v2 }
 0x67c   : > { %v5231_v48 = vpop.f32.mrb[28].mxu0 }
 0x67d   : > { %v4647_v53 = vmul.f32 %v5231_v48, %v8451_v18  ;;  %v4528_v10 = vpop.f32.mrb[29].mxu0 }
 0x67e   : > { %v4646_v47 = vmul.f32 %v8451_v18, %v4528_v10 }
 0x67f   : > { %v4686_v31 = vadd.f32 %v8456_v49, %v4647_v53 }
 0x680   : > { %v4685_v43 = vadd.f32 %v8456_v49, %v4646_v47 }
 0x681   : > { %v4718_v0 = vmax.f32 %v4686_v31, 0.0 }
 0x682   : > { %v4717_v56 = vmax.f32 %v4685_v43, 0.0 }
 0x683   : > { %4750 = vst.msk [vmem:[%s8468_s27 + $0x68] sm:$0xff] %vm772_vm3, %v4718_v0 }
 0x684   : > { %4749 = vst.msk [vmem:[%s8468_s27 + $0x60] sm:$0xff] %vm772_vm3, %v4717_v56 }
 0x695   : > { %v5234_v44 = vpop.f32.mrb[30].mxu0 }
 0x696   : > { %v4649_v62 = vmul.f32 %v5234_v44, %v8451_v18  ;;  %v4538_v41 = vpop.f32.mrb[31].mxu0 }
 0x697   : > { %v4648_v54 = vmul.f32 %v8451_v18, %v4538_v41 }
 0x698   : > { %v4688_v50 = vadd.f32 %v8456_v49, %v4649_v62 }
 0x699   : > { %v4687_v20 = vadd.f32 %v8456_v49, %v4648_v54 }
 0x69a   : > { %v4720_v22 = vmax.f32 %v4688_v50, 0.0 }
 0x69b   : > { %v4719_v28 = vmax.f32 %v4687_v20, 0.0 }
 0x69c   : > { %4752 = vst.msk [vmem:[%s8468_s27 + $0x78] sm:$0xff] %vm772_vm3, %v4720_v22 }
 0x69d   : > { %4751 = vst.msk [vmem:[%s8468_s27 + $0x70] sm:$0xff] %vm772_vm3, %v4719_v28 }
 0x6ad   : > { %v5237_v38 = vpop.f32.mrb[32].mxu0 }
 0x6ae   : > { %v4651_v17 = vmul.f32 %v5237_v38, %v8451_v18  ;;  %v4548_v52 = vpop.f32.mrb[33].mxu0 }
 0x6af   : > { %v4650_v59 = vmul.f32 %v8451_v18, %v4548_v52 }
 0x6b0   : > { %v4690_v25 = vadd.f32 %v8456_v49, %v4651_v17 }
 0x6b1   : > { %v4689_v27 = vadd.f32 %v8456_v49, %v4650_v59 }
 0x6b2   : > { %v4722_v61 = vmax.f32 %v4690_v25, 0.0 }
 0x6b3   : > { %v4721_v13 = vmax.f32 %v4689_v27, 0.0 }
 0x6b4   : > { %4754 = vst.msk [vmem:[%s8468_s27 + $0x88] sm:$0xff] %vm772_vm3, %v4722_v61 }
 0x6b5   : > { %4753 = vst.msk [vmem:[%s8468_s27 + $0x80] sm:$0xff] %vm772_vm3, %v4721_v13 }
 0x6c5   : > { %v5240_v16 = vpop.f32.mrb[34].mxu0 }
 0x6c6   : > { %v4653_v30 = vmul.f32 %v5240_v16, %v8451_v18  ;;  %v4558_v32 = vpop.f32.mrb[35].mxu0 }
 0x6c7   : > { %v4652_v26 = vmul.f32 %v8451_v18, %v4558_v32 }
 0x6c8   : > { %v4692_v55 = vadd.f32 %v8456_v49, %v4653_v30 }
 0x6c9   : > { %v4691_v46 = vadd.f32 %v8456_v49, %v4652_v26 }
 0x6ca   : > { %v4724_v12 = vmax.f32 %v4692_v55, 0.0 }
 0x6cb   : > { %v4723_v40 = vmax.f32 %v4691_v46, 0.0 }
 0x6cc   : > { %4756 = vst.msk [vmem:[%s8468_s27 + $0x98] sm:$0xff] %vm772_vm3, %v4724_v12 }
 0x6cd   : > { %4755 = vst.msk [vmem:[%s8468_s27 + $0x90] sm:$0xff] %vm772_vm3, %v4723_v40 }
 0x6dd   : > { %v5243_v14 = vpop.f32.mrb[36].mxu0 }
 0x6de   : > { %v4655_v58 = vmul.f32 %v5243_v14, %v8451_v18  ;;  %v4568_v42 = vpop.f32.mrb[37].mxu0 }
 0x6df   : > { %v4654_v39 = vmul.f32 %v8451_v18, %v4568_v42 }
 0x6e0   : > { %v4694_v57 = vadd.f32 %v8456_v49, %v4655_v58 }
 0x6e1   : > { %v4693_v19 = vadd.f32 %v8456_v49, %v4654_v39 }
 0x6e2   : > { %v4726_v33 = vmax.f32 %v4694_v57, 0.0 }
 0x6e3   : > { %v4725_v35 = vmax.f32 %v4693_v19, 0.0 }
 0x6e4   : > { %4758 = vst.msk [vmem:[%s8468_s27 + $0xa8] sm:$0xff] %vm772_vm3, %v4726_v33 }
 0x6e5   : > { %4757 = vst.msk [vmem:[%s8468_s27 + $0xa0] sm:$0xff] %vm772_vm3, %v4725_v35 }
 0x6f5   : > { %v5246_v7 = vpop.f32.mrb[38].mxu0 }
 0x6f6   : > { %v4657_v21 = vmul.f32 %v5246_v7, %v8451_v18  ;;  %v4578_v29 = vpop.f32.mrb[39].mxu0 }
 0x6f7   : > { %v4656_v45 = vmul.f32 %v8451_v18, %v4578_v29 }
 0x6f8   : > { %v4696_v63 = vadd.f32 %v8456_v49, %v4657_v21 }
 0x6f9   : > { %v4695_v34 = vadd.f32 %v8456_v49, %v4656_v45 }
 0x6fa   : > { %v4728_v15 = vmax.f32 %v4696_v63, 0.0 }
 0x6fb   : > { %v4727_v8 = vmax.f32 %v4695_v34, 0.0 }
 0x6fc   : > { %4760 = vst.msk [vmem:[%s8468_s27 + $0xb8] sm:$0xff] %vm772_vm3, %v4728_v15 }
 0x6fd   : > { %4759 = vst.msk [vmem:[%s8468_s27 + $0xb0] sm:$0xff] %vm772_vm3, %v4727_v8 }
 0x70d   : > { %v5249_v9 = vpop.f32.mrb[40].mxu0 }
 0x70e   : > { %v4659_v36 = vmul.f32 %v5249_v9, %v8451_v18  ;;  %v4588_v11 = vpop.f32.mrb[41].mxu0 }
 0x70f   : > { %v4658_v23 = vmul.f32 %v8451_v18, %v4588_v11 }
 0x710   : > { %v4698_v60 = vadd.f32 %v8456_v49, %v4659_v36 }
 0x711   : > { %v4697_v51 = vadd.f32 %v8456_v49, %v4658_v23 }
 0x712   : > { %v4730_v5 = vmax.f32 %v4698_v60, 0.0 }
 0x713   : > { %v4729_v3 = vmax.f32 %v4697_v51, 0.0 }
 0x714   : > { %4762 = vst.msk [vmem:[%s8468_s27 + $0xc8] sm:$0xff] %vm772_vm3, %v4730_v5 }
 0x715   : > { %4761 = vst.msk [vmem:[%s8468_s27 + $0xc0] sm:$0xff] %vm772_vm3, %v4729_v3 }
 0x725   : > { %v5252_v1 = vpop.f32.mrb[42].mxu0 }
 0x726   : > { %v4661_v4 = vmul.f32 %v5252_v1, %v8451_v18  ;;  %v4598_v37 = vpop.f32.mrb[43].mxu0 }
 0x727   : > { %v4660_v6 = vmul.f32 %v8451_v18, %v4598_v37 }
 0x728   : > { %v4700_v2 = vadd.f32 %v8456_v49, %v4661_v4 }
 0x729   : > { %v4699_v24 = vadd.f32 %v8456_v49, %v4660_v6 }
 0x72a   : > { %v4732_v48 = vmax.f32 %v4700_v2, 0.0 }
 0x72b   : > { %v4731_v53 = vmax.f32 %v4699_v24, 0.0 }
 0x72c   : > { %4764 = vst.msk [vmem:[%s8468_s27 + $0xd8] sm:$0xff] %vm772_vm3, %v4732_v48 }
 0x72d   : > { %4763 = vst.msk [vmem:[%s8468_s27 + $0xd0] sm:$0xff] %vm772_vm3, %v4731_v53 }
 0x73d   : > { %v5255_v10 = vpop.f32.mrb[44].mxu0 }
 0x73e   : > { %v4663_v47 = vmul.f32 %v5255_v10, %v8451_v18  ;;  %v4608_v31 = vpop.f32.mrb[45].mxu0 }
 0x73f   : > { %v4662_v43 = vmul.f32 %v8451_v18, %v4608_v31 }
 0x740   : > { %v4702_v0 = vadd.f32 %v8456_v49, %v4663_v47 }
 0x741   : > { %v4701_v56 = vadd.f32 %v8456_v49, %v4662_v43 }
 0x742   : > { %v4734_v44 = vmax.f32 %v4702_v0, 0.0 }
 0x743   : > { %v4733_v62 = vmax.f32 %v4701_v56, 0.0 }
 0x744   : > { %4766 = vst.msk [vmem:[%s8468_s27 + $0xe8] sm:$0xff] %vm772_vm3, %v4734_v44 }
 0x745   : > { %4765 = vst.msk [vmem:[%s8468_s27 + $0xe0] sm:$0xff] %vm772_vm3, %v4733_v62 }
 0x74a   : > { %v5258_v41 = vpop.f32.mrb[46].mxu0 }
 0x74b   : > { %v4665_v54 = vmul.f32 %v5258_v41, %v8451_v18  ;;  %v4618_v50 = vpop.f32.mrb[47].mxu0 }
 0x74c   : > { %v4664_v20 = vmul.f32 %v8451_v18, %v4618_v50 }
 0x74d   : > { %v4704_v22 = vadd.f32 %v8456_v49, %v4665_v54 }
 0x74e   : > { %v4703_v28 = vadd.f32 %v8456_v49, %v4664_v20 }
 0x74f   : > { %v4736_v38 = vmax.f32 %v4704_v22, 0.0 }
 0x750   : > { %v4735_v17 = vmax.f32 %v4703_v28, 0.0 }
 0x751   : > { %4768 = vst.msk [vmem:[%s8468_s27 + $0xf8] sm:$0xff] %vm772_vm3, %v4736_v38 }
 0x752   : > { %4767 = vst.msk [vmem:[%s8468_s27 + $0xf0] sm:$0xff] %vm772_vm3, %v4735_v17 }
 0x753 PF: > { %s19_s30 = sadd.s32 1, %s5336_s30  }
 0x754   : > { %p16_p4 = scmp.ge.s32.totalorder %s19_s30, 4  }
 0x756   :  { %18 = sbr.rel (!%p16_p4) target bundleno = 1 (0x1), region = 91 }

</bundles_post_ra>
